<compile_context>
chip_gen: v7x
topology: tpu7x:2x2x1
jax: 0.10.0
libtpu: 0.0.40
codegen_flags: <defaults>
</compile_context>

<pallas_src>
import functools

import jax
import jax.numpy as jnp
import numpy as np
from jax.experimental import pallas as pl
from jax.experimental.pallas import tpu as pltpu


def _round_up(x, m):
    return ((x + m - 1) // m) * m


def _ghost_kernel(xt_ref, xm_ref, xb_ref, w1_ref, b1_ref, wdw_ref, b2_ref,
                  o_ref, *, th, img_h, w, cw, c_, joint):
    """One (batch, row-tile) step of GhostConv.

    xt_ref : (2,  W, C1)  top-halo rows (global rows r*th-2..r*th-1, clamped)
    xm_ref : (th, W, C1)  main rows     (global rows r*th..r*th+th-1)
    xb_ref : (2,  W, C1)  bottom-halo rows (clamped)
    w1_ref : (C1, cw)     1x1 weights, BN1 scale folded, lane-packed (see wrapper)
    b1_ref : (1,  cw)     folded BN1 bias (zeros in inactive lanes)
    wdw_ref: (25, cw)     5x5 depthwise weights (kh*5+kw, c), BN2 scale folded
    b2_ref : (1,  cw)     folded BN2 bias
    o_ref  : (th, W, co)  joint: lanes [0:c_) = y1, [c_:2c_) = y2
                          split: lanes [0:cw) = y1, [cw:2cw) = y2
    """
    thp = th + 4
    r = pl.program_id(1)

    # ---- assemble haloed input tile (cheap leading-dim concat, C1 lanes) ----
    x = jnp.concatenate([xt_ref[...], xm_ref[...], xb_ref[...]], axis=0)
    c1 = x.shape[-1]

    # ---- cv1: 1x1 conv as one MXU matmul (+BN1 bias, SiLU) over the tile ----
    y1 = jnp.dot(x.reshape(thp * w, c1), w1_ref[...],
                 preferred_element_type=jnp.float32)
    y1 = y1 + b1_ref[...]
    y1 = y1 * jax.nn.sigmoid(y1)                      # SiLU (EUP)
    y1 = y1.reshape(thp, w, cw)

    # Zero rows outside the image: the depthwise conv zero-pads y1, not x.
    g = r * th - 2 + jax.lax.broadcasted_iota(jnp.int32, (thp, 1, 1), 0)
    y1 = jnp.where((g >= 0) & (g < img_h), y1, 0.0)

    # ---- cv2: 5x5 depthwise conv (pad=2).  Hoist the 5 W-direction shifts
    #      out of the 25-tap loop: 5 shifted/zero-padded copies, then kh is a
    #      cheap leading-dim slice. ----
    views = []
    for s in (-2, -1, 0, 1, 2):
        if s == 0:
            views.append(y1)
        elif s < 0:
            zc = jnp.zeros((thp, -s, cw), jnp.float32)
            views.append(jnp.concatenate([zc, y1[:, :w + s, :]], axis=1))
        else:
            zc = jnp.zeros((thp, s, cw), jnp.float32)
            views.append(jnp.concatenate([y1[:, s:, :], zc], axis=1))

    wdw = wdw_ref[...]                                # (25, cw)
    acc = b2_ref[...] + views[0][0:th] * wdw[0:1, :]  # seed: bias + tap (0,0)
    for kh in range(5):
        for kw in range(5):
            if kh == 0 and kw == 0:
                continue
            k = kh * 5 + kw
            acc = acc + views[kw][kh:kh + th] * wdw[k:k + 1, :]
    y2 = acc * jax.nn.sigmoid(acc)                    # SiLU

    y1i = y1[2:2 + th]                                # interior rows of y1

    if joint:
        # Joint 128-lane layout: w1/b1 were duplicated into lanes [c_:2c_), so
        # y1i already carries y1 in BOTH lane ranges and y2 lives in lanes
        # [c_:2c_) (zeros elsewhere).  One lane-iota select -> one full store.
        lane = jax.lax.broadcasted_iota(jnp.int32, (1, 1, cw), 2)
        o_ref[...] = jnp.where(lane < c_, y1i, y2).astype(o_ref.dtype)
    else:
        o_ref[:, :, :cw] = y1i.astype(o_ref.dtype)
        o_ref[:, :, cw:] = y2.astype(o_ref.dtype)


def ghostconv_forward(x_nchw, w1, gamma1, beta1, mean1, var1,
                      wdw, gamma2, beta2, mean2, var2,
                      *, row_tile=32, eps=1e-5, io_dtype=None):
    """GhostConv.forward (k=1, s=1) with eval-mode BN.  NCHW in / NCHW out.

    io_dtype: dtype of the HBM-side tensors (x tiles, 1x1 weights, output).
      bf16 halves DMA bytes and runs the MXU at native rate on v6e/v7x while
      all in-kernel accumulation stays f32.  Default: x_nchw.dtype.
    """
    N, C1, H, W = x_nchw.shape
    C_ = w1.shape[0]                       # cv1 weight: (c_, c1, 1, 1)
    assert w1.shape == (C_, C1, 1, 1)
    assert wdw.shape == (C_, 1, 5, 5)      # cv2 depthwise weight
    assert W % 8 == 0, "W must be a multiple of 8 (pad in the caller)"

    io_dtype = x_nchw.dtype if io_dtype is None else io_dtype
    f32 = jnp.float32

    # ---- channel layout: joint 128-lane slab when both branches fit ----
    joint = (2 * C_) <= 128
    if joint:
        cw = 128                           # compute lane width (both branches)
        co = 128                           # output channel width (y1|y2|pad)
    else:
        cw = _round_up(C_, 128)
        co = 2 * cw

    # ---- row tiling: halo recompute cost is 4/th; shrink th until the
    #      per-step working set fits the VMEM budget (sized for v7x) ----
    th = max(2, min(row_tile, H))
    th -= th % 2
    bpe = jnp.dtype(io_dtype).itemsize

    def vmem_estimate(t):
        tp = t + 4
        inp = 2 * tp * W * C1 * bpe                    # haloed input, dbl-buffered
        wgt = 2 * (C1 * cw * bpe + 27 * cw * 4)        # weights + biases
        out = 2 * t * W * co * bpe                     # output tile, dbl-buffered
        tmp = tp * W * C1 * 4 + 8 * tp * W * cw * 4    # x concat, y1, views, acc
        return inp + wgt + out + tmp

    budget = 40 * 2**20
    while th > 8 and vmem_estimate(th) > budget:
        th = max(8, th // 2)
        th -= th % 2
    nt = pl.cdiv(H, th)
    vmem_limit = int(min(64 * 2**20, max(32 * 2**20, 1.5 * vmem_estimate(th))))

    # ---- fold eval-mode BN into conv weights / biases (one-time XLA work) ----
    s1 = gamma1.astype(f32) * jax.lax.rsqrt(var1.astype(f32) + eps)
    w1_c = jnp.transpose(w1[:, :, 0, 0].astype(f32), (1, 0)) * s1[None, :]   # (C1, C_)
    b1_c = beta1.astype(f32) - mean1.astype(f32) * s1
    s2 = gamma2.astype(f32) * jax.lax.rsqrt(var2.astype(f32) + eps)
    wdw_c = (jnp.transpose(wdw[:, 0, :, :].astype(f32), (1, 2, 0))
             .reshape(25, C_) * s2[None, :])                                 # (25, C_)
    b2_c = beta2.astype(f32) - mean2.astype(f32) * s2

    def lane_pack(mat, start):
        out = jnp.zeros(mat.shape[:-1] + (cw,), f32)
        return out.at[..., start:start + C_].set(mat)

    if joint:
        # Duplicate the cv1 columns so the matmul emits y1 in BOTH lane slots;
        # the depthwise weights live only in lanes [C_:2C_).
        w1_mat = lane_pack(w1_c, 0) + lane_pack(w1_c, C_)
        b1_v = lane_pack(b1_c, 0) + lane_pack(b1_c, C_)
        wdw_mat = lane_pack(wdw_c, C_)
        b2_v = lane_pack(b2_c, C_)
    else:
        w1_mat = lane_pack(w1_c, 0)
        b1_v = lane_pack(b1_c, 0)
        wdw_mat = lane_pack(wdw_c, 0)
        b2_v = lane_pack(b2_c, 0)
    w1_mat = w1_mat.astype(io_dtype)
    b1_v = b1_v.reshape(1, cw)
    b2_v = b2_v.reshape(1, cw)

    # ---- NCHW -> NHWC + io dtype cast (interface only; see TODO above) ----
    x_nhwc = jnp.transpose(x_nchw, (0, 2, 3, 1)).astype(io_dtype)   # (N, H, W, C1)

    kernel = functools.partial(_ghost_kernel, th=th, img_h=H, w=W,
                               cw=cw, c_=C_, joint=joint)

    h2 = th // 2                      # halo blocks are 2 rows tall; th is even
    max_b2 = pl.cdiv(H, 2) - 1        # last valid 2-row block index along H

    out = pl.pallas_call(
        kernel,
        out_shape=jax.ShapeDtypeStruct((N, H, W, co), io_dtype),
        grid_spec=pltpu.PrefetchScalarGridSpec(
            num_scalar_prefetch=0,
            grid=(N, nt),
            in_specs=[
                # top halo: global rows [r*th-2, r*th), clamped & masked in-kernel
                pl.BlockSpec((pl.Squeezed(), 2, W, C1),
                             lambda n, r: (n, jnp.maximum(r * h2 - 1, 0), 0, 0)),
                # main rows [r*th, r*th+th)
                pl.BlockSpec((pl.Squeezed(), th, W, C1),
                             lambda n, r: (n, r, 0, 0)),
                # bottom halo: global rows [(r+1)*th, (r+1)*th+2), clamped
                pl.BlockSpec((pl.Squeezed(), 2, W, C1),
                             lambda n, r: (n, jnp.minimum((r + 1) * h2, max_b2), 0, 0)),
                # weights / biases: constant index_map -> resident across the grid
                pl.BlockSpec((C1, cw), lambda n, r: (0, 0)),
                pl.BlockSpec((1, cw), lambda n, r: (0, 0)),
                pl.BlockSpec((25, cw), lambda n, r: (0, 0)),
                pl.BlockSpec((1, cw), lambda n, r: (0, 0)),
            ],
            out_specs=pl.BlockSpec((pl.Squeezed(), th, W, co),
                                   lambda n, r: (n, r, 0, 0)),
        ),
        compiler_params=pltpu.CompilerParams(
            dimension_semantics=("parallel", "parallel"),
            vmem_limit_bytes=vmem_limit),
    )(x_nhwc, x_nhwc, x_nhwc, w1_mat, b1_v, wdw_mat, b2_v)

    # ---- rebuild torch.cat((y1, y2), dim=1) in NCHW (interface parity) ----
    if joint:
        out = out[..., :2 * C_]                               # (N, H, W, 2C_)
        return jnp.transpose(out, (0, 3, 1, 2))
    out = out.reshape(N, H, W, 2, cw)[..., :C_]               # (N, H, W, 2, C_)
    return jnp.transpose(out, (0, 3, 4, 1, 2)).reshape(N, 2 * C_, H, W)


def ghostconv_reference(x, w1, gamma1, beta1, mean1, var1,
                        wdw, gamma2, beta2, mean2, var2, eps=1e-5):
    """Pure-JAX reference of GhostConv.forward (eval-mode BN)."""
    def conv_bn_silu(inp, w, g, b, m, v, pad, groups):
        dn = jax.lax.conv_dimension_numbers(inp.shape, w.shape,
                                            ("NCHW", "OIHW", "NCHW"))
        y = jax.lax.conv_general_dilated(inp, w, (1, 1), ((pad, pad), (pad, pad)),
                                         dimension_numbers=dn,
                                         feature_group_count=groups)
        s = g / jnp.sqrt(v + eps)
        bias = b - m * s
        y = y * s[None, :, None, None] + bias[None, :, None, None]
        return y * jax.nn.sigmoid(y)

    y1 = conv_bn_silu(x, w1, gamma1, beta1, mean1, var1, pad=0, groups=1)
    y2 = conv_bn_silu(y1, wdw, gamma2, beta2, mean2, var2, pad=2,
                      groups=wdw.shape[0])
    return jnp.concatenate([y1, y2], axis=1)


if __name__ == "__main__":
    N, C1, C2, H, W = 2, 4, 8, 16, 16
    C_ = C2 // 2

    key = jax.random.PRNGKey(0)
    ks = jax.random.split(key, 11)

    x = jax.random.normal(ks[0], (N, C1, H, W), dtype=jnp.float32)
    # cv1: nn.Conv2d(c1, c_, 1, 1, 0, bias=False)
    w1 = jax.random.normal(ks[1], (C_, C1, 1, 1), dtype=jnp.float32) * 0.3
    # cv2: nn.Conv2d(c_, c_, 5, 1, 2, groups=c_, bias=False)
    wdw = jax.random.normal(ks[2], (C_, 1, 5, 5), dtype=jnp.float32) * 0.2
    # BatchNorm2d running stats / affine params
    gamma1 = 1.0 + 0.1 * jax.random.normal(ks[3], (C_,), dtype=jnp.float32)
    beta1 = 0.1 * jax.random.normal(ks[4], (C_,), dtype=jnp.float32)
    mean1 = 0.1 * jax.random.normal(ks[5], (C_,), dtype=jnp.float32)
    var1 = jax.random.uniform(ks[6], (C_,), jnp.float32, 0.5, 1.5)
    gamma2 = 1.0 + 0.1 * jax.random.normal(ks[7], (C_,), dtype=jnp.float32)
    beta2 = 0.1 * jax.random.normal(ks[8], (C_,), dtype=jnp.float32)
    mean2 = 0.1 * jax.random.normal(ks[9], (C_,), dtype=jnp.float32)
    var2 = jax.random.uniform(ks[10], (C_,), jnp.float32, 0.5, 1.5)

    y_ref = ghostconv_reference(x, w1, gamma1, beta1, mean1, var1,
                                wdw, gamma2, beta2, mean2, var2)

    # f32 I/O path (exact-ish): tight tolerance.
    y = ghostconv_forward(x, w1, gamma1, beta1, mean1, var1,
                          wdw, gamma2, beta2, mean2, var2, row_tile=32)
    y = jax.block_until_ready(y)
    np.testing.assert_allclose(np.asarray(y), np.asarray(y_ref),
                               rtol=1e-4, atol=1e-4)

    # bf16 I/O path (production mode for v6e/v7x: half the HBM bytes, native
    # MXU rate; f32 accumulation inside) -> looser tolerance.
    y_bf = ghostconv_forward(x, w1, gamma1, beta1, mean1, var1,
                             wdw, gamma2, beta2, mean2, var2,
                             row_tile=32, io_dtype=jnp.bfloat16)
    y_bf = jax.block_until_ready(y_bf)
    np.testing.assert_allclose(np.asarray(y_bf, dtype=np.float32),
                               np.asarray(y_ref), rtol=5e-2, atol=5e-2)

    print("KERNEL_OK")
</pallas_src>

<mosaic_0001>
module attributes {stable_mosaic.version = 11 : i64} {
  func.func @_ghost_kernel(%arg0: i32, %arg1: i32, %arg2: memref<1x2x16x4xf32, #tpu.memory_space<vmem>>, %arg3: memref<1x16x16x4xf32, #tpu.memory_space<vmem>>, %arg4: memref<1x2x16x4xf32, #tpu.memory_space<vmem>>, %arg5: memref<4x128xf32, #tpu.memory_space<vmem>>, %arg6: memref<1x128xf32, #tpu.memory_space<vmem>>, %arg7: memref<25x128xf32, #tpu.memory_space<vmem>>, %arg8: memref<1x128xf32, #tpu.memory_space<vmem>>, %arg9: memref<1x16x16x128xf32, #tpu.memory_space<vmem>>) attributes {dimension_semantics = [#tpu.dimension_semantics<parallel>, #tpu.dimension_semantics<parallel>], iteration_bounds = array<i64: 2, 1>, scalar_prefetch = 0 : i64, scratch_operands = 0 : i64, tpu.core_type = #tpu.core_type<tc>, window_params = [{transform_indices = @transform_0, window_bounds = array<i64: 1, 2, 16, 4>}, {transform_indices = @transform_1, window_bounds = array<i64: 1, 16, 16, 4>}, {transform_indices = @transform_2, window_bounds = array<i64: 1, 2, 16, 4>}, {pipeline_mode = #tpu.pipeline_mode<synchronous>, transform_indices = @transform_3, window_bounds = array<i64: 4, 128>}, {pipeline_mode = #tpu.pipeline_mode<synchronous>, transform_indices = @transform_4, window_bounds = array<i64: 1, 128>}, {pipeline_mode = #tpu.pipeline_mode<synchronous>, transform_indices = @transform_5, window_bounds = array<i64: 25, 128>}, {pipeline_mode = #tpu.pipeline_mode<synchronous>, transform_indices = @transform_6, window_bounds = array<i64: 1, 128>}, {transform_indices = @transform_7, window_bounds = array<i64: 1, 16, 16, 128>}]} {
    %c0 = arith.constant 0 : index
    %c0_0 = arith.constant 0 : index
    %c0_1 = arith.constant 0 : index
    %c0_2 = arith.constant 0 : index
    %0 = vector.load %arg2[%c0, %c0_0, %c0_1, %c0_2] : memref<1x2x16x4xf32, #tpu.memory_space<vmem>>, vector<1x2x16x4xf32>
    %1 = vector.shape_cast %0 : vector<1x2x16x4xf32> to vector<2x16x4xf32>
    %c0_3 = arith.constant 0 : index
    %c0_4 = arith.constant 0 : index
    %c0_5 = arith.constant 0 : index
    %c0_6 = arith.constant 0 : index
    %2 = vector.load %arg3[%c0_3, %c0_4, %c0_5, %c0_6] : memref<1x16x16x4xf32, #tpu.memory_space<vmem>>, vector<1x16x16x4xf32>
    %3 = vector.shape_cast %2 : vector<1x16x16x4xf32> to vector<16x16x4xf32>
    %c0_7 = arith.constant 0 : index
    %c0_8 = arith.constant 0 : index
    %c0_9 = arith.constant 0 : index
    %c0_10 = arith.constant 0 : index
    %4 = vector.load %arg4[%c0_7, %c0_8, %c0_9, %c0_10] : memref<1x2x16x4xf32, #tpu.memory_space<vmem>>, vector<1x2x16x4xf32>
    %5 = vector.shape_cast %4 : vector<1x2x16x4xf32> to vector<2x16x4xf32>
    %6 = tpu.concatenate %1, %3, %5 in 0 : vector<2x16x4xf32>, vector<16x16x4xf32>, vector<2x16x4xf32> -> vector<20x16x4xf32>
    %7 = vector.shape_cast %6 : vector<20x16x4xf32> to vector<320x4xf32>
    %c0_11 = arith.constant 0 : index
    %c0_12 = arith.constant 0 : index
    %8 = vector.load %arg5[%c0_11, %c0_12] : memref<4x128xf32, #tpu.memory_space<vmem>>, vector<4x128xf32>
    %cst = arith.constant dense<0.000000e+00> : vector<320x128xf32>
    %9 = tpu.matmul %7, %8, %cst {dimension_numbers = #tpu.dot_dimension_numbers<[1], [0], [0], [1], [0, 0, 1, 1], [], []>} : vector<320x4xf32>, vector<4x128xf32>, vector<320x128xf32> -> vector<320x128xf32>
    %c0_13 = arith.constant 0 : index
    %c0_14 = arith.constant 0 : index
    %10 = vector.load %arg6[%c0_13, %c0_14] : memref<1x128xf32, #tpu.memory_space<vmem>>, vector<1x128xf32>
    %11 = vector.broadcast %10 : vector<1x128xf32> to vector<320x128xf32>
    %12 = arith.addf %9, %11 : vector<320x128xf32>
    %13 = arith.negf %12 : vector<320x128xf32>
    %14 = math.exp %13 : vector<320x128xf32>
    %cst_15 = arith.constant 1.000000e+00 : f32
    %15 = vector.broadcast %cst_15 : f32 to vector<320x128xf32>
    %16 = arith.addf %15, %14 : vector<320x128xf32>
    %17 = arith.divf %15, %16 : vector<320x128xf32>
    %18 = arith.mulf %12, %17 : vector<320x128xf32>
    %19 = vector.shape_cast %18 : vector<320x128xf32> to vector<20x16x128xf32>
    %c16_i32 = arith.constant 16 : i32
    %20 = arith.muli %arg1, %c16_i32 : i32
    %c2_i32 = arith.constant 2 : i32
    %21 = arith.subi %20, %c2_i32 : i32
    %22 = tpu.iota {dimensions = array<i32: 0>} : vector<20x1x1xi32>
    %23 = vector.broadcast %21 : i32 to vector<20x1x1xi32>
    %24 = arith.addi %23, %22 : vector<20x1x1xi32>
    %c0_i32 = arith.constant 0 : i32
    %25 = vector.broadcast %c0_i32 : i32 to vector<20x1x1xi32>
    %26 = arith.cmpi sge, %24, %25 : vector<20x1x1xi32>
    %c16_i32_16 = arith.constant 16 : i32
    %27 = vector.broadcast %c16_i32_16 : i32 to vector<20x1x1xi32>
    %28 = arith.cmpi slt, %24, %27 : vector<20x1x1xi32>
    %29 = arith.andi %26, %28 : vector<20x1x1xi1>
    %cst_17 = arith.constant 0.000000e+00 : f32
    %30 = vector.shape_cast %29 : vector<20x1x1xi1> to vector<20x1x1xi1>
    %31 = vector.broadcast %30 : vector<20x1x1xi1> to vector<20x16x128xi1>
    %32 = vector.broadcast %cst_17 : f32 to vector<20x16x128xf32>
    %33 = arith.select %31, %19, %32 : vector<20x16x128xi1>, vector<20x16x128xf32>
    %cst_18 = arith.constant 0.000000e+00 : f32
    %34 = vector.broadcast %cst_18 : f32 to vector<20x2x128xf32>
    %35 = vector.extract_strided_slice %33 {offsets = [0, 0, 0], sizes = [20, 14, 128], strides = [1, 1, 1]} : vector<20x16x128xf32> to vector<20x14x128xf32>
    %36 = tpu.concatenate %34, %35 in 1 : vector<20x2x128xf32>, vector<20x14x128xf32> -> vector<20x16x128xf32>
    %cst_19 = arith.constant 0.000000e+00 : f32
    %37 = vector.broadcast %cst_19 : f32 to vector<20x1x128xf32>
    %38 = vector.extract_strided_slice %33 {offsets = [0, 0, 0], sizes = [20, 15, 128], strides = [1, 1, 1]} : vector<20x16x128xf32> to vector<20x15x128xf32>
    %39 = tpu.concatenate %37, %38 in 1 : vector<20x1x128xf32>, vector<20x15x128xf32> -> vector<20x16x128xf32>
    %cst_20 = arith.constant 0.000000e+00 : f32
    %40 = vector.broadcast %cst_20 : f32 to vector<20x1x128xf32>
    %41 = vector.extract_strided_slice %33 {offsets = [0, 1, 0], sizes = [20, 15, 128], strides = [1, 1, 1]} : vector<20x16x128xf32> to vector<20x15x128xf32>
    %42 = tpu.concatenate %41, %40 in 1 : vector<20x15x128xf32>, vector<20x1x128xf32> -> vector<20x16x128xf32>
    %cst_21 = arith.constant 0.000000e+00 : f32
    %43 = vector.broadcast %cst_21 : f32 to vector<20x2x128xf32>
    %44 = vector.extract_strided_slice %33 {offsets = [0, 2, 0], sizes = [20, 14, 128], strides = [1, 1, 1]} : vector<20x16x128xf32> to vector<20x14x128xf32>
    %45 = tpu.concatenate %44, %43 in 1 : vector<20x14x128xf32>, vector<20x2x128xf32> -> vector<20x16x128xf32>
    %c0_22 = arith.constant 0 : index
    %c0_23 = arith.constant 0 : index
    %46 = vector.load %arg7[%c0_22, %c0_23] : memref<25x128xf32, #tpu.memory_space<vmem>>, vector<25x128xf32>
    %c0_24 = arith.constant 0 : index
    %c0_25 = arith.constant 0 : index
    %47 = vector.load %arg8[%c0_24, %c0_25] : memref<1x128xf32, #tpu.memory_space<vmem>>, vector<1x128xf32>
    %48 = vector.extract_strided_slice %36 {offsets = [0, 0, 0], sizes = [16, 16, 128], strides = [1, 1, 1]} : vector<20x16x128xf32> to vector<16x16x128xf32>
    %49 = vector.extract_strided_slice %46 {offsets = [0, 0], sizes = [1, 128], strides = [1, 1]} : vector<25x128xf32> to vector<1x128xf32>
    %50 = vector.shape_cast %49 : vector<1x128xf32> to vector<1x1x128xf32>
    %51 = vector.broadcast %50 : vector<1x1x128xf32> to vector<16x16x128xf32>
    %52 = arith.mulf %48, %51 : vector<16x16x128xf32>
    %53 = vector.shape_cast %47 : vector<1x128xf32> to vector<1x1x128xf32>
    %54 = vector.broadcast %53 : vector<1x1x128xf32> to vector<16x16x128xf32>
    %55 = arith.addf %54, %52 : vector<16x16x128xf32>
    %56 = vector.extract_strided_slice %39 {offsets = [0, 0, 0], sizes = [16, 16, 128], strides = [1, 1, 1]} : vector<20x16x128xf32> to vector<16x16x128xf32>
    %57 = vector.extract_strided_slice %46 {offsets = [1, 0], sizes = [1, 128], strides = [1, 1]} : vector<25x128xf32> to vector<1x128xf32>
    %58 = vector.shape_cast %57 : vector<1x128xf32> to vector<1x1x128xf32>
    %59 = vector.broadcast %58 : vector<1x1x128xf32> to vector<16x16x128xf32>
    %60 = arith.mulf %56, %59 : vector<16x16x128xf32>
    %61 = arith.addf %55, %60 : vector<16x16x128xf32>
    %62 = vector.extract_strided_slice %33 {offsets = [0, 0, 0], sizes = [16, 16, 128], strides = [1, 1, 1]} : vector<20x16x128xf32> to vector<16x16x128xf32>
    %63 = vector.extract_strided_slice %46 {offsets = [2, 0], sizes = [1, 128], strides = [1, 1]} : vector<25x128xf32> to vector<1x128xf32>
    %64 = vector.shape_cast %63 : vector<1x128xf32> to vector<1x1x128xf32>
    %65 = vector.broadcast %64 : vector<1x1x128xf32> to vector<16x16x128xf32>
    %66 = arith.mulf %62, %65 : vector<16x16x128xf32>
    %67 = arith.addf %61, %66 : vector<16x16x128xf32>
    %68 = vector.extract_strided_slice %42 {offsets = [0, 0, 0], sizes = [16, 16, 128], strides = [1, 1, 1]} : vector<20x16x128xf32> to vector<16x16x128xf32>
    %69 = vector.extract_strided_slice %46 {offsets = [3, 0], sizes = [1, 128], strides = [1, 1]} : vector<25x128xf32> to vector<1x128xf32>
    %70 = vector.shape_cast %69 : vector<1x128xf32> to vector<1x1x128xf32>
    %71 = vector.broadcast %70 : vector<1x1x128xf32> to vector<16x16x128xf32>
    %72 = arith.mulf %68, %71 : vector<16x16x128xf32>
    %73 = arith.addf %67, %72 : vector<16x16x128xf32>
    %74 = vector.extract_strided_slice %45 {offsets = [0, 0, 0], sizes = [16, 16, 128], strides = [1, 1, 1]} : vector<20x16x128xf32> to vector<16x16x128xf32>
    %75 = vector.extract_strided_slice %46 {offsets = [4, 0], sizes = [1, 128], strides = [1, 1]} : vector<25x128xf32> to vector<1x128xf32>
    %76 = vector.shape_cast %75 : vector<1x128xf32> to vector<1x1x128xf32>
    %77 = vector.broadcast %76 : vector<1x1x128xf32> to vector<16x16x128xf32>
    %78 = arith.mulf %74, %77 : vector<16x16x128xf32>
    %79 = arith.addf %73, %78 : vector<16x16x128xf32>
    %80 = vector.extract_strided_slice %36 {offsets = [1, 0, 0], sizes = [16, 16, 128], strides = [1, 1, 1]} : vector<20x16x128xf32> to vector<16x16x128xf32>
    %81 = vector.extract_strided_slice %46 {offsets = [5, 0], sizes = [1, 128], strides = [1, 1]} : vector<25x128xf32> to vector<1x128xf32>
    %82 = vector.shape_cast %81 : vector<1x128xf32> to vector<1x1x128xf32>
    %83 = vector.broadcast %82 : vector<1x1x128xf32> to vector<16x16x128xf32>
    %84 = arith.mulf %80, %83 : vector<16x16x128xf32>
    %85 = arith.addf %79, %84 : vector<16x16x128xf32>
    %86 = vector.extract_strided_slice %39 {offsets = [1, 0, 0], sizes = [16, 16, 128], strides = [1, 1, 1]} : vector<20x16x128xf32> to vector<16x16x128xf32>
    %87 = vector.extract_strided_slice %46 {offsets = [6, 0], sizes = [1, 128], strides = [1, 1]} : vector<25x128xf32> to vector<1x128xf32>
    %88 = vector.shape_cast %87 : vector<1x128xf32> to vector<1x1x128xf32>
    %89 = vector.broadcast %88 : vector<1x1x128xf32> to vector<16x16x128xf32>
    %90 = arith.mulf %86, %89 : vector<16x16x128xf32>
    %91 = arith.addf %85, %90 : vector<16x16x128xf32>
    %92 = vector.extract_strided_slice %33 {offsets = [1, 0, 0], sizes = [16, 16, 128], strides = [1, 1, 1]} : vector<20x16x128xf32> to vector<16x16x128xf32>
    %93 = vector.extract_strided_slice %46 {offsets = [7, 0], sizes = [1, 128], strides = [1, 1]} : vector<25x128xf32> to vector<1x128xf32>
    %94 = vector.shape_cast %93 : vector<1x128xf32> to vector<1x1x128xf32>
    %95 = vector.broadcast %94 : vector<1x1x128xf32> to vector<16x16x128xf32>
    %96 = arith.mulf %92, %95 : vector<16x16x128xf32>
    %97 = arith.addf %91, %96 : vector<16x16x128xf32>
    %98 = vector.extract_strided_slice %42 {offsets = [1, 0, 0], sizes = [16, 16, 128], strides = [1, 1, 1]} : vector<20x16x128xf32> to vector<16x16x128xf32>
    %99 = vector.extract_strided_slice %46 {offsets = [8, 0], sizes = [1, 128], strides = [1, 1]} : vector<25x128xf32> to vector<1x128xf32>
    %100 = vector.shape_cast %99 : vector<1x128xf32> to vector<1x1x128xf32>
    %101 = vector.broadcast %100 : vector<1x1x128xf32> to vector<16x16x128xf32>
    %102 = arith.mulf %98, %101 : vector<16x16x128xf32>
    %103 = arith.addf %97, %102 : vector<16x16x128xf32>
    %104 = vector.extract_strided_slice %45 {offsets = [1, 0, 0], sizes = [16, 16, 128], strides = [1, 1, 1]} : vector<20x16x128xf32> to vector<16x16x128xf32>
    %105 = vector.extract_strided_slice %46 {offsets = [9, 0], sizes = [1, 128], strides = [1, 1]} : vector<25x128xf32> to vector<1x128xf32>
    %106 = vector.shape_cast %105 : vector<1x128xf32> to vector<1x1x128xf32>
    %107 = vector.broadcast %106 : vector<1x1x128xf32> to vector<16x16x128xf32>
    %108 = arith.mulf %104, %107 : vector<16x16x128xf32>
    %109 = arith.addf %103, %108 : vector<16x16x128xf32>
    %110 = vector.extract_strided_slice %36 {offsets = [2, 0, 0], sizes = [16, 16, 128], strides = [1, 1, 1]} : vector<20x16x128xf32> to vector<16x16x128xf32>
    %111 = vector.extract_strided_slice %46 {offsets = [10, 0], sizes = [1, 128], strides = [1, 1]} : vector<25x128xf32> to vector<1x128xf32>
    %112 = vector.shape_cast %111 : vector<1x128xf32> to vector<1x1x128xf32>
    %113 = vector.broadcast %112 : vector<1x1x128xf32> to vector<16x16x128xf32>
    %114 = arith.mulf %110, %113 : vector<16x16x128xf32>
    %115 = arith.addf %109, %114 : vector<16x16x128xf32>
    %116 = vector.extract_strided_slice %39 {offsets = [2, 0, 0], sizes = [16, 16, 128], strides = [1, 1, 1]} : vector<20x16x128xf32> to vector<16x16x128xf32>
    %117 = vector.extract_strided_slice %46 {offsets = [11, 0], sizes = [1, 128], strides = [1, 1]} : vector<25x128xf32> to vector<1x128xf32>
    %118 = vector.shape_cast %117 : vector<1x128xf32> to vector<1x1x128xf32>
    %119 = vector.broadcast %118 : vector<1x1x128xf32> to vector<16x16x128xf32>
    %120 = arith.mulf %116, %119 : vector<16x16x128xf32>
    %121 = arith.addf %115, %120 : vector<16x16x128xf32>
    %122 = vector.extract_strided_slice %33 {offsets = [2, 0, 0], sizes = [16, 16, 128], strides = [1, 1, 1]} : vector<20x16x128xf32> to vector<16x16x128xf32>
    %123 = vector.extract_strided_slice %46 {offsets = [12, 0], sizes = [1, 128], strides = [1, 1]} : vector<25x128xf32> to vector<1x128xf32>
    %124 = vector.shape_cast %123 : vector<1x128xf32> to vector<1x1x128xf32>
    %125 = vector.broadcast %124 : vector<1x1x128xf32> to vector<16x16x128xf32>
    %126 = arith.mulf %122, %125 : vector<16x16x128xf32>
    %127 = arith.addf %121, %126 : vector<16x16x128xf32>
    %128 = vector.extract_strided_slice %42 {offsets = [2, 0, 0], sizes = [16, 16, 128], strides = [1, 1, 1]} : vector<20x16x128xf32> to vector<16x16x128xf32>
    %129 = vector.extract_strided_slice %46 {offsets = [13, 0], sizes = [1, 128], strides = [1, 1]} : vector<25x128xf32> to vector<1x128xf32>
    %130 = vector.shape_cast %129 : vector<1x128xf32> to vector<1x1x128xf32>
    %131 = vector.broadcast %130 : vector<1x1x128xf32> to vector<16x16x128xf32>
    %132 = arith.mulf %128, %131 : vector<16x16x128xf32>
    %133 = arith.addf %127, %132 : vector<16x16x128xf32>
    %134 = vector.extract_strided_slice %45 {offsets = [2, 0, 0], sizes = [16, 16, 128], strides = [1, 1, 1]} : vector<20x16x128xf32> to vector<16x16x128xf32>
    %135 = vector.extract_strided_slice %46 {offsets = [14, 0], sizes = [1, 128], strides = [1, 1]} : vector<25x128xf32> to vector<1x128xf32>
    %136 = vector.shape_cast %135 : vector<1x128xf32> to vector<1x1x128xf32>
    %137 = vector.broadcast %136 : vector<1x1x128xf32> to vector<16x16x128xf32>
    %138 = arith.mulf %134, %137 : vector<16x16x128xf32>
    %139 = arith.addf %133, %138 : vector<16x16x128xf32>
    %140 = vector.extract_strided_slice %36 {offsets = [3, 0, 0], sizes = [16, 16, 128], strides = [1, 1, 1]} : vector<20x16x128xf32> to vector<16x16x128xf32>
    %141 = vector.extract_strided_slice %46 {offsets = [15, 0], sizes = [1, 128], strides = [1, 1]} : vector<25x128xf32> to vector<1x128xf32>
    %142 = vector.shape_cast %141 : vector<1x128xf32> to vector<1x1x128xf32>
    %143 = vector.broadcast %142 : vector<1x1x128xf32> to vector<16x16x128xf32>
    %144 = arith.mulf %140, %143 : vector<16x16x128xf32>
    %145 = arith.addf %139, %144 : vector<16x16x128xf32>
    %146 = vector.extract_strided_slice %39 {offsets = [3, 0, 0], sizes = [16, 16, 128], strides = [1, 1, 1]} : vector<20x16x128xf32> to vector<16x16x128xf32>
    %147 = vector.extract_strided_slice %46 {offsets = [16, 0], sizes = [1, 128], strides = [1, 1]} : vector<25x128xf32> to vector<1x128xf32>
    %148 = vector.shape_cast %147 : vector<1x128xf32> to vector<1x1x128xf32>
    %149 = vector.broadcast %148 : vector<1x1x128xf32> to vector<16x16x128xf32>
    %150 = arith.mulf %146, %149 : vector<16x16x128xf32>
    %151 = arith.addf %145, %150 : vector<16x16x128xf32>
    %152 = vector.extract_strided_slice %33 {offsets = [3, 0, 0], sizes = [16, 16, 128], strides = [1, 1, 1]} : vector<20x16x128xf32> to vector<16x16x128xf32>
    %153 = vector.extract_strided_slice %46 {offsets = [17, 0], sizes = [1, 128], strides = [1, 1]} : vector<25x128xf32> to vector<1x128xf32>
    %154 = vector.shape_cast %153 : vector<1x128xf32> to vector<1x1x128xf32>
    %155 = vector.broadcast %154 : vector<1x1x128xf32> to vector<16x16x128xf32>
    %156 = arith.mulf %152, %155 : vector<16x16x128xf32>
    %157 = arith.addf %151, %156 : vector<16x16x128xf32>
    %158 = vector.extract_strided_slice %42 {offsets = [3, 0, 0], sizes = [16, 16, 128], strides = [1, 1, 1]} : vector<20x16x128xf32> to vector<16x16x128xf32>
    %159 = vector.extract_strided_slice %46 {offsets = [18, 0], sizes = [1, 128], strides = [1, 1]} : vector<25x128xf32> to vector<1x128xf32>
    %160 = vector.shape_cast %159 : vector<1x128xf32> to vector<1x1x128xf32>
    %161 = vector.broadcast %160 : vector<1x1x128xf32> to vector<16x16x128xf32>
    %162 = arith.mulf %158, %161 : vector<16x16x128xf32>
    %163 = arith.addf %157, %162 : vector<16x16x128xf32>
    %164 = vector.extract_strided_slice %45 {offsets = [3, 0, 0], sizes = [16, 16, 128], strides = [1, 1, 1]} : vector<20x16x128xf32> to vector<16x16x128xf32>
    %165 = vector.extract_strided_slice %46 {offsets = [19, 0], sizes = [1, 128], strides = [1, 1]} : vector<25x128xf32> to vector<1x128xf32>
    %166 = vector.shape_cast %165 : vector<1x128xf32> to vector<1x1x128xf32>
    %167 = vector.broadcast %166 : vector<1x1x128xf32> to vector<16x16x128xf32>
    %168 = arith.mulf %164, %167 : vector<16x16x128xf32>
    %169 = arith.addf %163, %168 : vector<16x16x128xf32>
    %170 = vector.extract_strided_slice %36 {offsets = [4, 0, 0], sizes = [16, 16, 128], strides = [1, 1, 1]} : vector<20x16x128xf32> to vector<16x16x128xf32>
    %171 = vector.extract_strided_slice %46 {offsets = [20, 0], sizes = [1, 128], strides = [1, 1]} : vector<25x128xf32> to vector<1x128xf32>
    %172 = vector.shape_cast %171 : vector<1x128xf32> to vector<1x1x128xf32>
    %173 = vector.broadcast %172 : vector<1x1x128xf32> to vector<16x16x128xf32>
    %174 = arith.mulf %170, %173 : vector<16x16x128xf32>
    %175 = arith.addf %169, %174 : vector<16x16x128xf32>
    %176 = vector.extract_strided_slice %39 {offsets = [4, 0, 0], sizes = [16, 16, 128], strides = [1, 1, 1]} : vector<20x16x128xf32> to vector<16x16x128xf32>
    %177 = vector.extract_strided_slice %46 {offsets = [21, 0], sizes = [1, 128], strides = [1, 1]} : vector<25x128xf32> to vector<1x128xf32>
    %178 = vector.shape_cast %177 : vector<1x128xf32> to vector<1x1x128xf32>
    %179 = vector.broadcast %178 : vector<1x1x128xf32> to vector<16x16x128xf32>
    %180 = arith.mulf %176, %179 : vector<16x16x128xf32>
    %181 = arith.addf %175, %180 : vector<16x16x128xf32>
    %182 = vector.extract_strided_slice %33 {offsets = [4, 0, 0], sizes = [16, 16, 128], strides = [1, 1, 1]} : vector<20x16x128xf32> to vector<16x16x128xf32>
    %183 = vector.extract_strided_slice %46 {offsets = [22, 0], sizes = [1, 128], strides = [1, 1]} : vector<25x128xf32> to vector<1x128xf32>
    %184 = vector.shape_cast %183 : vector<1x128xf32> to vector<1x1x128xf32>
    %185 = vector.broadcast %184 : vector<1x1x128xf32> to vector<16x16x128xf32>
    %186 = arith.mulf %182, %185 : vector<16x16x128xf32>
    %187 = arith.addf %181, %186 : vector<16x16x128xf32>
    %188 = vector.extract_strided_slice %42 {offsets = [4, 0, 0], sizes = [16, 16, 128], strides = [1, 1, 1]} : vector<20x16x128xf32> to vector<16x16x128xf32>
    %189 = vector.extract_strided_slice %46 {offsets = [23, 0], sizes = [1, 128], strides = [1, 1]} : vector<25x128xf32> to vector<1x128xf32>
    %190 = vector.shape_cast %189 : vector<1x128xf32> to vector<1x1x128xf32>
    %191 = vector.broadcast %190 : vector<1x1x128xf32> to vector<16x16x128xf32>
    %192 = arith.mulf %188, %191 : vector<16x16x128xf32>
    %193 = arith.addf %187, %192 : vector<16x16x128xf32>
    %194 = vector.extract_strided_slice %45 {offsets = [4, 0, 0], sizes = [16, 16, 128], strides = [1, 1, 1]} : vector<20x16x128xf32> to vector<16x16x128xf32>
    %195 = vector.extract_strided_slice %46 {offsets = [24, 0], sizes = [1, 128], strides = [1, 1]} : vector<25x128xf32> to vector<1x128xf32>
    %196 = vector.shape_cast %195 : vector<1x128xf32> to vector<1x1x128xf32>
    %197 = vector.broadcast %196 : vector<1x1x128xf32> to vector<16x16x128xf32>
    %198 = arith.mulf %194, %197 : vector<16x16x128xf32>
    %199 = arith.addf %193, %198 : vector<16x16x128xf32>
    %200 = arith.negf %199 : vector<16x16x128xf32>
    %201 = math.exp %200 : vector<16x16x128xf32>
    %cst_26 = arith.constant 1.000000e+00 : f32
    %202 = vector.broadcast %cst_26 : f32 to vector<16x16x128xf32>
    %203 = arith.addf %202, %201 : vector<16x16x128xf32>
    %204 = arith.divf %202, %203 : vector<16x16x128xf32>
    %205 = arith.mulf %199, %204 : vector<16x16x128xf32>
    %206 = vector.extract_strided_slice %33 {offsets = [2, 0, 0], sizes = [16, 16, 128], strides = [1, 1, 1]} : vector<20x16x128xf32> to vector<16x16x128xf32>
    %207 = tpu.iota {dimensions = array<i32: 2>} : vector<1x1x128xi32>
    %c4_i32 = arith.constant 4 : i32
    %208 = vector.broadcast %c4_i32 : i32 to vector<1x1x128xi32>
    %209 = arith.cmpi slt, %207, %208 : vector<1x1x128xi32>
    %210 = vector.shape_cast %209 : vector<1x1x128xi1> to vector<1x1x128xi1>
    %211 = vector.broadcast %210 : vector<1x1x128xi1> to vector<16x16x128xi1>
    %212 = arith.select %211, %206, %205 : vector<16x16x128xi1>, vector<16x16x128xf32>
    %c0_27 = arith.constant 0 : index
    %c0_28 = arith.constant 0 : index
    %c0_29 = arith.constant 0 : index
    %c0_30 = arith.constant 0 : index
    %213 = vector.load %arg9[%c0_27, %c0_28, %c0_29, %c0_30] : memref<1x16x16x128xf32, #tpu.memory_space<vmem>>, vector<1x16x16x128xf32>
    %214 = vector.shape_cast %213 : vector<1x16x16x128xf32> to vector<16x16x128xf32>
    %215 = vector.shape_cast %212 : vector<16x16x128xf32> to vector<1x16x16x128xf32>
    tpu.vector_store %arg9[%c0_27, %c0_28, %c0_29, %c0_30], %215 {strides = array<i32>} : memref<1x16x16x128xf32, #tpu.memory_space<vmem>>, vector<1x16x16x128xf32>,
    return
  }
  func.func @transform_0(%arg0: i32, %arg1: i32) -> (i32, i32, i32, i32) {
    %c8_i32 = arith.constant 8 : i32
    %0 = arith.muli %arg1, %c8_i32 : i32
    %c1_i32 = arith.constant 1 : i32
    %1 = arith.subi %0, %c1_i32 : i32
    %c0_i32 = arith.constant 0 : i32
    %2 = arith.maxsi %1, %c0_i32 : i32
    %c0_i32_0 = arith.constant 0 : i32
    %c0_i32_1 = arith.constant 0 : i32
    %c0_i32_2 = arith.constant 0 : i32
    return %arg0, %2, %c0_i32_0, %c0_i32_1 : i32, i32, i32, i32
  }
  func.func @transform_1(%arg0: i32, %arg1: i32) -> (i32, i32, i32, i32) {
    %c0_i32 = arith.constant 0 : i32
    %c0_i32_0 = arith.constant 0 : i32
    %c0_i32_1 = arith.constant 0 : i32
    return %arg0, %arg1, %c0_i32, %c0_i32_0 : i32, i32, i32, i32
  }
  func.func @transform_2(%arg0: i32, %arg1: i32) -> (i32, i32, i32, i32) {
    %c1_i32 = arith.constant 1 : i32
    %0 = arith.addi %arg1, %c1_i32 : i32
    %c8_i32 = arith.constant 8 : i32
    %1 = arith.muli %0, %c8_i32 : i32
    %c7_i32 = arith.constant 7 : i32
    %2 = arith.minsi %1, %c7_i32 : i32
    %c0_i32 = arith.constant 0 : i32
    %c0_i32_0 = arith.constant 0 : i32
    %c0_i32_1 = arith.constant 0 : i32
    return %arg0, %2, %c0_i32, %c0_i32_0 : i32, i32, i32, i32
  }
  func.func @transform_3(%arg0: i32, %arg1: i32) -> (i32, i32) {
    %c0_i32 = arith.constant 0 : i32
    %c0_i32_0 = arith.constant 0 : i32
    %c0_i32_1 = arith.constant 0 : i32
    return %c0_i32, %c0_i32_0 : i32, i32
  }
  func.func @transform_4(%arg0: i32, %arg1: i32) -> (i32, i32) {
    %c0_i32 = arith.constant 0 : i32
    %c0_i32_0 = arith.constant 0 : i32
    %c0_i32_1 = arith.constant 0 : i32
    return %c0_i32, %c0_i32_0 : i32, i32
  }
  func.func @transform_5(%arg0: i32, %arg1: i32) -> (i32, i32) {
    %c0_i32 = arith.constant 0 : i32
    %c0_i32_0 = arith.constant 0 : i32
    %c0_i32_1 = arith.constant 0 : i32
    return %c0_i32, %c0_i32_0 : i32, i32
  }
  func.func @transform_6(%arg0: i32, %arg1: i32) -> (i32, i32) {
    %c0_i32 = arith.constant 0 : i32
    %c0_i32_0 = arith.constant 0 : i32
    %c0_i32_1 = arith.constant 0 : i32
    return %c0_i32, %c0_i32_0 : i32, i32
  }
  func.func @transform_7(%arg0: i32, %arg1: i32) -> (i32, i32, i32, i32) {
    %c0_i32 = arith.constant 0 : i32
    %c0_i32_0 = arith.constant 0 : i32
    %c0_i32_1 = arith.constant 0 : i32
    return %arg0, %arg1, %c0_i32, %c0_i32_0 : i32, i32, i32, i32
  }
}

</mosaic_0001>

<bundles_post_ra>
// kernel: tpu_custom_call.1
= control target key start
LH: loop header
LB: loop body
LE: loop exit
PB: predicated region body
PF: predicated region fallthrough
CT: control target
= control target key end

     0   :  { %12 = vsyncpa [#allocation3], 0  ;;  %s8881_s0 = inlined_call_operand.vmem [shape: f32[2,16,16,4], index: 0, kind: input, shape index: {}]   ;;  %s8882_s1 = inlined_call_operand.vmem [shape: f32[2,16,16,4], index: 1, kind: input, shape index: {}]   ;;  %s8883_s2 = inlined_call_operand.vmem [shape: f32[2,16,16,4], index: 2, kind: input, shape index: {}]   ;;  %s8884_s3 = inlined_call_operand.vmem [shape: f32[4,128], index: 3, kind: input, shape index: {}]   ;;  %s8885_s4 = inlined_call_operand.vmem [shape: f32[1,128], index: 4, kind: input, shape index: {}]   ;;  %s8886_s5 = inlined_call_operand.vmem [shape: f32[25,128], index: 5, kind: input, shape index: {}]   ;;  %s8887_s6 = inlined_call_operand.vmem [shape: f32[1,128], index: 6, kind: input, shape index: {}]   ;;  %s8888_s7 = inlined_call_operand.hbm [shape: f32[2,16,16,128], index: 7, kind: output, shape index: {}]  }
   0x1   :  { %14 = vsyncpa [#allocation3 + $0x1], 0  ;;  %s4686_s24 = smov 0   ;;  %s4688_s25 = smov 0  }
   0x2   :  { %s4690_s26 = smov 0   ;;  %s4692_s27 = smov 0  }
   0x3   :  { %s4694_s28 = smov 0   ;;  %s4696_s29 = smov 0  }
   0x4 LB: > { %s3994_s30 = sadd.s32 4294967295, %s4640_s29   ;;  %s3995_s8 = sadd.s32 4294967294, %s4640_s29   ;;  %s4640_s29 = sphi %s4696_s29, %s20_s29   ;;  %s4636_s28 = sphi %s4694_s28, %s10092_s28   ;;  %s4632_s27 = sphi %s4692_s27, %s10091_s27   ;;  %s4628_s26 = sphi %s4690_s26, %s10090_s26   ;;  %s4624_s25 = sphi %s4688_s25, %s10089_s25   ;;  %s4620_s24 = sphi %s4686_s24, %s10088_s24  }
   0x5   : > { %s32_s9 = sadd.s32 1, %s4636_s28  ;;  %s225_s10 = sadd.s32 1, %s4628_s26 }
   0x6   : > { %p34_p0 = scmp.ge.s32.totalorder %s32_s9, 2  ;;  %p235_p1 = scmp.ne.s32.totalorder %s4628_s26, %s4624_s25 }
   0x7   : > { %p236_p2 = scmp.eq.s32.totalorder %s3994_s30, 1  ;;  %p241_p3 = scmp.ne.s32.totalorder %s4624_s25, %s4620_s24 }
   0x8   : > { %s10094_s9 = smov (%p34_p0, %s32_s9), 0  ;;  %p242_p5 = scmp.eq.s32.totalorder %s3995_s8, 1 }
   0x9   : > { %p4726_p4 = por %p236_p2, %p235_p1  ;;  %s220_s12 = ssub.s32 %s4636_s28, %s10094_s9 }
   0xa   : > { %p3998_p6 = scmp.ge.s32.totalorder %s4640_s29, 1  ;;  %p223_p7 = scmp.eq.s32.totalorder %s220_s12, 0 }
   0xb   : > { %p4733_p8 = por %p242_p5, %p241_p3  ;;  %p330_p9 = scmp.lt.s32.totalorder %s4640_s29, 3 }
   0xc   : > { %s4739_s14 = scalar_select %p223_p7, %s4628_s26, %s225_s10  }
   0xd   : > { %p331_p10 = pnand %p3998_p6, %p330_p9 }
   0xf   : > { %334 = sbr.rel (%p331_p10) target bundleno = 870 (0x366), region = 48 }
  0x16   : > { %v485_v0 = vld [vmem:[%s8884_s3] sm:$0xf]  ;;  %vm614_vm0 = vcmask 1043456   ;;  %p400_p11 = scmp.lt.s32.totalorder %s4632_s27, 1  ;;  %vm493_vm1 = vcmask 31744   ;;  %v8889_v41 = vlaneseq  ;;  %v4642_v51 = vmov 0.0  }
  0x17   : > { %4174 = vmatprep.subr.msk.mxu0 %vm614_vm0, %v485_v0  ;;  %4236 = vmatprep.subr.msk.mxu1 %vm614_vm0, %v485_v0  ;;  %v4840_v43 = vld [vmem:[%s8885_s4] ss:$0 sm:$0xff]  ;;  %v4853_v52 = vrot.slane %v4642_v51, 6  ;;  %vm1365_vm2 = vcmask 1041408   ;;  %v4870_v62 = vrot.slane %v4642_v51, 7  ;;  %vm1486_vm3 = vcmask 1040384  }
  0x18   : > { %4175 = vmatpush3.msk.msra.mxu0 %vm614_vm0, %v485_v0  ;;  %4237 = vmatpush3.msk.msra.mxu1 %vm614_vm0, %v485_v0  ;;  %s401_s17 = scalar_select %p400_p11, %s4632_s27, 1  ;;  %v4835_v42 = vshrl.u32 %v8889_v41, 7  ;;  %9145 = vst [vmem:[#allocation5_spill] sm:$0xff] %v4840_v43  ;;  %v4848_v49 = vld [vmem:[%s8886_s5] sm:$0xff]  ;;  %vm1607_vm4 = vcmask 1046528   ;;  %vm1728_vm5 = vcmask 1045504  }
  0x19   : > { %9146 = vst [vmem:[#allocation6_spill] sm:$0xff] %v4853_v52  ;;  %v4868_v61 = vsel %vm1365_vm2, 0.0, %v4853_v52  ;;  %9149 = vst [vmem:[#allocation9_spill] sm:$0xff] %v4870_v62  ;;  %s4131_s12 = sshll.u32 %s4632_s27, 12  ;;  %s4643_s20 = smov [#allocation2]  }
  0x1a   : > { %s4746_s18 = sshll.u32 %s401_s17, 8  ;;  %v4843_v46 = vsub.s32 0, %v4835_v42  ;;  %v4856_v55 = vsub.s32 1, %v4835_v42  ;;  %9148 = vst [vmem:[#allocation8_spill] sm:$0xff] %v4868_v61  ;;  %s8820_s17 = scalar_lea.hbm %s8888_s7, %s4131_s12 }
  0x1b   : > { %s408_s21 = scalar_lea.vmem %s8881_s0, %s4746_s18  ;;  %s4756_s30 = scalar_lea.vmem %s8882_s1, %s4746_s18 }
  0x1c   : > { %v445_v1 = vld [vmem:[%s408_s21] sm:$0xff]  ;;  %v446_v3 = vld [vmem:[%s408_s21 + $0x8] sm:$0xff]  ;;  %v447_v5 = vld [vmem:[%s408_s21 + $0x10] sm:$0xff]  ;;  %s4130_s8 = sadd.s32 224, %s4746_s18  ;;  %v4860_v56 = vrot.slane %v4848_v49, %v4843_v46 }
  0x1d   : > { %v465_v2 = vld [vmem:[%s4756_s30 + $0x80] sm:$0xff]  ;;  %4176 = vmatprep.mubr.msk.f32.mxu0 %vm493_vm1, %v445_v1  ;;  %v466_v4 = vld [vmem:[%s4756_s30 + $0x88] sm:$0xff]  ;;  %v467_v6 = vld [vmem:[%s4756_s30 + $0x90] sm:$0xff]  ;;  %s438_s15 = scalar_lea.vmem %s8883_s2, %s4130_s8  ;;  %v4873_v1 = vsub.s32 2, %v4835_v42 }
  0x1e   : > { %4206 = vmatprep.mubr.msk.f32.mxu1 %vm493_vm1, %v465_v2  ;;  %4177 = vmatmul.mubr.msk.f32.vlgmr.msra.gmra.mrb[0].mxu0 %vm493_vm1, %v446_v3  ;;  %v448_v7 = vld [vmem:[%s408_s21 + $0x18] sm:$0xff]  ;;  %v449_v9 = vld [vmem:[%s4756_s30] sm:$0xff]  ;;  %v450_v11 = vld [vmem:[%s4756_s30 + $0x8] sm:$0xff]  ;;  %9147 = vst [vmem:[#allocation7_spill] sm:$0xff] %v4860_v56  ;;  %v4877_v2 = vrot.slane %v4848_v49, %v4856_v55  ;;  %s392_s21 = sand.u32 1, %s4624_s25  }
  0x1f   : > { %4207 = vmatmul.mubr.msk.f32.vlgmr.msra.gmra.mrb[0].mxu1 %vm493_vm1, %v466_v4  ;;  %4179 = vmatprep.mubr.msk.f32.mxu0 %vm493_vm1, %v447_v5  ;;  %v468_v8 = vld [vmem:[%s4756_s30 + $0x98] sm:$0xff]  ;;  %v469_v10 = vld [vmem:[%s4756_s30 + $0xa0] sm:$0xff]  ;;  %v470_v12 = vld [vmem:[%s4756_s30 + $0xa8] sm:$0xff]  ;;  %v1858_v4 = vmul.f32 %v4860_v56, %v4868_v61  ;;  %s6658_s22 = sshll.u32 %s392_s21, 8  ;;  %s8835_s18 = scalar_lea.sflag [#allocation3], %s392_s21 }
  0x20   : > { %4209 = vmatprep.mubr.msk.f32.mxu1 %vm493_vm1, %v467_v6  ;;  %v451_v13 = vld [vmem:[%s4756_s30 + $0x10] sm:$0xff]  ;;  %v452_v15 = vld [vmem:[%s4756_s30 + $0x18] sm:$0xff]  ;;  %v453_v17 = vld [vmem:[%s4756_s30 + $0x20] sm:$0xff]  ;;  %9150 = vst [vmem:[#allocation10_spill] sm:$0xff] %v4877_v2  ;;  %s6728_s23 = scalar_lea.vmem [#allocation2], %s6658_s22  ;;  %s4566_s22 = sshll.u32 %s4643_s20, 4  ;;  %s4567_s22 = int_to_ptr.vmem [resolvable:$false] %s4566_s22 }
  0x21   : > { %v471_v14 = vld [vmem:[%s4756_s30 + $0xb0] sm:$0xff]  ;;  %v472_v16 = vld [vmem:[%s4756_s30 + $0xb8] sm:$0xff]  ;;  %v473_v18 = vld [vmem:[%s4756_s30 + $0xc0] sm:$0xff] }
  0x22   : > { %4180 = vmatmul.mubr.msk.f32.gmra.mrb[2].mxu0 %vm493_vm1, %v448_v7  ;;  %v454_v19 = vld [vmem:[%s4756_s30 + $0x28] sm:$0xff]  ;;  %v455_v21 = vld [vmem:[%s4756_s30 + $0x30] sm:$0xff]  ;;  %v456_v23 = vld [vmem:[%s4756_s30 + $0x38] sm:$0xff] }
  0x23   : > { %4210 = vmatmul.mubr.msk.f32.gmra.mrb[2].mxu1 %vm493_vm1, %v468_v8  ;;  %4182 = vmatprep.mubr.msk.f32.mxu0 %vm493_vm1, %v449_v9  ;;  %v474_v20 = vld [vmem:[%s4756_s30 + $0xc8] sm:$0xff]  ;;  %v475_v22 = vld [vmem:[%s4756_s30 + $0xd0] sm:$0xff]  ;;  %v476_v24 = vld [vmem:[%s4756_s30 + $0xd8] sm:$0xff]  ;;  %v4889_v8 = vsel %vm1486_vm3, 0.0, %v4870_v62  ;;  %v1859_v9 = vmul.f32 %v4860_v56, %v4853_v52 }
  0x24   : > { %4212 = vmatprep.mubr.msk.f32.mxu1 %vm493_vm1, %v469_v10  ;;  %v457_v25 = vld [vmem:[%s4756_s30 + $0x40] sm:$0xff]  ;;  %v458_v27 = vld [vmem:[%s4756_s30 + $0x48] sm:$0xff]  ;;  %v459_v29 = vld [vmem:[%s4756_s30 + $0x50] sm:$0xff]  ;;  %9151 = vst [vmem:[#allocation11_spill] sm:$0xff] %v4889_v8 }
  0x25   : > { %v477_v26 = vld [vmem:[%s4756_s30 + $0xe0] sm:$0xff]  ;;  %v478_v28 = vld [vmem:[%s4756_s30 + $0xe8] sm:$0xff]  ;;  %v479_v30 = vld [vmem:[%s4756_s30 + $0xf0] sm:$0xff] }
  0x26   : > { %4183 = vmatmul.mubr.msk.f32.gmra.mrb[4].mxu0 %vm493_vm1, %v450_v11  ;;  %v460_v31 = vld [vmem:[%s4756_s30 + $0x58] sm:$0xff]  ;;  %v461_v33 = vld [vmem:[%s4756_s30 + $0x60] sm:$0xff]  ;;  %v462_v35 = vld [vmem:[%s4756_s30 + $0x68] sm:$0xff] }
  0x27   : > { %4213 = vmatmul.mubr.msk.f32.gmra.mrb[4].mxu1 %vm493_vm1, %v470_v12  ;;  %4185 = vmatprep.mubr.msk.f32.mxu0 %vm493_vm1, %v451_v13  ;;  %v480_v32 = vld [vmem:[%s4756_s30 + $0xf8] sm:$0xff]  ;;  %v481_v34 = vld [vmem:[%s438_s15] sm:$0xff]  ;;  %v482_v36 = vld [vmem:[%s438_s15 + $0x8] sm:$0xff]  ;;  %v4897_v12 = vrot.slane %v4848_v49, %v4873_v1  ;;  %v4900_v13 = vsub.s32 3, %v4835_v42 }
  0x28   : > { %4215 = vmatprep.mubr.msk.f32.mxu1 %vm493_vm1, %v471_v14  ;;  %v463_v37 = vld [vmem:[%s4756_s30 + $0x70] sm:$0xff]  ;;  %v464_v39 = vld [vmem:[%s4756_s30 + $0x78] sm:$0xff]  ;;  %v4885_v7 = vld [vmem:[%s8887_s6] ss:$0 sm:$0xff]  ;;  %s4568_s30 = scalar_lea.vmem %s4567_s22, 8192 }
  0x29   : > { %v483_v38 = vld [vmem:[%s438_s15 + $0x10] sm:$0xff]  ;;  %v484_v40 = vld [vmem:[%s438_s15 + $0x18] sm:$0xff]  ;;  %9152 = vst [vmem:[#allocation12_spill] sm:$0xff] %v4897_v12  ;;  %v1896_v14 = vadd.f32 %v4885_v7, %v1858_v4  ;;  %s3870_s15 = sshll.u32 %s6728_s23, 4  ;;  %s8822_s15 = int_to_ptr.vmem [resolvable:$true] %s3870_s15 }
  0x2a   : > { %4186 = vmatmul.mubr.msk.f32.gmra.mrb[6].mxu0 %vm493_vm1, %v452_v15  ;;  %v1932_v15 = vmul.f32 %v4877_v2, %v4889_v8  ;;  %s4562_s19 = scalar_lea.vmem %s8822_s15, 4096  ;;  %p4569_p1 = scmp.lt.s32.totalorder %s8822_s15, %s4567_s22 }
  0x2b   : > { %4216 = vmatmul.mubr.msk.f32.gmra.mrb[6].mxu1 %vm493_vm1, %v472_v16  ;;  %4188 = vmatprep.mubr.msk.f32.mxu0 %vm493_vm1, %v453_v17  ;;  %p4563_p12 = scmp.ne.s32.totalorder %s8822_s15, %s4562_s19  ;;  %p4570_p2 = scmp.lt.s32.totalorder %s4568_s30, %s4562_s19 }
  0x2c   : > { %4218 = vmatprep.mubr.msk.f32.mxu1 %vm493_vm1, %v473_v18  ;;  %v1897_v18 = vadd.f32 %v4885_v7, %v1859_v9 }
  0x2d   : > { %p4564_p13 = pnand %p4563_p12, %p4726_p4  ;;  %p4571_p3 = por %p4570_p2, %p4569_p1 }
  0x2e   : > { %4189 = vmatmul.mubr.msk.f32.gmra.mrb[8].mxu0 %vm493_vm1, %v454_v19  ;;  %v1933_v19 = vmul.f32 %v4877_v2, %v4870_v62 }
  0x2f   : > { %4219 = vmatmul.mubr.msk.f32.gmra.mrb[8].mxu1 %vm493_vm1, %v474_v20  ;;  %4191 = vmatprep.mubr.msk.f32.mxu0 %vm493_vm1, %v455_v21  ;;  %v4912_v20 = vrot.slane %v4642_v51, 1  ;;  %p4565_p0 = pneg %p4564_p13 }
  0x30   : > { %4221 = vmatprep.mubr.msk.f32.mxu1 %vm493_vm1, %v475_v22  ;;  %v4918_v22 = vrot.slane %v4848_v49, %v4900_v13 }
  0x31   : > { %9153 = vst [vmem:[#allocation13_spill] sm:$0xff] %v4912_v20  ;;  %p4572_p5 = pnand %p4571_p3, %p4565_p0 }
  0x32   : > { %4192 = vmatmul.mubr.msk.f32.gmra.mrb[10].mxu0 %vm493_vm1, %v456_v23  ;;  %9154 = vst [vmem:[#allocation14_spill] sm:$0xff] %v4918_v22  ;;  %v4921_v23 = vsub.s32 4, %v4835_v42 }
  0x33   : > { %4222 = vmatmul.mubr.msk.f32.gmra.mrb[10].mxu1 %vm493_vm1, %v476_v24  ;;  %4194 = vmatprep.mubr.msk.f32.mxu0 %vm493_vm1, %v457_v25  ;;  %v1964_v24 = vadd.f32 %v1932_v15, %v1896_v14  ;;  %v2000_v25 = vmul.f32 0.0, %v4897_v12 }
  0x34   : > { %4224 = vmatprep.mubr.msk.f32.mxu1 %vm493_vm1, %v477_v26 }
  0x36   : > { %4195 = vmatmul.mubr.msk.f32.gmra.mrb[12].mxu0 %vm493_vm1, %v458_v27  ;;  %v1965_v27 = vadd.f32 %v1933_v19, %v1897_v18 }
  0x37   : > { %4225 = vmatmul.mubr.msk.f32.gmra.mrb[12].mxu1 %vm493_vm1, %v478_v28  ;;  %4197 = vmatprep.mubr.msk.f32.mxu0 %vm493_vm1, %v459_v29  ;;  %v4928_v28 = vsel %vm1607_vm4, %v4912_v20, 0.0  ;;  %v4930_v29 = vrot.slane %v4642_v51, 2 }
  0x38   : > { %4227 = vmatprep.mubr.msk.f32.mxu1 %vm493_vm1, %v479_v30  ;;  %9155 = vst [vmem:[#allocation15_spill] sm:$0xff] %v4928_v28 }
  0x39   : > { %9156 = vst [vmem:[#allocation16_spill] sm:$0xff] %v4930_v29 }
  0x3a   : > { %4198 = vmatmul.mubr.msk.f32.gmra.mrb[14].mxu0 %vm493_vm1, %v460_v31  ;;  %v4934_v31 = vrot.slane %v4848_v49, %v4921_v23 }
  0x3b   : > { %4228 = vmatmul.mubr.msk.f32.gmra.mrb[14].mxu1 %vm493_vm1, %v480_v32  ;;  %4200 = vmatprep.mubr.msk.f32.mxu0 %vm493_vm1, %v461_v33  ;;  %v4937_v32 = vsub.s32 5, %v4835_v42  ;;  %v2032_v33 = vadd.f32 %v2000_v25, %v1964_v24 }
  0x3c   : > { %4230 = vmatprep.mubr.msk.f32.mxu1 %vm493_vm1, %v481_v34  ;;  %9157 = vst [vmem:[#allocation17_spill] sm:$0xff] %v4934_v31  ;;  %v2068_v34 = vmul.f32 %v4918_v22, %v4912_v20 }
  0x3e   : > { %4201 = vmatmul.mubr.msk.f32.gmra.mrb[16].mxu0 %vm493_vm1, %v462_v35 }
  0x3f   : > { %4231 = vmatmul.mubr.msk.f32.gmra.mrb[16].mxu1 %vm493_vm1, %v482_v36  ;;  %4203 = vmatprep.mubr.msk.f32.mxu0 %vm493_vm1, %v463_v37  ;;  %v2033_v36 = vadd.f32 %v2000_v25, %v1965_v27  ;;  %v2069_v37 = vmul.f32 %v4918_v22, %v4928_v28  ;;  %v2338_v25 = vsub.s32 7, %v4835_v42 }
  0x40   : > { %4233 = vmatprep.mubr.msk.f32.mxu1 %vm493_vm1, %v483_v38 }
  0x42   : > { %4204 = vmatmul.mubr.msk.f32.gmra.mrb[18].mxu0 %vm493_vm1, %v464_v39  ;;  %v4948_v39 = vsel %vm1728_vm5, %v4930_v29, 0.0 }
  0x43   : > { %4234 = vmatmul.mubr.msk.f32.gmra.mrb[18].mxu1 %vm493_vm1, %v484_v40 }
  0xf1   : > { %v4178_v44 = vpop.f32.mrb[0].mxu0 }
  0xf2   : > { %v4208_v45 = vpop.f32.mrb[0].mxu1  ;;  %v684_v47 = vpop.f32.mrb[1].mxu0 }
  0xf3   : > { %v784_v48 = vpop.f32.mrb[1].mxu1  ;;  %v4863_v59 = vadd.f32 %v4208_v45, %v4840_v43  ;;  %v4955_v45 = vrot.slane %v4848_v49, %v4937_v32  ;;  %v2100_v47 = vadd.f32 %v2068_v34, %v2032_v33 }
  0xf4   : > { %v4851_v50 = vadd.f32 %v4840_v43, %v784_v48  ;;  %v2136_v48 = vmul.f32 %v4934_v31, %v4930_v29 }
  0xf5   : > { %v4181_v53 = vpop.f32.mrb[2].mxu0  ;;  %v4069_v6 = vmul.f32 -1.442695, %v4863_v59  ;;  %9158 = vst [vmem:[#allocation18_spill] sm:$0xff] %v4955_v45  ;;  %v2204_v18 = vmul.f32 %v4955_v45, %v4868_v61 }
  0xf6   : > { %v4211_v54 = vpop.f32.mrb[2].mxu1  ;;  %v694_v57 = vpop.f32.mrb[3].mxu0  ;;  %v4068_v60 = vmul.f32 -1.442695, %v4851_v50  ;;  %v2101_v53 = vadd.f32 %v2069_v37, %v2033_v36  ;;  %v4976_v15 = vadd.f32 %v2136_v48, %v2100_v47 }
  0xf7   : > { %v794_v58 = vpop.f32.mrb[3].mxu1  ;;  %v4942_v35 = vadd.f32 %v4211_v54, %v4840_v43  ;;  %v2137_v54 = vmul.f32 %v4934_v31, %v4948_v39 }
  0xf8   : > { %4296 = vpow2.f32 %v4068_v60  ;;  %v4951_v44 = vadd.f32 %v4840_v43, %v794_v58  ;;  %v2270_v60 = vsub.s32 6, %v4835_v42  ;;  %v2236_v33 = vadd.f32 %v2204_v18, %v4976_v15 }
  0xf9   : > { %v4184_v63 = vpop.f32.mrb[4].mxu0  ;;  %4298 = vpow2.f32 %v4069_v6  ;;  %v4071_v51 = vmul.f32 -1.442695, %v4942_v35  ;;  %v4980_v19 = vadd.f32 %v2137_v54, %v2101_v53 }
  0xfa   : > { %v4214_v0 = vpop.f32.mrb[4].mxu1  ;;  %v704_v3 = vpop.f32.mrb[5].mxu0  ;;  %v4964_v58 = vadd.f32 %v4184_v63, %v4840_v43  ;;  %v4070_v4 = vmul.f32 -1.442695, %v4951_v44  ;;  %v4971_v9 = vrot.slane %v4848_v49, %v2270_v60  ;;  %v2205_v63 = vmul.f32 %v4955_v45, %v4853_v52 }
  0xfb   : > { %v804_v5 = vpop.f32.mrb[5].mxu1  ;;  %v4968_v6 = vadd.f32 %v4214_v0, %v4840_v43  ;;  %v4974_v14 = vadd.f32 %v4840_v43, %v704_v3  ;;  %9160 = vst [vmem:[#allocation20_spill] sm:$0xff] %v4980_v19 }
  0xfc   : > { %9159 = vst [vmem:[#allocation19_spill] sm:$0xff] %v4971_v9  ;;  %v4985_v0 = vadd.f32 %v4840_v43, %v804_v5  ;;  %v4053_v24 = vmul.f32 -1.442695, %v4964_v58  ;;  %v2272_v34 = vmul.f32 %v4971_v9, %v4889_v8  ;;  %v1850_v5 = vld [vmem:[%s8886_s5 + $0x8] sm:$0xff]  ;;  %v2237_v36 = vadd.f32 %v2205_v63, %v4980_v19 }
  0xfd   : > { %v4187_v10 = vpop.f32.mrb[6].mxu0  ;;  %v4073_v27 = vmul.f32 -1.442695, %v4968_v6  ;;  %v5012_v48 = vrot.slane %v1850_v5, %v4921_v23 }
  0xfe   : > { %v4893_v11 = vpop.f32.mrb[6].mxu1  ;;  %v4905_v16 = vpop.f32.mrb[7].mxu0  ;;  %v4989_v3 = vadd.f32 %v4187_v10, %v4840_v43  ;;  %v2273_v10 = vmul.f32 %v4971_v9, %v4870_v62  ;;  %v4072_v42 = vmul.f32 -1.442695, %v4985_v0 }
  0xff   : > { %v4907_v17 = vpop.f32.mrb[7].mxu1  ;;  %9163 = vst [vmem:[#allocation23_spill] sm:$0xff] %v5012_v48  ;;  %v5026_v18 = vadd.f32 %v4840_v43, %v4905_v16 }
 0x100   : > { %9161 = vst [vmem:[#allocation21_spill] sm:$0xff] %v4989_v3  ;;  %v4055_v37 = vmul.f32 -1.442695, %v4989_v3  ;;  %v2305_v53 = vadd.f32 %v2273_v10, %v2237_v36  ;;  %v5042_v36 = vrot.slane %v1850_v5, %v2270_v60 }
 0x101   : > { %v4914_v21 = vpop.f32.mrb[8].mxu0  ;;  %9167 = vst [vmem:[#allocation27_spill] sm:$0xff] %v5026_v18  ;;  %v4054_v8 = vmul.f32 -1.442695, %v5026_v18 }
 0x102   : > { %v4924_v26 = vpop.f32.mrb[8].mxu1  ;;  %v4297_v30 = vpop.eup %4296  ;;  %9173 = vst [vmem:[#allocation33_spill] sm:$0xff] %v5042_v36  ;;  %v5064_v52 = vadd.f32 %v4914_v21, %v4840_v43 }
 0x103   : > { %v1023_v38 = vadd.f32 1.0, %v4297_v30  ;;  %v4299_v40 = vpop.eup %4298  ;;  %v4052_v30 = vmul.f32 -1.442695, %v4974_v14  ;;  %v5028_v63 = vpop.f32.mrb[9].mxu0 }
 0x104   : > { %v1024_v57 = vadd.f32 1.0, %v4299_v40  ;;  %v5009_v40 = vrot.slane %v4848_v49, %v2338_v25  ;;  %9168 = vst [vmem:[#allocation28_spill] sm:$0xff] %v5028_v63  ;;  %9178 = vst [vmem:[#allocation38_spill] sm:$0xff] %v5064_v52 }
 0x105   : > { %4300 = vrcp.f32 %v1023_v38  ;;  %v1851_v38 = vld [vmem:[%s8886_s5 + $0x10] sm:$0xff] }
 0x106   : > { %4302 = vpow2.f32 %v4071_v51  ;;  %9162 = vst [vmem:[#allocation22_spill] sm:$0xff] %v5009_v40  ;;  %v2304_v51 = vadd.f32 %v2272_v34, %v2236_v33  ;;  %v2340_v54 = vmul.f32 0.0, %v5009_v40  ;;  %v5022_v49 = vrot.slane %v1851_v38, %v2270_v60 }
 0x107   : > { %4304 = vrcp.f32 %v1024_v57  ;;  %v5017_v57 = vadd.f32 %v4893_v11, %v4840_v43  ;;  %v5037_v11 = vrot.slane %v1850_v5, %v4937_v32  ;;  %v5045_v16 = vrot.slane %v1851_v38, %v4873_v1 }
 0x108   : > { %4306 = vpow2.f32 %v4070_v4  ;;  %v5020_v4 = vrot.slane %v1851_v38, %v4856_v55  ;;  %9166 = vst [vmem:[#allocation26_spill] sm:$0xff] %v5022_v49  ;;  %v5048_v10 = vrot.slane %v1851_v38, %v4900_v13  ;;  %v2373_v41 = vadd.f32 %v2340_v54, %v2305_v53 }
 0x109   : > { %4308 = vpow2.f32 %v4053_v24  ;;  %9164 = vst [vmem:[#allocation24_spill] sm:$0xff] %v5017_v57  ;;  %9171 = vst [vmem:[#allocation31_spill] sm:$0xff] %v5037_v11  ;;  %v4075_v62 = vmul.f32 -1.442695, %v5017_v57  ;;  %v5076_v57 = vrot.slane %v1850_v5, %v2338_v25  ;;  %v5079_v18 = vrot.slane %v1851_v38, %v4843_v46 }
 0x10a   : > { %4310 = vpow2.f32 %v4073_v27  ;;  %9165 = vst [vmem:[#allocation25_spill] sm:$0xff] %v5020_v4  ;;  %v5031_v27 = vrot.slane %v1850_v5, %v4843_v46  ;;  %9174 = vst [vmem:[#allocation34_spill] sm:$0xff] %v5045_v16 }
 0x10b   : > { %4312 = vpow2.f32 %v4052_v30  ;;  %v5034_v30 = vrot.slane %v1850_v5, %v4856_v55  ;;  %9175 = vst [vmem:[#allocation35_spill] sm:$0xff] %v5048_v10  ;;  %v2372_v55 = vadd.f32 %v2340_v54, %v2304_v51  ;;  %9182 = vst [vmem:[#allocation42_spill] sm:$0xff] %v5076_v57 }
 0x10c   : > { %4314 = vpow2.f32 %v4072_v42  ;;  %9169 = vst [vmem:[#allocation29_spill] sm:$0xff] %v5031_v27  ;;  %v5050_v42 = vrot.slane %v1851_v38, %v2338_v25  ;;  %v2408_v60 = vmul.f32 %v5031_v27, %v4912_v20  ;;  %v5074_v20 = vrot.slane %v1850_v5, %v4900_v13  ;;  %9183 = vst [vmem:[#allocation43_spill] sm:$0xff] %v5079_v18 }
 0x10d   : > { %4316 = vpow2.f32 %v4055_v37  ;;  %9170 = vst [vmem:[#allocation30_spill] sm:$0xff] %v5034_v30  ;;  %v4057_v25 = vmul.f32 -1.442695, %v5064_v52 }
 0x10e   : > { %9176 = vst [vmem:[#allocation36_spill] sm:$0xff] %v5050_v42  ;;  %9181 = vst [vmem:[#allocation41_spill] sm:$0xff] %v5074_v20  ;;  %4318 = vpow2.f32 %v4075_v62  ;;  %v2440_v3 = vadd.f32 %v2408_v60, %v2372_v55  ;;  %v2476_v62 = vmul.f32 %v5034_v30, %v4930_v29 }
 0x10f   : > { %v4301_v47 = vpop.eup %4300  ;;  %4320 = vpow2.f32 %v4054_v8 }
 0x110   : > { %v4303_v24 = vpop.eup %4302  ;;  %v5040_v33 = vmul.f32 %v4301_v47, %v4851_v50  ;;  %v5055_v50 = vadd.f32 %v4840_v43, %v4907_v17  ;;  %v2409_v47 = vmul.f32 %v5031_v27, %v4928_v28  ;;  %v5071_v17 = vrot.slane %v1850_v5, %v4873_v1 }
 0x111   : > { %v4305_v34 = vpop.eup %4304  ;;  %v1026_v54 = vadd.f32 1.0, %v4303_v24 }
 0x112   : > { %9172 = vst [vmem:[#allocation32_spill] sm:$0xff] %v5040_v33  ;;  %v4307_v37 = vpop.eup %4306  ;;  %9177 = vst [vmem:[#allocation37_spill] sm:$0xff] %v5055_v50  ;;  %v5067_v51 = vmul.f32 %v4305_v34, %v4863_v59  ;;  %v1396_v53 = vrot.slane %v5040_v33, 6  ;;  %v5082_v59 = vrot.slane %v1851_v38, %v4921_v23  ;;  %v5085_v34 = vrot.slane %v1851_v38, %v4937_v32 }
 0x113   : > { %9180 = vst [vmem:[#allocation40_spill] sm:$0xff] %v5071_v17  ;;  %v4309_v61 = vpop.eup %4308  ;;  %v1025_v21 = vadd.f32 1.0, %v4307_v37  ;;  %v4074_v1 = vmul.f32 -1.442695, %v5055_v50  ;;  %v2441_v13 = vadd.f32 %v2409_v47, %v2373_v41  ;;  %4322 = vrcp.f32 %v1026_v54 }
 0x114   : > { %9179 = vst [vmem:[#allocation39_spill] sm:$0xff] %v5067_v51  ;;  %v4311_v63 = vpop.eup %4310  ;;  %9184 = vst [vmem:[#allocation44_spill] sm:$0xff] %v5082_v59  ;;  %v1397_v46 = vrot.slane %v5067_v51, 6  ;;  %v5091_v37 = vsel %vm1365_vm2, 0.0, %v1396_v53  ;;  %v1008_v23 = vadd.f32 1.0, %v4309_v61  ;;  %v2477_v41 = vmul.f32 %v5034_v30, %v4948_v39 }
 0x115   : > { %9185 = vst [vmem:[#allocation45_spill] sm:$0xff] %v5085_v34  ;;  %v4313_v24 = vpop.eup %4312  ;;  %4324 = vrcp.f32 %v1025_v21  ;;  %v1028_v32 = vadd.f32 1.0, %v4311_v63  ;;  %v1517_v8 = vrot.slane %v5040_v33, 7  ;;  %v9186_v38 = vlaneseq }
 0x116   : > { %v4315_v5 = vpop.eup %4314  ;;  %v1007_v60 = vadd.f32 1.0, %v4313_v24  ;;  %4326 = vpow2.f32 %v4074_v1  ;;  %v1878_v47 = vmul.f32 %v4860_v56, %v5091_v37  ;;  %v5105_v63 = vadd.f32 %v4924_v26, %v4840_v43 }
 0x117   : > { %v4317_v19 = vpop.eup %4316  ;;  %v5099_v55 = vand.u32 127, %v9186_v38  ;;  %v1027_v61 = vadd.f32 1.0, %v4315_v5  ;;  %4328 = vpow2.f32 %v4057_v25  ;;  %v1639_v54 = vrot.slane %v5067_v51, 1 }
 0x118   : > { %9188 = vst [vmem:[#allocation47_spill] sm:$0xff] %v5105_v63  ;;  %v5109_v21 = vsel %vm1365_vm2, %v1396_v53, %v1397_v46  ;;  %4330 = vrcp.f32 %v1008_v23  ;;  %v1010_v29 = vadd.f32 1.0, %v4317_v19  ;;  %v1760_v38 = vrot.slane %v5067_v51, 2  ;;  %v5127_v19 = vld [vmem:[%s8886_s5 + $0x18] ss:$0 sm:$0xff]  ;;  %v5136_v46 = vpop.eup %4318 }
 0x119   : > { %9187 = vst [vmem:[#allocation46_spill] sm:$0xff] %v5099_v55  ;;  %4332 = vrcp.f32 %v1028_v32  ;;  %v5112_v1 = vadd.f32 %v2476_v62, %v2440_v3  ;;  %v5114_v24 = vadd.f32 %v2477_v41, %v2441_v13  ;;  %v1518_v25 = vrot.slane %v5067_v51, 7  ;;  %9191 = vst [vmem:[#allocation50_spill] sm:$0xff] %v5136_v46  ;;  %v5146_v41 = vpop.eup %4320  ;;  %v5166_v55 = vpop.f32.mrb[9].mxu1 }
 0x11a   : > { %v5118_v5 = vsel %vm1486_vm3, 0.0, %v1517_v8  ;;  %4334 = vrcp.f32 %v1007_v60  ;;  %v5122_v26 = vmul.f32 %v5048_v10, %v4948_v39  ;;  %v1879_v3 = vmul.f32 %v4860_v56, %v5109_v21  ;;  %9194 = vst [vmem:[#allocation53_spill] sm:$0xff] %v5146_v41  ;;  %9197 = vst [vmem:[#allocation56_spill] sm:$0xff] %v5166_v55 }
 0x11b   : > { %v1916_v53 = vadd.f32 %v4885_v7, %v1878_v47  ;;  %v5134_v13 = vmul.f32 %v5050_v42, %v4928_v28  ;;  %4336 = vrcp.f32 %v1027_v61  ;;  %v1718_v23 = vsel %vm1607_vm4, %v1639_v54, 0.0 }
 0x11c   : > { %9189 = vst [vmem:[#allocation48_spill] sm:$0xff] %v5122_v26  ;;  %v5141_v32 = vmul.f32 %v5127_v19, %v4948_v39  ;;  %4338 = vrcp.f32 %v1010_v29  ;;  %v5144_v62 = vmul.f32 -1.442695, %v5105_v63  ;;  %v1839_v60 = vsel %vm1728_vm5, %v1760_v38, 0.0 }
 0x11d   : > { %9190 = vst [vmem:[#allocation49_spill] sm:$0xff] %v5134_v13  ;;  %v1638_v47 = vrot.slane %v5040_v33, 1  ;;  %v1759_v61 = vrot.slane %v5040_v33, 2  ;;  %v1952_v13 = vmul.f32 %v4877_v2, %v5118_v5  ;;  %v4323_v26 = vpop.eup %4322  ;;  %v2021_v39 = vmul.f32 %v4897_v12, %v5067_v51 }
 0x11e   : > { %9192 = vst [vmem:[#allocation51_spill] sm:$0xff] %v5141_v32  ;;  %9193 = vst [vmem:[#allocation52_spill] sm:$0xff] %v5144_v62  ;;  %v5157_v29 = vmul.f32 %v5009_v40, %v5067_v51  ;;  %v5161_v32 = vmul.f32 %v5012_v48, %v5067_v51  ;;  %v5164_v28 = vsel %vm1486_vm3, %v1517_v8, %v1518_v25 }
 0x11f   : > { %v4325_v63 = vpop.eup %4324  ;;  %v5170_v52 = vmul.f32 %v5020_v4, %v5067_v51  ;;  %v5174_v50 = vmul.f32 %v5022_v49, %v5067_v51  ;;  %v1984_v62 = vadd.f32 %v1952_v13, %v1916_v53  ;;  %v5181_v8 = vmul.f32 %v4934_v31, %v1839_v60 }
 0x120   : > { %9195 = vst [vmem:[#allocation54_spill] sm:$0xff] %v5157_v29  ;;  %9196 = vst [vmem:[#allocation55_spill] sm:$0xff] %v5161_v32  ;;  %v1917_v29 = vadd.f32 %v4885_v7, %v1879_v3  ;;  %v5177_v43 = vpop.eup %4326  ;;  %v2089_v32 = vmul.f32 %v4918_v22, %v1718_v23  ;;  %v5184_v25 = vmul.f32 %v5031_v27, %v1718_v23 }
 0x121   : > { %9198 = vst [vmem:[#allocation57_spill] sm:$0xff] %v5170_v52  ;;  %9199 = vst [vmem:[#allocation58_spill] sm:$0xff] %v5174_v50  ;;  %v5187_v55 = vmul.f32 %v5034_v30, %v1839_v60  ;;  %v5189_v52 = vpop.eup %4328  ;;  %v1640_v51 = vsel %vm1607_vm4, %v1638_v47, %v1639_v54  ;;  %v1761_v3 = vsel %vm1728_vm5, %v1759_v61, %v1760_v38 }
 0x122   : > { %9200 = vst [vmem:[#allocation59_spill] sm:$0xff] %v5177_v43  ;;  %9201 = vst [vmem:[#allocation60_spill] sm:$0xff] %v5184_v25  ;;  %v1953_v53 = vmul.f32 %v4877_v2, %v5164_v28  ;;  %v2020_v13 = vmul.f32 %v4897_v12, %v5040_v33  ;;  %v4331_v50 = vpop.eup %4330  ;;  %v5198_v43 = vmul.f32 %v5037_v11, %v1718_v23 }
 0x123   : > { %9202 = vst [vmem:[#allocation61_spill] sm:$0xff] %v5187_v55  ;;  %9203 = vst [vmem:[#allocation62_spill] sm:$0xff] %v5189_v52  ;;  %v5201_v25 = vmul.f32 %v5042_v36, %v1839_v60  ;;  %v5204_v55 = vmul.f32 %v5045_v16, %v1718_v23  ;;  %v5207_v54 = vmul.f32 %v5048_v10, %v1839_v60  ;;  %v4333_v38 = vpop.eup %4332 }
 0x124   : > { %9204 = vst [vmem:[#allocation63_spill] sm:$0xff] %v5198_v43  ;;  %v5210_v47 = vmul.f32 %v5050_v42, %v1718_v23  ;;  %v5213_v61 = vmul.f32 %v5127_v19, %v1839_v60  ;;  %v1985_v52 = vadd.f32 %v1953_v53, %v1917_v29  ;;  %v2052_v46 = vadd.f32 %v2020_v13, %v1984_v62  ;;  %v4335_v41 = vpop.eup %4334 }
 0x125   : > { %9205 = vst [vmem:[#allocation64_spill] sm:$0xff] %v5201_v25  ;;  %9206 = vst [vmem:[#allocation65_spill] sm:$0xff] %v5204_v55  ;;  %v2088_v43 = vmul.f32 %v4918_v22, %v1640_v51  ;;  %v2156_v25 = vmul.f32 %v4934_v31, %v1761_v3  ;;  %v5219_v55 = vmul.f32 %v4955_v45, %v5091_v37  ;;  %v5225_v23 = vpop.eup %4336 }
 0x126   : > { %9207 = vst [vmem:[#allocation66_spill] sm:$0xff] %v5207_v54  ;;  %9208 = vst [vmem:[#allocation67_spill] sm:$0xff] %v5210_v47  ;;  %v5223_v54 = vmul.f32 %v4955_v45, %v5109_v21  ;;  %v5229_v60 = vmul.f32 %v4971_v9, %v5118_v5  ;;  %v5233_v62 = vmul.f32 %v4971_v9, %v5164_v28  ;;  %v5242_v13 = vpop.eup %4338 }
 0x127   : > { %9209 = vst [vmem:[#allocation68_spill] sm:$0xff] %v5213_v61  ;;  %9210 = vst [vmem:[#allocation69_spill] sm:$0xff] %v5219_v55  ;;  %v5237_v29 = vmul.f32 %v5009_v40, %v5040_v33  ;;  %v5240_v53 = vmul.f32 %v5031_v27, %v1640_v51  ;;  %v5245_v61 = vmul.f32 %v5034_v30, %v1761_v3 }
 0x128   : > { %9211 = vst [vmem:[#allocation70_spill] sm:$0xff] %v5223_v54  ;;  %9212 = vst [vmem:[#allocation71_spill] sm:$0xff] %v5229_v60  ;;  %v5249_v47 = vmul.f32 %v5071_v17, %v5091_v37  ;;  %v5253_v60 = vmul.f32 %v5071_v17, %v5109_v21  ;;  %v2120_v54 = vadd.f32 %v2088_v43, %v2052_v46 }
 0x129   : > { %9213 = vst [vmem:[#allocation72_spill] sm:$0xff] %v5233_v62  ;;  %9214 = vst [vmem:[#allocation73_spill] sm:$0xff] %v5237_v29  ;;  %v5256_v62 = vmul.f32 %v4323_v26, %v4942_v35  ;;  %v2053_v29 = vadd.f32 %v2021_v39, %v1985_v52  ;;  %v5271_v55 = vmul.f32 %v5037_v11, %v1640_v51 }
 0x12a   : > { %9215 = vst [vmem:[#allocation74_spill] sm:$0xff] %v5240_v53  ;;  %9216 = vst [vmem:[#allocation75_spill] sm:$0xff] %v5242_v13  ;;  %v5260_v53 = vmul.f32 %v5074_v20, %v5118_v5  ;;  %v5274_v35 = vmul.f32 %v5042_v36, %v1761_v3  ;;  %v5277_v43 = vmul.f32 %v4325_v63, %v4951_v44 }
 0x12b   : > { %9217 = vst [vmem:[#allocation76_spill] sm:$0xff] %v5245_v61  ;;  %9218 = vst [vmem:[#allocation77_spill] sm:$0xff] %v5249_v47  ;;  %v5264_v61 = vmul.f32 %v5074_v20, %v5164_v28  ;;  %v5268_v47 = vmul.f32 %v5012_v48, %v5040_v33  ;;  %v5281_v52 = vmul.f32 %v5076_v57, %v5091_v37 }
 0x12c   : > { %9219 = vst [vmem:[#allocation78_spill] sm:$0xff] %v5253_v60  ;;  %9220 = vst [vmem:[#allocation79_spill] sm:$0xff] %v5256_v62  ;;  %v5285_v26 = vmul.f32 %v5076_v57, %v5109_v21  ;;  %v5289_v46 = vmul.f32 %v5079_v18, %v5118_v5  ;;  %v5293_v39 = vmul.f32 %v5079_v18, %v5164_v28 }
 0x12d   : > { %9221 = vst [vmem:[#allocation80_spill] sm:$0xff] %v5260_v53  ;;  %9222 = vst [vmem:[#allocation81_spill] sm:$0xff] %v5264_v61  ;;  %v5297_v44 = vmul.f32 %v5020_v4, %v5040_v33  ;;  %v5300_v63 = vmul.f32 %v5045_v16, %v1640_v51 }
 0x12e   : > { %9223 = vst [vmem:[#allocation82_spill] sm:$0xff] %v5268_v47  ;;  %9224 = vst [vmem:[#allocation83_spill] sm:$0xff] %v5271_v55  ;;  %v5305_v55 = vmul.f32 %v5048_v10, %v1761_v3 }
 0x12f   : > { %9225 = vst [vmem:[#allocation84_spill] sm:$0xff] %v5274_v35  ;;  %9226 = vst [vmem:[#allocation85_spill] sm:$0xff] %v5277_v43  ;;  %v1642_v35 = vrot.slane %v5256_v62, 1 }
 0x130   : > { %9227 = vst [vmem:[#allocation86_spill] sm:$0xff] %v5281_v52  ;;  %9228 = vst [vmem:[#allocation87_spill] sm:$0xff] %v5285_v26  ;;  %v2188_v26 = vadd.f32 %v2156_v25, %v2120_v54  ;;  %v1400_v25 = vrot.slane %v5256_v62, 6  ;;  %v1399_v54 = vrot.slane %v5277_v43, 6  ;;  %v5330_v52 = vmul.f32 %v5050_v42, %v1640_v51 }
 0x131   : > { %9229 = vst [vmem:[#allocation88_spill] sm:$0xff] %v5289_v46  ;;  %9230 = vst [vmem:[#allocation89_spill] sm:$0xff] %v5293_v39  ;;  %v5309_v46 = vmul.f32 %v5082_v59, %v5091_v37  ;;  %v5313_v39 = vmul.f32 %v5082_v59, %v5109_v21  ;;  %v5327_v37 = vmul.f32 %v5022_v49, %v5040_v33  ;;  %v1521_v51 = vrot.slane %v5256_v62, 7 }
 0x132   : > { %9231 = vst [vmem:[#allocation90_spill] sm:$0xff] %v5297_v44  ;;  %9232 = vst [vmem:[#allocation91_spill] sm:$0xff] %v5300_v63  ;;  %v5317_v44 = vmul.f32 %v5085_v34, %v5118_v5  ;;  %v5321_v63 = vmul.f32 %v5085_v34, %v5164_v28  ;;  %v5333_v21 = vmul.f32 %v5127_v19, %v1761_v3  ;;  %v9242_v28 = vrot.slane %v5256_v62, 2 }
 0x133   : > { %9233 = vst [vmem:[#allocation92_spill] sm:$0xff] %v5305_v55  ;;  %9234 = vst [vmem:[#allocation93_spill] sm:$0xff] %v5309_v46  ;;  %v2121_v5 = vadd.f32 %v2089_v32, %v2053_v29  ;;  %v5344_v46 = vmul.f32 %v4331_v50, %v4964_v58  ;;  %v5347_v33 = vmul.f32 %v4333_v38, %v4968_v6  ;;  %v5373_v38 = vsel %vm1365_vm2, 0.0, %v1399_v54 }
 0x134   : > { %9235 = vst [vmem:[#allocation94_spill] sm:$0xff] %v5313_v39  ;;  %9236 = vst [vmem:[#allocation95_spill] sm:$0xff] %v5317_v44  ;;  %v5336_v44 = vsel %vm1607_vm4, %v1642_v35, 0.0  ;;  %v5352_v19 = vmul.f32 %v4897_v12, %v5256_v62  ;;  %v5356_v32 = vmul.f32 %v5009_v40, %v5256_v62  ;;  %v5359_v3 = vmul.f32 %v4335_v41, %v4974_v14 }
 0x135   : > { %9237 = vst [vmem:[#allocation96_spill] sm:$0xff] %v5321_v63  ;;  %9238 = vst [vmem:[#allocation97_spill] sm:$0xff] %v5327_v37  ;;  %v5341_v63 = vsel %vm1728_vm5, %v9242_v28, 0.0  ;;  %v5363_v58 = vmul.f32 %v5012_v48, %v5256_v62  ;;  %v5367_v6 = vmul.f32 %v5020_v4, %v5256_v62  ;;  %v5370_v50 = vsel %vm1365_vm2, %v1399_v54, %v1400_v25 }
 0x136   : > { %9239 = vst [vmem:[#allocation98_spill] sm:$0xff] %v5330_v52  ;;  %9240 = vst [vmem:[#allocation99_spill] sm:$0xff] %v5333_v21  ;;  %v5377_v29 = vmul.f32 %v4918_v22, %v5336_v44  ;;  %v5381_v14 = vmul.f32 %v4934_v31, %v5341_v63  ;;  %v5385_v41 = vmul.f32 %v5022_v49, %v5256_v62  ;;  %v1520_v28 = vrot.slane %v5277_v43, 7 }
 0x137   : > { %9241 = vst [vmem:[#allocation100_spill] sm:$0xff] %v5336_v44  ;;  %9243 = vst [vmem:[#allocation101_spill] sm:$0xff] %v5341_v63  ;;  %v5390_v25 = vmul.f32 %v5031_v27, %v5336_v44  ;;  %v1641_v54 = vrot.slane %v5277_v43, 1  ;;  %v1373_v21 = vrot.slane %v5344_v46, 6  ;;  %v1494_v52 = vrot.slane %v5344_v46, 7 }
 0x138   : > { %9244 = vst [vmem:[#allocation102_spill] sm:$0xff] %v5344_v46  ;;  %9245 = vst [vmem:[#allocation103_spill] sm:$0xff] %v5347_v33  ;;  %v1880_v39 = vmul.f32 %v4860_v56, %v5373_v38  ;;  %v2022_v55 = vmul.f32 %v4897_v12, %v5277_v43  ;;  %v1372_v47 = vrot.slane %v5359_v3, 6  ;;  %v1493_v61 = vrot.slane %v5359_v3, 7 }
 0x139   : > { %9246 = vst [vmem:[#allocation104_spill] sm:$0xff] %v5359_v3  ;;  %9247 = vst [vmem:[#allocation105_spill] sm:$0xff] %v5363_v58  ;;  %v2224_v58 = vmul.f32 %v4955_v45, %v5373_v38  ;;  %v5408_v37 = vsel %vm1486_vm3, %v1520_v28, %v1521_v51  ;;  %v5411_v53 = vsel %vm1486_vm3, 0.0, %v1520_v28  ;;  %v1615_v60 = vrot.slane %v5344_v46, 1 }
 0x13a   : > { %9248 = vst [vmem:[#allocation106_spill] sm:$0xff] %v5367_v6  ;;  %9249 = vst [vmem:[#allocation107_spill] sm:$0xff] %v5370_v50  ;;  %v2189_v6 = vadd.f32 %v5181_v8, %v2121_v5  ;;  %v1614_v34 = vrot.slane %v5359_v3, 1  ;;  %v5416_v59 = vsel %vm1365_vm2, %v1372_v47, %v1373_v21  ;;  %v5419_v8 = vsel %vm1365_vm2, 0.0, %v1372_v47 }
 0x13b   : > { %9250 = vst [vmem:[#allocation108_spill] sm:$0xff] %v5373_v38  ;;  %9251 = vst [vmem:[#allocation109_spill] sm:$0xff] %v5381_v14  ;;  %v5422_v5 = vsel %vm1486_vm3, %v1493_v61, %v1494_v52  ;;  %v5425_v38 = vsel %vm1486_vm3, 0.0, %v1493_v61  ;;  %v5428_v51 = vsel %vm1607_vm4, %v1641_v54, %v1642_v35  ;;  %v1918_v28 = vadd.f32 %v4885_v7, %v1880_v39 }
 0x13c   : > { %9252 = vst [vmem:[#allocation110_spill] sm:$0xff] %v5385_v41  ;;  %9253 = vst [vmem:[#allocation111_spill] sm:$0xff] %v5390_v25  ;;  %v1881_v41 = vmul.f32 %v4860_v56, %v5370_v50  ;;  %v1862_v42 = vmul.f32 %v4860_v56, %v5419_v8  ;;  %v1863_v21 = vmul.f32 %v4860_v56, %v5416_v59  ;;  %v1736_v52 = vrot.slane %v5344_v46, 2 }
 0x13d   : > { %9254 = vst [vmem:[#allocation112_spill] sm:$0xff] %v5408_v37  ;;  %9255 = vst [vmem:[#allocation113_spill] sm:$0xff] %v5411_v53  ;;  %v1954_v47 = vmul.f32 %v4877_v2, %v5411_v53  ;;  %v2256_v49 = vadd.f32 %v2224_v58, %v2188_v26  ;;  %v1735_v61 = vrot.slane %v5359_v3, 2  ;;  %v1936_v39 = vmul.f32 %v4877_v2, %v5425_v38 }
 0x13e   : > { %9256 = vst [vmem:[#allocation114_spill] sm:$0xff] %v5428_v51  ;;  %v1900_v18 = vadd.f32 %v4885_v7, %v1862_v42  ;;  %v1901_v35 = vadd.f32 %v4885_v7, %v1863_v21  ;;  %v1937_v54 = vmul.f32 %v4877_v2, %v5422_v5  ;;  %v2225_v57 = vmul.f32 %v4955_v45, %v5370_v50  ;;  %v5455_v42 = vpop.f32.mrb[10].mxu0 }
 0x13f   : > { %v2292_v26 = vmul.f32 %v4971_v9, %v5411_v53  ;;  %v5450_v58 = vsel %vm1607_vm4, %v1615_v60, 0.0  ;;  %v5453_v10 = vsel %vm1607_vm4, %v1614_v34, %v1615_v60  ;;  %9257 = vst [vmem:[#allocation115_spill] sm:$0xff] %v5455_v42  ;;  %v2005_v21 = vmul.f32 %v4897_v12, %v5344_v46 }
 0x140   : > { %v1968_v16 = vadd.f32 %v1936_v39, %v1900_v18  ;;  %v1969_v4 = vadd.f32 %v1937_v54, %v1901_v35  ;;  %v2004_v13 = vmul.f32 %v4897_v12, %v5359_v3  ;;  %v1986_v50 = vadd.f32 %v1954_v47, %v1918_v28  ;;  %v5476_v39 = vpop.f32.mrb[10].mxu1 }
 0x141   : > { %v2324_v14 = vadd.f32 %v2292_v26, %v2256_v49  ;;  %v5462_v53 = vsel %vm1728_vm5, %v1736_v52, 0.0  ;;  %v5465_v25 = vsel %vm1728_vm5, %v1735_v61, %v1736_v52  ;;  %v2073_v34 = vmul.f32 %v4918_v22, %v5450_v58  ;;  %9258 = vst [vmem:[#allocation116_spill] sm:$0xff] %v5476_v39 }
 0x142   : > { %v2036_v60 = vadd.f32 %v2004_v13, %v1968_v16  ;;  %v2037_v42 = vadd.f32 %v2005_v21, %v1969_v4  ;;  %v2072_v18 = vmul.f32 %v4918_v22, %v5453_v10  ;;  %v1919_v35 = vadd.f32 %v4885_v7, %v1881_v41 }
 0x143   : > { %v1955_v28 = vmul.f32 %v4877_v2, %v5408_v37  ;;  %v2257_v49 = vadd.f32 %v2225_v57, %v2189_v6  ;;  %v2360_v47 = vmul.f32 %v5009_v40, %v5277_v43  ;;  %v2141_v52 = vmul.f32 %v4934_v31, %v5462_v53 }
 0x144   : > { %v2104_v61 = vadd.f32 %v2072_v18, %v2036_v60  ;;  %v2105_v16 = vadd.f32 %v2073_v34, %v2037_v42  ;;  %v2140_v4 = vmul.f32 %v4934_v31, %v5465_v25  ;;  %v2054_v13 = vadd.f32 %v2022_v55, %v1986_v50 }
 0x145   : > { %v2392_v54 = vadd.f32 %v2360_v47, %v2324_v14  ;;  %v1403_v41 = vrot.slane %v5347_v33, 6  ;;  %v5485_v57 = vmul.f32 %v5225_v23, %v4985_v0  ;;  %v2293_v6 = vmul.f32 %v4971_v9, %v5408_v37 }
 0x146   : > { %v1524_v26 = vrot.slane %v5347_v33, 7  ;;  %v5490_v21 = vadd.f32 %v2140_v4, %v2104_v61  ;;  %v5492_v60 = vadd.f32 %v2141_v52, %v2105_v16  ;;  %v2090_v42 = vmul.f32 %v4918_v22, %v5428_v51 }
 0x147   : > { %9259 = vst [vmem:[#allocation117_spill] sm:$0xff] %v5485_v57  ;;  %v2428_v55 = vmul.f32 %v5031_v27, %v5428_v51  ;;  %v1402_v50 = vrot.slane %v5485_v57, 6  ;;  %v1523_v0 = vrot.slane %v5485_v57, 7  ;;  %v5502_v23 = vmul.f32 %v5034_v30, %v5341_v63 }
 0x148   : > { %9260 = vst [vmem:[#allocation118_spill] sm:$0xff] %v5490_v21  ;;  %9261 = vst [vmem:[#allocation119_spill] sm:$0xff] %v5492_v60  ;;  %v9262_v14 = vrot.slane %v5256_v62, 2  ;;  %v9263_v34 = vrot.slane %v5277_v43, 2  ;;  %v1987_v47 = vadd.f32 %v1955_v28, %v1919_v35  ;;  %v2325_v52 = vadd.f32 %v2293_v6, %v2257_v49  ;;  %v5525_v35 = vpop.f32.mrb[11].mxu0 }
 0x149   : > { %v2122_v61 = vadd.f32 %v2090_v42, %v2054_v13  ;;  %v2460_v16 = vadd.f32 %v2428_v55, %v2392_v54  ;;  %v5512_v4 = vsel %vm1365_vm2, %v1402_v50, %v1403_v41  ;;  %v5515_v51 = vsel %vm1365_vm2, 0.0, %v1402_v50  ;;  %9269 = vst [vmem:[#allocation125_spill] sm:$0xff] %v5525_v35 }
 0x14a   : > { %v5509_v18 = vsel %vm1728_vm5, %v9263_v34, %v9262_v14  ;;  %9265 = vst [vmem:[#allocation121_spill] sm:$0xff] %v5512_v4  ;;  %9266 = vst [vmem:[#allocation122_spill] sm:$0xff] %v5515_v51  ;;  %v1645_v37 = vrot.slane %v5347_v33, 1  ;;  %v5519_v63 = vsel %vm1486_vm3, %v1523_v0, %v1524_v26  ;;  %v5522_v62 = vsel %vm1486_vm3, 0.0, %v1523_v0 }
 0x14b   : > { %9264 = vst [vmem:[#allocation120_spill] sm:$0xff] %v5509_v18  ;;  %9267 = vst [vmem:[#allocation123_spill] sm:$0xff] %v5519_v63  ;;  %v1644_v14 = vrot.slane %v5485_v57, 1  ;;  %v5529_v28 = vmul.f32 %v5037_v11, %v5336_v44  ;;  %v2158_v49 = vmul.f32 %v4934_v31, %v5509_v18  ;;  %v1882_v13 = vmul.f32 %v4860_v56, %v5515_v51 }
 0x14c   : > { %9268 = vst [vmem:[#allocation124_spill] sm:$0xff] %v5522_v62  ;;  %v1883_v54 = vmul.f32 %v4860_v56, %v5512_v4  ;;  %v2055_v41 = vadd.f32 %v5352_v19, %v1987_v47  ;;  %v2496_v6 = vmul.f32 %v5034_v30, %v5509_v18  ;;  %v1766_v26 = vrot.slane %v5347_v33, 2 }
 0x14d   : > { %9270 = vst [vmem:[#allocation126_spill] sm:$0xff] %v5529_v28  ;;  %v1765_v42 = vrot.slane %v5485_v57, 2  ;;  %v1920_v55 = vadd.f32 %v4885_v7, %v1882_v13  ;;  %v1956_v0 = vmul.f32 %v4877_v2, %v5522_v62  ;;  %v1957_v34 = vmul.f32 %v4877_v2, %v5519_v63 }
 0x14e   : > { %v1921_v50 = vadd.f32 %v4885_v7, %v1883_v54  ;;  %v2190_v28 = vadd.f32 %v2158_v49, %v2122_v61  ;;  %v2393_v19 = vadd.f32 %v5356_v32, %v2325_v52  ;;  %v2528_v47 = vadd.f32 %v2496_v6, %v2460_v16 }
 0x14f   : > { %v5550_v18 = vsel %vm1607_vm4, %v1644_v14, %v1645_v37  ;;  %v2343_v43 = vmul.f32 %v5009_v40, %v5344_v46  ;;  %v1988_v44 = vadd.f32 %v1956_v0, %v1920_v55  ;;  %v2024_v7 = vmul.f32 %v4897_v12, %v5485_v57 }
 0x150   : > { %9271 = vst [vmem:[#allocation127_spill] sm:$0xff] %v5550_v18  ;;  %v1989_v13 = vadd.f32 %v1957_v34, %v1921_v50  ;;  %v5558_v54 = vmul.f32 %v5031_v27, %v5450_v58  ;;  %v2681_v61 = vmul.f32 %v5012_v48, %v5344_v46  ;;  %v5563_v32 = vsel %vm1607_vm4, %v1645_v37, 0.0 }
 0x151   : > { %9272 = vst [vmem:[#allocation128_spill] sm:$0xff] %v5563_v32  ;;  %v5566_v52 = vsel %vm1728_vm5, %v1765_v42, %v1766_v26  ;;  %v2206_v16 = vmul.f32 %v4955_v45, %v5419_v8  ;;  %v2207_v14 = vmul.f32 %v4955_v45, %v5416_v59  ;;  %v2056_v49 = vadd.f32 %v2024_v7, %v1988_v44 }
 0x152   : > { %9273 = vst [vmem:[#allocation129_spill] sm:$0xff] %v5566_v52  ;;  %v2092_v6 = vmul.f32 %v4918_v22, %v5550_v18  ;;  %v5576_v55 = vmul.f32 %v5034_v30, %v5462_v53  ;;  %v5580_v37 = vmul.f32 %v5037_v11, %v5450_v58  ;;  %v5584_v42 = vmul.f32 %v5042_v36, %v5462_v53 }
 0x153   : > { %v5587_v50 = vsel %vm1728_vm5, %v1766_v26, 0.0  ;;  %v2544_v44 = vmul.f32 %v5071_v17, %v5419_v8  ;;  %v2545_v0 = vmul.f32 %v5071_v17, %v5416_v59  ;;  %v2160_v7 = vmul.f32 %v4934_v31, %v5566_v52 }
 0x154   : > { %9274 = vst [vmem:[#allocation130_spill] sm:$0xff] %v5587_v50  ;;  %v2124_v34 = vadd.f32 %v2092_v6, %v2056_v49  ;;  %v2025_v58 = vmul.f32 %v4897_v12, %v5347_v33  ;;  %v2093_v53 = vmul.f32 %v4918_v22, %v5563_v32  ;;  %v5601_v26 = vmul.f32 %v5009_v40, %v5347_v33  ;;  %v9276_v6 = vld [vmem:[#allocation20_spill] sm:$0xff] }
 0x155   : > { %v5605_v8 = vmul.f32 %v5031_v27, %v5563_v32  ;;  %v5609_v59 = vmul.f32 %v5012_v48, %v5347_v33  ;;  %v2238_v49 = vadd.f32 %v2206_v16, %v4976_v15  ;;  %v2239_v46 = vadd.f32 %v2207_v14, %v9276_v6 }
 0x156   : > { %v5613_v60 = vadd.f32 %v2160_v7, %v2124_v34  ;;  %v2161_v21 = vmul.f32 %v4934_v31, %v5587_v50  ;;  %v5619_v2 = vmul.f32 %v5037_v11, %v5563_v32  ;;  %v2274_v56 = vmul.f32 %v4971_v9, %v5425_v38 }
 0x157   : > { %9275 = vst [vmem:[#allocation131_spill] sm:$0xff] %v5605_v8  ;;  %v2226_v33 = vmul.f32 %v4955_v45, %v5515_v51  ;;  %v2275_v15 = vmul.f32 %v4971_v9, %v5422_v5  ;;  %v2576_v16 = vadd.f32 %v2544_v44, %v5112_v1  ;;  %v2577_v14 = vadd.f32 %v2545_v0, %v5114_v24 }
 0x158   : > { %9277 = vst [vmem:[#allocation20_spill] sm:$0xff] %v5613_v60  ;;  %9278 = vst [vmem:[#allocation132_spill] sm:$0xff] %v5619_v2  ;;  %v2564_v34 = vmul.f32 %v5071_v17, %v5515_v51  ;;  %v2612_v7 = vmul.f32 %v5074_v20, %v5425_v38  ;;  %v2123_v6 = vadd.f32 %v5377_v29, %v2055_v41  ;;  %v9279_v60 = vld [vmem:[#allocation111_spill] sm:$0xff] }
 0x159   : > { %v2258_v32 = vadd.f32 %v2226_v33, %v2190_v28  ;;  %v2461_v35 = vadd.f32 %v9279_v60, %v2393_v19  ;;  %v2306_v39 = vadd.f32 %v2274_v56, %v2238_v49  ;;  %v2307_v2 = vadd.f32 %v2275_v15, %v2239_v46  ;;  %v9280_v60 = vld [vmem:[#allocation109_spill] sm:$0xff] }
 0x15a   : > { %v2613_v8 = vmul.f32 %v5074_v20, %v5422_v5  ;;  %v2596_v31 = vadd.f32 %v2564_v34, %v2528_v47  ;;  %v2342_v1 = vmul.f32 %v5009_v40, %v5359_v3  ;;  %v2680_v24 = vmul.f32 %v5012_v48, %v5359_v3  ;;  %v9318_v3 = vld [vmem:[#allocation7_spill] sm:$0xff] }
 0x15b   : > { %v2057_v44 = vadd.f32 %v2025_v58, %v1989_v13  ;;  %v2294_v38 = vmul.f32 %v4971_v9, %v5522_v62  ;;  %v2410_v33 = vmul.f32 %v5031_v27, %v5453_v10  ;;  %v2644_v29 = vadd.f32 %v2612_v7, %v2576_v16  ;;  %v9281_v58 = vld [vmem:[#allocation53_spill] sm:$0xff] }
 0x15c   : > { %v2645_v56 = vadd.f32 %v2613_v8, %v2577_v14  ;;  %v2632_v46 = vmul.f32 %v5074_v20, %v5522_v62  ;;  %v2478_v5 = vmul.f32 %v5034_v30, %v5465_v25  ;;  %v2191_v28 = vadd.f32 %v9280_v60, %v2123_v6 }
 0x15d   : > { %v2326_v41 = vadd.f32 %v2294_v38, %v2258_v32  ;;  %v2529_v19 = vadd.f32 %v5502_v23, %v2461_v35  ;;  %v2374_v47 = vadd.f32 %v2342_v1, %v2306_v39  ;;  %v2375_v13 = vadd.f32 %v2343_v43, %v2307_v2  ;;  %v9282_v35 = vld [vmem:[#allocation21_spill] sm:$0xff]  ;;  %v9283_v32 = vld [vmem:[#allocation75_spill] sm:$0xff] }
 0x15e   : > { %v2664_v0 = vadd.f32 %v2632_v46, %v2596_v31  ;;  %v1009_v49 = vadd.f32 1.0, %v9281_v58  ;;  %v2227_v15 = vmul.f32 %v4955_v45, %v5512_v4  ;;  %v2362_v8 = vmul.f32 %v5009_v40, %v5485_v57 }
 0x15f   : > { %v2565_v16 = vmul.f32 %v5071_v17, %v5512_v4  ;;  %v2125_v14 = vadd.f32 %v2093_v53, %v2057_v44  ;;  %v2712_v34 = vadd.f32 %v2680_v24, %v2644_v29  ;;  %v2713_v7 = vadd.f32 %v2681_v61, %v2645_v56  ;;  %v5668_v53 = vpop.f32.mrb[11].mxu1  ;;  %v9286_v56 = vld [vmem:[#allocation50_spill] sm:$0xff]  ;;  %v9314_v4 = vld [vmem:[#allocation116_spill] sm:$0xff] }
 0x160   : > { %v2748_v23 = vmul.f32 %v5037_v11, %v5453_v10  ;;  %v2700_v2 = vmul.f32 %v5012_v48, %v5485_v57  ;;  %v2259_v31 = vadd.f32 %v2227_v15, %v2191_v28  ;;  %v2394_v43 = vadd.f32 %v2362_v8, %v2326_v41 }
 0x161   : > { %v2597_v39 = vadd.f32 %v2565_v16, %v2529_v19  ;;  %v5664_v6 = vmul.f32 %v9283_v32, %v9282_v35  ;;  %v2442_v1 = vadd.f32 %v2410_v33, %v2374_v47  ;;  %4340 = vrcp.f32 %v1009_v49 }
 0x162   : > { %v2732_v38 = vadd.f32 %v2700_v2, %v2664_v0  ;;  %v5666_v46 = vadd.f32 %v2161_v21, %v2125_v14  ;;  %v2443_v61 = vadd.f32 %v5558_v54, %v2375_v13  ;;  %v2295_v10 = vmul.f32 %v4971_v9, %v5519_v63 }
 0x163   : > { %9284 = vst [vmem:[#allocation111_spill] sm:$0xff] %v5664_v6  ;;  %v2430_v24 = vmul.f32 %v5031_v27, %v5550_v18  ;;  %v2633_v44 = vmul.f32 %v5074_v20, %v5519_v63  ;;  %v2780_v29 = vadd.f32 %v2748_v23, %v2712_v34  ;;  %v2781_v33 = vadd.f32 %v5580_v37, %v2713_v7 }
 0x164   : > { %9285 = vst [vmem:[#allocation109_spill] sm:$0xff] %v5666_v46  ;;  %v2768_v21 = vmul.f32 %v5037_v11, %v5550_v18  ;;  %v1030_v60 = vadd.f32 1.0, %v9286_v56  ;;  %v2327_v28 = vadd.f32 %v2295_v10, %v2259_v31  ;;  %v8965_v19 = vrot.slane %v5664_v6, 1  ;;  %v9289_v31 = vld [vmem:[#allocation59_spill] sm:$0xff]  ;;  %v9293_v10 = vld [vmem:[#allocation62_spill] sm:$0xff] }
 0x165   : > { %v2462_v41 = vadd.f32 %v2430_v24, %v2394_v43  ;;  %v2665_v54 = vadd.f32 %v2633_v44, %v2597_v39  ;;  %v5684_v47 = vmul.f32 %v5034_v30, %v5587_v50  ;;  %v2816_v13 = vmul.f32 %v5042_v36, %v5465_v25  ;;  %v9294_v44 = vld [vmem:[#allocation28_spill] sm:$0xff]  ;;  %v9312_v18 = vld [vmem:[#allocation131_spill] sm:$0xff] }
 0x166   : > { %v2800_v0 = vadd.f32 %v2768_v21, %v2732_v38  ;;  %v8964_v37 = vrot.slane %v5664_v6, 2  ;;  %v5691_v58 = vmul.f32 %v5042_v36, %v5587_v50  ;;  %v5693_v49 = vadd.f32 %v2478_v5, %v2442_v1  ;;  %v9291_v38 = vld [vmem:[#allocation25_spill] sm:$0xff] }
 0x167   : > { %v5696_v15 = vadd.f32 %v5576_v55, %v2443_v61  ;;  %v2498_v8 = vmul.f32 %v5034_v30, %v5566_v52  ;;  %v5700_v16 = vadd.f32 %v2816_v13, %v2780_v29  ;;  %v5703_v14 = vadd.f32 %v5584_v42, %v2781_v33  ;;  %v9295_v29 = vld [vmem:[#allocation5_spill] sm:$0xff] }
 0x168   : > { %v2836_v25 = vmul.f32 %v5042_v36, %v5566_v52  ;;  %4342 = vrcp.f32 %v1030_v60  ;;  %v2395_v34 = vadd.f32 %v5601_v26, %v2327_v28  ;;  %v2733_v5 = vadd.f32 %v5609_v59, %v2665_v54  ;;  %v9297_v21 = vld [vmem:[#allocation17_spill] sm:$0xff]  ;;  %v9299_v54 = vld [vmem:[#allocation56_spill] sm:$0xff] }
 0x169   : > { %v5708_v7 = vadd.f32 %v2498_v8, %v2462_v41  ;;  %v1711_v55 = vsel %vm1607_vm4, %v8965_v19, 0.0  ;;  %v1376_v2 = vrot.slane %v5664_v6, 6  ;;  %v1832_v42 = vsel %vm1728_vm5, %v8964_v37, 0.0  ;;  %v5758_v41 = vld [vmem:[%s8885_s4] ss:$0 sm:$0xff]  ;;  %v9302_v8 = vld [vmem:[#allocation27_spill] sm:$0xff] }
 0x16a   : > { %v5714_v23 = vadd.f32 %v2836_v25, %v2800_v0  ;;  %v1029_v43 = vadd.f32 1.0, %v9289_v31  ;;  %v1497_v26 = vrot.slane %v5664_v6, 7  ;;  %v5724_v39 = vmul.f32 %v4897_v12, %v5664_v6  ;;  %9298 = vst [vmem:[#allocation62_spill] sm:$0xff] %v5758_v41  ;;  %v9304_v31 = vld [vmem:[#allocation115_spill] sm:$0xff]  ;;  %v9311_v52 = vld [vmem:[#allocation52_spill] sm:$0xff] }
 0x16b   : > { %9287 = vst [vmem:[#allocation53_spill] sm:$0xff] %v5708_v7  ;;  %v5728_v59 = vmul.f32 %v5009_v40, %v5664_v6  ;;  %v5732_v35 = vmul.f32 %v5012_v48, %v5664_v6  ;;  %v4341_v32 = vpop.eup %4340  ;;  %v5735_v1 = vmul.f32 %v4918_v22, %v1711_v55  ;;  %v5739_v61 = vmul.f32 %v9291_v38, %v5664_v6  ;;  %v9309_v19 = vld [vmem:[#allocation35_spill] sm:$0xff] }
 0x16c   : > { %9288 = vst [vmem:[#allocation21_spill] sm:$0xff] %v5714_v23  ;;  %v1012_v24 = vadd.f32 1.0, %v9293_v10  ;;  %v5744_v33 = vadd.f32 %v9295_v29, %v9294_v44  ;;  %v5747_v56 = vmul.f32 %v9297_v21, %v1832_v42  ;;  %v5750_v60 = vmul.f32 %v5031_v27, %v1711_v55  ;;  %v9307_v29 = vld [vmem:[#allocation34_spill] sm:$0xff] }
 0x16d   : > { %9290 = vst [vmem:[#allocation75_spill] sm:$0xff] %v5732_v35  ;;  %9292 = vst [vmem:[#allocation50_spill] sm:$0xff] %v5739_v61  ;;  %v5753_v28 = vmul.f32 %v5034_v30, %v1832_v42  ;;  %v5762_v13 = vadd.f32 %v5758_v41, %v9299_v54  ;;  %v5765_v0 = vmul.f32 %v5037_v11, %v1711_v55  ;;  %4344 = vrcp.f32 %v1029_v43  ;;  %v9326_v23 = vld [vmem:[#allocation118_spill] sm:$0xff]  ;;  %v9327_v61 = vld [vmem:[#allocation119_spill] sm:$0xff] }
 0x16e   : > { %9296 = vst [vmem:[#allocation59_spill] sm:$0xff] %v5744_v33  ;;  %v5768_v25 = vmul.f32 %v4341_v32, %v9302_v8  ;;  %v5772_v10 = vadd.f32 %v5758_v41, %v9304_v31  ;;  %v5775_v44 = vmul.f32 %v5042_v36, %v1832_v42  ;;  %v5778_v37 = vmul.f32 %v9307_v29, %v1711_v55  ;;  %v9313_v32 = vld [vmem:[#allocation132_spill] sm:$0xff] }
 0x16f   : > { %9300 = vst [vmem:[#allocation28_spill] sm:$0xff] %v5762_v13  ;;  %9301 = vst [vmem:[#allocation5_spill] sm:$0xff] %v5765_v0  ;;  %v5781_v54 = vmul.f32 %v9309_v19, %v1832_v42  ;;  %4346 = vpow2.f32 %v9311_v52  ;;  %v2463_v63 = vadd.f32 %v9312_v18, %v2395_v34  ;;  %v5786_v8 = vadd.f32 %v9313_v32, %v2733_v5  ;;  %v9316_v5 = vld [vmem:[#allocation125_spill] sm:$0xff] }
 0x170   : > { %9303 = vst [vmem:[#allocation56_spill] sm:$0xff] %v5768_v25  ;;  %9305 = vst [vmem:[#allocation27_spill] sm:$0xff] %v5772_v10  ;;  %4348 = vrcp.f32 %v1012_v24  ;;  %v4056_v43 = vmul.f32 -1.442695, %v5744_v33  ;;  %v1375_v31 = vrot.slane %v5768_v25, 6  ;;  %v1496_v62 = vrot.slane %v5768_v25, 7 }
 0x171   : > { %9306 = vst [vmem:[#allocation115_spill] sm:$0xff] %v5775_v44  ;;  %9308 = vst [vmem:[#allocation133_spill] sm:$0xff] %v5778_v37  ;;  %v4076_v55 = vmul.f32 -1.442695, %v5762_v13  ;;  %v5794_v42 = vadd.f32 %v5758_v41, %v9314_v4  ;;  %v1617_v52 = vrot.slane %v5768_v25, 1  ;;  %v1738_v18 = vrot.slane %v5768_v25, 2 }
 0x172   : > { %9310 = vst [vmem:[#allocation134_spill] sm:$0xff] %v5781_v54  ;;  %v4343_v51 = vpop.eup %4342  ;;  %v4059_v34 = vmul.f32 -1.442695, %v5772_v10  ;;  %v5801_v24 = vadd.f32 %v5758_v41, %v9316_v5  ;;  %v5804_v32 = vsel %vm1365_vm2, %v1375_v31, %v1376_v2  ;;  %v5807_v50 = vsel %vm1365_vm2, 0.0, %v1375_v31  ;;  %v9320_v5 = vld [vmem:[#allocation24_spill] sm:$0xff] }
 0x173   : > { %9315 = vst [vmem:[#allocation52_spill] sm:$0xff] %v5794_v42  ;;  %v5810_v4 = vsel %vm1486_vm3, %v1496_v62, %v1497_v26  ;;  %v5813_v57 = vsel %vm1486_vm3, 0.0, %v1496_v62  ;;  %v1864_v13 = vmul.f32 %v9318_v3, %v5807_v50  ;;  %v1865_v10 = vmul.f32 %v9318_v3, %v5804_v32  ;;  %v9323_v62 = vld [vmem:[#allocation10_spill] sm:$0xff] }
 0x174   : > { %9317 = vst [vmem:[#allocation131_spill] sm:$0xff] %v5801_v24  ;;  %4350 = vpow2.f32 %v4056_v43  ;;  %v5821_v2 = vadd.f32 %v5758_v41, %v5668_v53  ;;  %v5824_v31 = vmul.f32 %v4343_v51, %v9320_v5  ;;  %v9322_v26 = vrot.slane %v5664_v6, 1  ;;  %v5838_v43 = vld [vmem:[%s8887_s6] ss:$0 sm:$0xff] }
 0x175   : > { %v1938_v54 = vmul.f32 %v9323_v62, %v5813_v57  ;;  %v1939_v44 = vmul.f32 %v9323_v62, %v5810_v4  ;;  %9324 = vst [vmem:[#allocation125_spill] sm:$0xff] %v5838_v43  ;;  %v1902_v53 = vadd.f32 %v5838_v43, %v1864_v13  ;;  %v1903_v51 = vadd.f32 %v5838_v43, %v1865_v10 }
 0x176   : > { %9319 = vst [vmem:[#allocation132_spill] sm:$0xff] %v5821_v2  ;;  %9321 = vst [vmem:[#allocation116_spill] sm:$0xff] %v5824_v31  ;;  %v5829_v33 = vsel %vm1607_vm4, %v1617_v52, %v9322_v26  ;;  %v2208_v5 = vmul.f32 %v4955_v45, %v5807_v50  ;;  %v2209_v52 = vmul.f32 %v4955_v45, %v5804_v32  ;;  %v9325_v26 = vrot.slane %v5664_v6, 2 }
 0x177   : > { %v2006_v19 = vmul.f32 %v4897_v12, %v5768_v25  ;;  %v2276_v37 = vmul.f32 %v4971_v9, %v5813_v57  ;;  %v2277_v13 = vmul.f32 %v4971_v9, %v5810_v4  ;;  %v4345_v10 = vpop.eup %4344  ;;  %v1970_v0 = vadd.f32 %v1938_v54, %v1902_v53 }
 0x178   : > { %v5849_v41 = vsel %vm1728_vm5, %v1738_v18, %v9325_v26  ;;  %v1971_v29 = vadd.f32 %v1939_v44, %v1903_v51  ;;  %v2240_v36 = vadd.f32 %v2208_v5, %v9326_v23  ;;  %v2241_v35 = vadd.f32 %v2209_v52, %v9327_v61 }
 0x179   : > { %v5859_v6 = vpop.eup %4346  ;;  %v2074_v18 = vmul.f32 %v4918_v22, %v5829_v33  ;;  %v2344_v26 = vmul.f32 %v5009_v40, %v5768_v25  ;;  %4352 = vpow2.f32 %v4076_v55  ;;  %v4079_v11 = vmul.f32 -1.442695, %v5794_v42 }
 0x17a   : > { %v5866_v7 = vpop.eup %4348  ;;  %v2038_v46 = vadd.f32 %v2006_v19, %v1970_v0  ;;  %v2039_v44 = vadd.f32 %v5724_v39, %v1971_v29  ;;  %v2308_v54 = vadd.f32 %v2276_v37, %v2240_v36  ;;  %v2309_v23 = vadd.f32 %v2277_v13, %v2241_v35 }
 0x17b   : > { %v8995_v61 = vrot.slane %v5824_v31, 1  ;;  %v2142_v53 = vmul.f32 %v9297_v21, %v5849_v41  ;;  %v2412_v51 = vmul.f32 %v5031_v27, %v5829_v33  ;;  %v4058_v5 = vmul.f32 -1.442695, %v5801_v24 }
 0x17c   : > { %v2106_v55 = vadd.f32 %v2074_v18, %v2038_v46  ;;  %v2107_v52 = vadd.f32 %v5735_v1, %v2039_v44  ;;  %v2376_v42 = vadd.f32 %v2344_v26, %v2308_v54  ;;  %v2377_v19 = vadd.f32 %v5728_v59, %v2309_v23  ;;  %v9336_v44 = vld [vmem:[#allocation37_spill] sm:$0xff] }
 0x17d   : > { %v8994_v39 = vrot.slane %v5824_v31, 2  ;;  %v2480_v36 = vmul.f32 %v5034_v30, %v5849_v41  ;;  %v5881_v37 = vadd.f32 %v5684_v47, %v2463_v63  ;;  %4354 = vpow2.f32 %v4059_v34  ;;  %v5918_v34 = vpop.f32.mrb[12].mxu0 }
 0x17e   : > { %v5883_v35 = vpop.eup %4350  ;;  %v5885_v0 = vadd.f32 %v2142_v53, %v2106_v55  ;;  %v5888_v46 = vadd.f32 %v5747_v56, %v2107_v52  ;;  %v2444_v1 = vadd.f32 %v2412_v51, %v2376_v42  ;;  %v2445_v29 = vadd.f32 %v5750_v60, %v2377_v19  ;;  %9335 = vst [vmem:[#allocation139_spill] sm:$0xff] %v5918_v34  ;;  %v9352_v34 = vld [vmem:[#allocation109_spill] sm:$0xff] }
 0x17f   : > { %v2546_v59 = vmul.f32 %v5071_v17, %v5807_v50  ;;  %v5895_v13 = vadd.f32 %v5691_v58, %v5786_v8  ;;  %4356 = vpow2.f32 %v4079_v11  ;;  %v5898_v63 = vmul.f32 -1.442695, %v5821_v2 }
 0x180   : > { %9328 = vst [vmem:[#allocation24_spill] sm:$0xff] %v5885_v0  ;;  %9329 = vst [vmem:[#allocation118_spill] sm:$0xff] %v5888_v46  ;;  %v5903_v47 = vsel %vm1607_vm4, %v8995_v61, 0.0  ;;  %v5905_v56 = vadd.f32 %v2480_v36, %v2444_v1  ;;  %v5908_v60 = vadd.f32 %v5753_v28, %v2445_v29  ;;  %4358 = vpow2.f32 %v4058_v5 }
 0x181   : > { %9330 = vst [vmem:[#allocation119_spill] sm:$0xff] %v5898_v63  ;;  %9331 = vst [vmem:[#allocation135_spill] sm:$0xff] %v5903_v47  ;;  %v1406_v42 = vrot.slane %v5824_v31, 6  ;;  %v1527_v58 = vrot.slane %v5824_v31, 7  ;;  %v5915_v11 = vsel %vm1728_vm5, %v8994_v39, 0.0  ;;  %v2578_v8 = vadd.f32 %v2546_v59, %v5693_v49 }
 0x182   : > { %9332 = vst [vmem:[#allocation136_spill] sm:$0xff] %v5905_v56  ;;  %9333 = vst [vmem:[#allocation137_spill] sm:$0xff] %v5908_v60  ;;  %v5922_v18 = vmul.f32 %v4897_v12, %v5824_v31  ;;  %v5926_v28 = vmul.f32 %v5009_v40, %v5824_v31  ;;  %v2547_v26 = vmul.f32 %v5071_v17, %v5804_v32 }
 0x183   : > { %9334 = vst [vmem:[#allocation138_spill] sm:$0xff] %v5915_v11  ;;  %v5931_v54 = vmul.f32 %v4345_v10, %v9336_v44  ;;  %v5933_v23 = vpop.eup %4352  ;;  %v5937_v49 = vmul.f32 %v4918_v22, %v5903_v47  ;;  %v5941_v53 = vmul.f32 %v5012_v48, %v5824_v31  ;;  %v5945_v51 = vmul.f32 %v9291_v38, %v5824_v31  ;;  %v9338_v44 = vld [vmem:[#allocation42_spill] sm:$0xff] }
 0x184   : > { %v2614_v5 = vmul.f32 %v5074_v20, %v5813_v57  ;;  %v5951_v10 = vmul.f32 %v9297_v21, %v5915_v11  ;;  %v2579_v55 = vadd.f32 %v2547_v26, %v5696_v15  ;;  %v5958_v36 = vmul.f32 %v5031_v27, %v5903_v47 }
 0x185   : > { %9337 = vst [vmem:[#allocation37_spill] sm:$0xff] %v5931_v54  ;;  %v1405_v52 = vrot.slane %v5931_v54, 6  ;;  %v1526_v19 = vrot.slane %v5931_v54, 7  ;;  %v2615_v1 = vmul.f32 %v5074_v20, %v5810_v4  ;;  %v2682_v59 = vmul.f32 %v5012_v48, %v5768_v25 }
 0x186   : > { %v2646_v29 = vadd.f32 %v2614_v5, %v2578_v8  ;;  %v2884_v39 = vmul.f32 %v9338_v44, %v5807_v50  ;;  %v2885_v8 = vmul.f32 %v9338_v44, %v5804_v32  ;;  %v1647_v24 = vrot.slane %v5931_v54, 1 }
 0x187   : > { %v5967_v15 = vsel %vm1365_vm2, %v1405_v52, %v1406_v42  ;;  %v5970_v26 = vsel %vm1365_vm2, 0.0, %v1405_v52  ;;  %v5973_v61 = vsel %vm1486_vm3, %v1526_v19, %v1527_v58  ;;  %v5975_v2 = vpop.eup %4354  ;;  %v5980_v5 = vsel %vm1486_vm3, 0.0, %v1526_v19  ;;  %v5984_v42 = vpop.f32.mrb[12].mxu1 }
 0x188   : > { %9339 = vst [vmem:[#allocation140_spill] sm:$0xff] %v5967_v15  ;;  %9340 = vst [vmem:[#allocation141_spill] sm:$0xff] %v5970_v26  ;;  %v1768_v50 = vrot.slane %v5931_v54, 2  ;;  %v2647_v60 = vadd.f32 %v2615_v1, %v2579_v55  ;;  %v2916_v52 = vadd.f32 %v2884_v39, %v5700_v16  ;;  %v1884_v58 = vmul.f32 %v9318_v3, %v5970_v26 }
 0x189   : > { %9341 = vst [vmem:[#allocation142_spill] sm:$0xff] %v5973_v61  ;;  %9342 = vst [vmem:[#allocation143_spill] sm:$0xff] %v5975_v2  ;;  %v1885_v56 = vmul.f32 %v9318_v3, %v5967_v15  ;;  %v5991_v46 = vpop.eup %4356  ;;  %v2917_v32 = vadd.f32 %v2885_v8, %v5703_v14  ;;  %v1958_v19 = vmul.f32 %v9323_v62, %v5980_v5  ;;  %v9347_v8 = vrot.slane %v5824_v31, 1  ;;  %v6032_v2 = vpop.f32.mrb[13].mxu0 }
 0x18a   : > { %9343 = vst [vmem:[#allocation144_spill] sm:$0xff] %v5980_v5  ;;  %9344 = vst [vmem:[#allocation145_spill] sm:$0xff] %v5984_v42  ;;  %v1959_v0 = vmul.f32 %v9323_v62, %v5973_v61  ;;  %v2026_v55 = vmul.f32 %v4897_v12, %v5931_v54  ;;  %v6000_v16 = vpop.eup %4358  ;;  %v1922_v39 = vadd.f32 %v5838_v43, %v1884_v58  ;;  %v9349_v62 = vrot.slane %v5824_v31, 2  ;;  %v9351_v42 = vld [vmem:[#allocation20_spill] sm:$0xff] }
 0x18b   : > { %9345 = vst [vmem:[#allocation146_spill] sm:$0xff] %v5991_v46  ;;  %9346 = vst [vmem:[#allocation147_spill] sm:$0xff] %v6000_v16  ;;  %v1923_v1 = vadd.f32 %v5838_v43, %v1885_v56  ;;  %v2228_v3 = vmul.f32 %v4955_v45, %v5970_v26  ;;  %v2229_v14 = vmul.f32 %v4955_v45, %v5967_v15 }
 0x18c   : > { %v6011_v63 = vsel %vm1607_vm4, %v1647_v24, %v9347_v8  ;;  %v6016_v12 = vsel %vm1728_vm5, %v1768_v50, %v9349_v62  ;;  %v2296_v58 = vmul.f32 %v4971_v9, %v5980_v5  ;;  %v2297_v56 = vmul.f32 %v4971_v9, %v5973_v61  ;;  %v9353_v24 = vld [vmem:[#allocation43_spill] sm:$0xff] }
 0x18d   : > { %9348 = vst [vmem:[#allocation148_spill] sm:$0xff] %v6011_v63  ;;  %9350 = vst [vmem:[#allocation149_spill] sm:$0xff] %v6016_v12  ;;  %v1990_v43 = vadd.f32 %v1958_v19, %v1922_v39  ;;  %v1991_v16 = vadd.f32 %v1959_v0, %v1923_v1  ;;  %v2260_v45 = vadd.f32 %v2228_v3, %v9351_v42 }
 0x18e   : > { %v2261_v46 = vadd.f32 %v2229_v14, %v9352_v34  ;;  %v2952_v8 = vmul.f32 %v9353_v24, %v5813_v57  ;;  %v2953_v31 = vmul.f32 %v9353_v24, %v5810_v4  ;;  %v2364_v62 = vmul.f32 %v5009_v40, %v5931_v54  ;;  %v9354_v4 = vld [vmem:[#allocation53_spill] sm:$0xff] }
 0x18f   : > { %v2566_v50 = vmul.f32 %v5071_v17, %v5970_v26  ;;  %v2058_v19 = vadd.f32 %v2026_v55, %v1990_v43  ;;  %v2094_v3 = vmul.f32 %v4918_v22, %v6011_v63  ;;  %v2328_v0 = vadd.f32 %v2296_v58, %v2260_v45  ;;  %v9355_v45 = vld [vmem:[#allocation31_spill] sm:$0xff] }
 0x190   : > { %v2329_v34 = vadd.f32 %v2297_v56, %v2261_v46  ;;  %v2984_v42 = vadd.f32 %v2952_v8, %v2916_v52  ;;  %v2985_v39 = vadd.f32 %v2953_v31, %v2917_v32  ;;  %v2162_v57 = vmul.f32 %v9297_v21, %v6016_v12 }
 0x191   : > { %v2598_v1 = vadd.f32 %v2566_v50, %v9354_v4  ;;  %v2126_v14 = vadd.f32 %v2094_v3, %v2058_v19  ;;  %v2396_v9 = vadd.f32 %v2364_v62, %v2328_v0  ;;  %v2432_v40 = vmul.f32 %v5031_v27, %v6011_v63  ;;  %v9357_v62 = vld [vmem:[#allocation75_spill] sm:$0xff]  ;;  %v9358_v0 = vld [vmem:[#allocation50_spill] sm:$0xff] }
 0x192   : > { %v2634_v43 = vmul.f32 %v5074_v20, %v5980_v5  ;;  %v6045_v55 = vmul.f32 %v5034_v30, %v5915_v11  ;;  %v6049_v31 = vmul.f32 %v9355_v45, %v5903_v47  ;;  %v2714_v46 = vadd.f32 %v2682_v59, %v2646_v29 }
 0x193   : > { %v3020_v52 = vmul.f32 %v9291_v38, %v5768_v25  ;;  %v6053_v32 = vadd.f32 %v2162_v57, %v2126_v14  ;;  %v2464_v58 = vadd.f32 %v2432_v40, %v2396_v9  ;;  %v2500_v56 = vmul.f32 %v5034_v30, %v6016_v12  ;;  %v9360_v40 = vld [vmem:[#allocation33_spill] sm:$0xff] }
 0x194   : > { %v2666_v8 = vadd.f32 %v2634_v43, %v2598_v1  ;;  %v2715_v50 = vadd.f32 %v9357_v62, %v2647_v60  ;;  %v2750_v19 = vmul.f32 %v9355_v45, %v5829_v33  ;;  %v2567_v3 = vmul.f32 %v5071_v17, %v5967_v15  ;;  %v9361_v43 = vld [vmem:[#allocation21_spill] sm:$0xff] }
 0x195   : > { %9356 = vst [vmem:[#allocation20_spill] sm:$0xff] %v6053_v32  ;;  %v2904_v29 = vmul.f32 %v9338_v44, %v5970_v26  ;;  %v3052_v59 = vadd.f32 %v3020_v52, %v2984_v42  ;;  %v3053_v57 = vadd.f32 %v9358_v0, %v2985_v39  ;;  %v6065_v4 = vadd.f32 %v2500_v56, %v2464_v58  ;;  %v9362_v42 = vld [vmem:[#allocation34_spill] sm:$0xff] }
 0x196   : > { %v2702_v9 = vmul.f32 %v5012_v48, %v5931_v54  ;;  %v6071_v60 = vmul.f32 %v9360_v40, %v5915_v11  ;;  %v2599_v1 = vadd.f32 %v2567_v3, %v5881_v37  ;;  %v2905_v14 = vmul.f32 %v9338_v44, %v5967_v15 }
 0x197   : > { %9359 = vst [vmem:[#allocation109_spill] sm:$0xff] %v6065_v4  ;;  %v2936_v62 = vadd.f32 %v2904_v29, %v9361_v43  ;;  %v6079_v52 = vmul.f32 %v9362_v42, %v5903_v47  ;;  %v2782_v39 = vadd.f32 %v2750_v19, %v2714_v46  ;;  %v3088_v58 = vmul.f32 %v9362_v42, %v5829_v33  ;;  %v9363_v43 = vld [vmem:[#allocation5_spill] sm:$0xff]  ;;  %v9431_v4 = vld [vmem:[#allocation10_spill] sm:$0xff] }
 0x198   : > { %v2734_v56 = vadd.f32 %v2702_v9, %v2666_v8  ;;  %v2818_v0 = vmul.f32 %v9360_v40, %v5849_v41  ;;  %v2635_v37 = vmul.f32 %v5074_v20, %v5973_v61  ;;  %v2937_v3 = vadd.f32 %v2905_v14, %v5895_v13  ;;  %v9364_v47 = vld [vmem:[#allocation133_spill] sm:$0xff]  ;;  %v9365_v8 = vld [vmem:[#allocation35_spill] sm:$0xff] }
 0x199   : > { %v2972_v29 = vmul.f32 %v9353_v24, %v5980_v5  ;;  %v2783_v15 = vadd.f32 %v9363_v43, %v2715_v50  ;;  %v3120_v26 = vadd.f32 %v3088_v58, %v3052_v59  ;;  %v3121_v46 = vadd.f32 %v9364_v47, %v3053_v57  ;;  %v9366_v5 = vld [vmem:[#allocation38_spill] sm:$0xff] }
 0x19a   : > { %v2770_v33 = vmul.f32 %v9355_v45, %v6011_v63  ;;  %v6096_v19 = vmul.f32 %v9365_v8, %v5915_v11  ;;  %v2667_v9 = vadd.f32 %v2635_v37, %v2599_v1  ;;  %v2973_v25 = vmul.f32 %v9353_v24, %v5973_v61  ;;  %v9368_v37 = vld [vmem:[#allocation115_spill] sm:$0xff] }
 0x19b   : > { %v3004_v13 = vadd.f32 %v2972_v29, %v2936_v62  ;;  %v6100_v14 = vadd.f32 %v2818_v0, %v2782_v39  ;;  %v3156_v50 = vmul.f32 %v9365_v8, %v5849_v41  ;;  %v2059_v59 = vadd.f32 %v5922_v18, %v1991_v16  ;;  %v9369_v0 = vld [vmem:[#allocation134_spill] sm:$0xff]  ;;  %v9399_v11 = vld [vmem:[#allocation59_spill] sm:$0xff] }
 0x19c   : > { %v2802_v47 = vadd.f32 %v2770_v33, %v2734_v56  ;;  %v2397_v57 = vadd.f32 %v5926_v28, %v2329_v34  ;;  %v3005_v58 = vadd.f32 %v2973_v25, %v2937_v3  ;;  %v3040_v43 = vmul.f32 %v9291_v38, %v5931_v54 }
 0x19d   : > { %v6110_v1 = vmul.f32 %v5866_v7, %v9366_v5  ;;  %v6113_v62 = vadd.f32 %v9368_v37, %v2783_v15  ;;  %v6115_v39 = vadd.f32 %v3156_v50, %v3120_v26  ;;  %v6118_v41 = vadd.f32 %v9369_v0, %v3121_v46 }
 0x19e   : > { %v2838_v18 = vmul.f32 %v9360_v40, %v6016_v12  ;;  %v2735_v25 = vadd.f32 %v5941_v53, %v2667_v9  ;;  %v3072_v28 = vadd.f32 %v3040_v43, %v3004_v13  ;;  %v3108_v16 = vmul.f32 %v9362_v42, %v6011_v63  ;;  %v9380_v43 = vld [vmem:[#allocation12_spill] sm:$0xff]  ;;  %v9397_v63 = vld [vmem:[#allocation47_spill] sm:$0xff] }
 0x19f   : > { %9367 = vst [vmem:[#allocation53_spill] sm:$0xff] %v6110_v1  ;;  %v3176_v7 = vmul.f32 %v9365_v8, %v6016_v12  ;;  %v1032_v15 = vadd.f32 1.0, %v5859_v6  ;;  %v1011_v26 = vadd.f32 1.0, %v5883_v35  ;;  %v2127_v34 = vadd.f32 %v5937_v49, %v2059_v59  ;;  %v844_v6 = vpop.f32.mrb[13].mxu1  ;;  %v9374_v59 = vld [vmem:[#allocation146_spill] sm:$0xff] }
 0x1a0   : > { %v6127_v5 = vadd.f32 %v2838_v18, %v2802_v47  ;;  %v3073_v56 = vadd.f32 %v5945_v51, %v3005_v58  ;;  %v2465_v29 = vadd.f32 %v5958_v36, %v2397_v57  ;;  %v9018_v46 = vrot.slane %v6110_v1, 1  ;;  %v9373_v51 = vld [vmem:[#allocation143_spill] sm:$0xff]  ;;  %v9376_v57 = vld [vmem:[#allocation62_spill] sm:$0xff]  ;;  %v6228_v12 = vld [vmem:[%s8886_s5 + $0x18] ss:$0 sm:$0xff] }
 0x1a1   : > { %4360 = vrcp.f32 %v1032_v15  ;;  %v1031_v33 = vadd.f32 1.0, %v5933_v23  ;;  %v6139_v9 = vadd.f32 %v5951_v10, %v2127_v34  ;;  %v3140_v35 = vadd.f32 %v3108_v16, %v3072_v28  ;;  %v9375_v47 = vld [vmem:[#allocation139_spill] sm:$0xff]  ;;  %v9378_v23 = vld [vmem:[#allocation145_spill] sm:$0xff] }
 0x1a2   : > { %9370 = vst [vmem:[#allocation75_spill] sm:$0xff] %v6127_v5  ;;  %4362 = vrcp.f32 %v1011_v26  ;;  %v6142_v49 = vadd.f32 %v6045_v55, %v2465_v29  ;;  %v1014_v13 = vadd.f32 1.0, %v9373_v51  ;;  %v9017_v50 = vrot.slane %v6110_v1, 2  ;;  %v9381_v55 = vld [vmem:[#allocation22_spill] sm:$0xff]  ;;  %v9382_v18 = vld [vmem:[#allocation147_spill] sm:$0xff]  ;;  %v9430_v5 = vld [vmem:[#allocation125_spill] sm:$0xff] }
 0x1a3   : > { %9371 = vst [vmem:[#allocation50_spill] sm:$0xff] %v6139_v9  ;;  %v1034_v36 = vadd.f32 1.0, %v9374_v59  ;;  %v6149_v58 = vadd.f32 %v9376_v57, %v9375_v47  ;;  %v6153_v10 = vadd.f32 %v9376_v57, %v9378_v23  ;;  %v6157_v37 = vmul.f32 %v9380_v43, %v6110_v1  ;;  %v9385_v51 = vld [vmem:[#allocation26_spill] sm:$0xff]  ;;  %v9435_v9 = vld [vmem:[#allocation19_spill] sm:$0xff] }
 0x1a4   : > { %9372 = vst [vmem:[#allocation21_spill] sm:$0xff] %v6142_v49  ;;  %v6161_v0 = vmul.f32 %v9381_v55, %v6110_v1  ;;  %v1013_v28 = vadd.f32 1.0, %v9382_v18  ;;  %v6166_v16 = vadd.f32 %v9376_v57, %v6032_v2  ;;  %v1712_v15 = vsel %vm1607_vm4, %v9018_v46, 0.0 }
 0x1a5   : > { %9377 = vst [vmem:[#allocation34_spill] sm:$0xff] %v6149_v58  ;;  %9379 = vst [vmem:[#allocation5_spill] sm:$0xff] %v6153_v10  ;;  %v6173_v26 = vmul.f32 %v5012_v48, %v6110_v1  ;;  %4364 = vrcp.f32 %v1031_v33  ;;  %v6176_v34 = vadd.f32 %v9376_v57, %v844_v6  ;;  %v6180_v29 = vmul.f32 %v9291_v38, %v6110_v1 }
 0x1a6   : > { %9383 = vst [vmem:[#allocation133_spill] sm:$0xff] %v6166_v16  ;;  %v6184_v2 = vmul.f32 %v9385_v51, %v6110_v1  ;;  %4366 = vrcp.f32 %v1014_v13  ;;  %v4061_v59 = vmul.f32 -1.442695, %v6149_v58  ;;  %v6187_v47 = vadd.f32 %v3176_v7, %v3140_v35  ;;  %v9389_v35 = vld [vmem:[#allocation119_spill] sm:$0xff] }
 0x1a7   : > { %9384 = vst [vmem:[#allocation35_spill] sm:$0xff] %v6176_v34  ;;  %v1833_v33 = vsel %vm1728_vm5, %v9017_v50, 0.0  ;;  %4368 = vrcp.f32 %v1034_v36  ;;  %v4081_v6 = vmul.f32 -1.442695, %v6153_v10  ;;  %v6194_v57 = vmul.f32 %v4918_v22, %v1712_v15 }
 0x1a8   : > { %9386 = vst [vmem:[#allocation38_spill] sm:$0xff] %v6187_v47  ;;  %v6197_v23 = vmul.f32 %v5031_v27, %v1712_v15  ;;  %4370 = vrcp.f32 %v1013_v28  ;;  %v4060_v13 = vmul.f32 -1.442695, %v6166_v16  ;;  %v2803_v18 = vadd.f32 %v6049_v31, %v2735_v25 }
 0x1a9   : > { %9387 = vst [vmem:[#allocation115_spill] sm:$0xff] %v6194_v57  ;;  %v3141_v7 = vadd.f32 %v6079_v52, %v3073_v56  ;;  %4372 = vpow2.f32 %v9389_v35  ;;  %v4080_v50 = vmul.f32 -1.442695, %v6176_v34  ;;  %v6205_v36 = vmul.f32 %v9297_v21, %v1833_v33  ;;  %v9396_v56 = vld [vmem:[#allocation36_spill] sm:$0xff]  ;;  %v9424_v57 = vld [vmem:[#allocation18_spill] sm:$0xff] }
 0x1aa   : > { %9388 = vst [vmem:[#allocation134_spill] sm:$0xff] %v6197_v23  ;;  %v6208_v46 = vmul.f32 %v5034_v30, %v1833_v33  ;;  %v6211_v53 = vmul.f32 %v9355_v45, %v1712_v15  ;;  %4374 = vpow2.f32 %v4061_v59  ;;  %v6214_v3 = vmul.f32 %v9360_v40, %v1833_v33 }
 0x1ab   : > { %9390 = vst [vmem:[#allocation143_spill] sm:$0xff] %v6205_v36  ;;  %v4361_v28 = vpop.eup %4360  ;;  %v6217_v31 = vmul.f32 %v9362_v42, %v1712_v15  ;;  %v6220_v52 = vmul.f32 %v9365_v8, %v1833_v33  ;;  %4376 = vpow2.f32 %v4081_v6  ;;  %v6223_v35 = vmul.f32 %v9396_v56, %v1712_v15 }
 0x1ac   : > { %9391 = vst [vmem:[#allocation146_spill] sm:$0xff] %v6208_v46  ;;  %9392 = vst [vmem:[#allocation139_spill] sm:$0xff] %v6211_v53  ;;  %v4363_v25 = vpop.eup %4362  ;;  %v6231_v59 = vmul.f32 %v6228_v12, %v1833_v33  ;;  %v6234_v61 = vmul.f32 %v4361_v28, %v9397_v63  ;;  %4378 = vpow2.f32 %v4060_v13  ;;  %v6240_v6 = vadd.f32 %v6071_v60, %v2803_v18  ;;  %v9422_v53 = vld [vmem:[#allocation7_spill] sm:$0xff] }
 0x1ad   : > { %9393 = vst [vmem:[#allocation62_spill] sm:$0xff] %v6214_v3  ;;  %9394 = vst [vmem:[#allocation145_spill] sm:$0xff] %v6217_v31  ;;  %v6237_v54 = vmul.f32 %v4363_v25, %v9399_v11  ;;  %v6243_v15 = vadd.f32 %v6096_v19, %v3141_v7  ;;  %4380 = vpow2.f32 %v4080_v50  ;;  %v9420_v36 = vrot.slane %v6110_v1, 6 }
 0x1ae   : > { %9395 = vst [vmem:[#allocation147_spill] sm:$0xff] %v6220_v52  ;;  %9398 = vst [vmem:[#allocation119_spill] sm:$0xff] %v6234_v61  ;;  %v9029_v33 = vrot.slane %v6234_v61, 1  ;;  %v9030_v63 = vrot.slane %v6234_v61, 2  ;;  %v6253_v11 = vmul.f32 %v9380_v43, %v6234_v61  ;;  %v6257_v60 = vmul.f32 %v9381_v55, %v6234_v61 }
 0x1af   : > { %9400 = vst [vmem:[#allocation47_spill] sm:$0xff] %v6237_v54  ;;  %9401 = vst [vmem:[#allocation59_spill] sm:$0xff] %v6240_v6  ;;  %v6249_v28 = vpop.eup %4364  ;;  %v6261_v19 = vmul.f32 %v5012_v48, %v6234_v61  ;;  %v6265_v50 = vmul.f32 %v9291_v38, %v6234_v61  ;;  %v6277_v25 = vmul.f32 %v9385_v51, %v6234_v61  ;;  %v1378_v16 = vrot.slane %v6237_v54, 6 }
 0x1b0   : > { %9402 = vst [vmem:[#allocation150_spill] sm:$0xff] %v6243_v15  ;;  %9403 = vst [vmem:[#allocation151_spill] sm:$0xff] %v6253_v11  ;;  %v6267_v13 = vpop.eup %4366  ;;  %v1722_v18 = vsel %vm1607_vm4, %v9029_v33, 0.0  ;;  %v1843_v7 = vsel %vm1728_vm5, %v9030_v63, 0.0  ;;  %v9428_v47 = vrot.slane %v6110_v1, 2 }
 0x1b1   : > { %9404 = vst [vmem:[#allocation152_spill] sm:$0xff] %v6257_v60  ;;  %9405 = vst [vmem:[#allocation153_spill] sm:$0xff] %v6261_v19  ;;  %v6280_v34 = vpop.eup %4368  ;;  %v6283_v10 = vmul.f32 %v4918_v22, %v1722_v18  ;;  %v6286_v58 = vmul.f32 %v9297_v21, %v1843_v7  ;;  %v6289_v33 = vmul.f32 %v5031_v27, %v1722_v18  ;;  %v6363_v60 = vpop.f32.mrb[14].mxu0 }
 0x1b2   : > { %9406 = vst [vmem:[#allocation154_spill] sm:$0xff] %v6265_v50  ;;  %9407 = vst [vmem:[#allocation155_spill] sm:$0xff] %v6277_v25  ;;  %v6292_v52 = vmul.f32 %v5034_v30, %v1843_v7  ;;  %v6294_v63 = vpop.eup %4370  ;;  %v6297_v31 = vmul.f32 %v9355_v45, %v1722_v18  ;;  %v6300_v3 = vmul.f32 %v9360_v40, %v1843_v7  ;;  %v9427_v50 = vrot.slane %v6110_v1, 1 }
 0x1b3   : > { %9408 = vst [vmem:[#allocation156_spill] sm:$0xff] %v6283_v10  ;;  %9409 = vst [vmem:[#allocation157_spill] sm:$0xff] %v6286_v58  ;;  %v6303_v46 = vmul.f32 %v9362_v42, %v1722_v18  ;;  %v6306_v10 = vmul.f32 %v9365_v8, %v1843_v7  ;;  %v6308_v58 = vpop.eup %4372 }
 0x1b4   : > { %9410 = vst [vmem:[#allocation158_spill] sm:$0xff] %v6289_v33  ;;  %9411 = vst [vmem:[#allocation159_spill] sm:$0xff] %v6292_v52  ;;  %v6311_v33 = vmul.f32 %v9396_v56, %v1722_v18  ;;  %v6314_v52 = vmul.f32 %v6228_v12, %v1843_v7  ;;  %v1741_v18 = vrot.slane %v6237_v54, 2 }
 0x1b5   : > { %9412 = vst [vmem:[#allocation160_spill] sm:$0xff] %v6294_v63  ;;  %9413 = vst [vmem:[#allocation161_spill] sm:$0xff] %v6297_v31  ;;  %v6319_v31 = vsel %vm1365_vm2, %v1378_v16, %v9420_v36 }
 0x1b6   : > { %9414 = vst [vmem:[#allocation162_spill] sm:$0xff] %v6300_v3  ;;  %9415 = vst [vmem:[#allocation163_spill] sm:$0xff] %v6303_v46  ;;  %v6322_v3 = vsel %vm1365_vm2, 0.0, %v1378_v16  ;;  %v6324_v46 = vpop.eup %4374  ;;  %v1867_v36 = vmul.f32 %v9422_v53, %v6319_v31  ;;  %v2008_v16 = vmul.f32 %v9380_v43, %v6237_v54  ;;  %v2211_v63 = vmul.f32 %v9424_v57, %v6319_v31 }
 0x1b7   : > { %9416 = vst [vmem:[#allocation164_spill] sm:$0xff] %v6306_v10  ;;  %9417 = vst [vmem:[#allocation165_spill] sm:$0xff] %v6308_v58  ;;  %v1499_v10 = vrot.slane %v6237_v54, 7  ;;  %v1620_v58 = vrot.slane %v6237_v54, 1  ;;  %v1866_v7 = vmul.f32 %v9422_v53, %v6322_v3  ;;  %v6331_v23 = vpop.eup %4376  ;;  %v6355_v6 = vsel %vm1728_vm5, %v1741_v18, %v9428_v47  ;;  %v9433_v47 = vld [vmem:[#allocation24_spill] sm:$0xff] }
 0x1b8   : > { %9418 = vst [vmem:[#allocation166_spill] sm:$0xff] %v6311_v33  ;;  %9419 = vst [vmem:[#allocation167_spill] sm:$0xff] %v6314_v52  ;;  %v6341_v52 = vpop.eup %4378  ;;  %v9426_v33 = vrot.slane %v6110_v1, 7  ;;  %v1905_v49 = vadd.f32 %v9430_v5, %v1867_v36  ;;  %v9434_v1 = vld [vmem:[#allocation118_spill] sm:$0xff] }
 0x1b9   : > { %9421 = vst [vmem:[#allocation168_spill] sm:$0xff] %v6324_v46  ;;  %9423 = vst [vmem:[#allocation169_spill] sm:$0xff] %v6331_v23  ;;  %v2210_v46 = vmul.f32 %v9424_v57, %v6322_v3  ;;  %v1591_v23 = vsel %vm1486_vm3, 0.0, %v1499_v10  ;;  %v6350_v15 = vsel %vm1607_vm4, %v1620_v58, %v9427_v50  ;;  %v6357_v19 = vpop.eup %4380  ;;  %v2144_v50 = vmul.f32 %v9297_v21, %v6355_v6 }
 0x1ba   : > { %9425 = vst [vmem:[#allocation170_spill] sm:$0xff] %v6341_v52  ;;  %v1501_v25 = vsel %vm1486_vm3, %v1499_v10, %v9426_v33  ;;  %9429 = vst [vmem:[#allocation171_spill] sm:$0xff] %v6357_v19  ;;  %v1904_v52 = vadd.f32 %v9430_v5, %v1866_v7  ;;  %v1940_v33 = vmul.f32 %v9431_v4, %v1591_v23 }
 0x1bb   : > { %v1941_v10 = vmul.f32 %v9431_v4, %v1501_v25  ;;  %9432 = vst [vmem:[#allocation172_spill] sm:$0xff] %v6363_v60  ;;  %v2076_v58 = vmul.f32 %v4918_v22, %v6350_v15  ;;  %v2242_v18 = vadd.f32 %v2210_v46, %v9433_v47  ;;  %v2243_v19 = vadd.f32 %v2211_v63, %v9434_v1 }
 0x1bc   : > { %v1972_v11 = vadd.f32 %v1940_v33, %v1904_v52  ;;  %v2278_v36 = vmul.f32 %v9435_v9, %v1591_v23  ;;  %v2279_v32 = vmul.f32 %v9435_v9, %v1501_v25  ;;  %v2346_v57 = vmul.f32 %v9381_v55, %v6237_v54  ;;  %v9436_v33 = vld [vmem:[#allocation136_spill] sm:$0xff] }
 0x1bd   : > { %v1973_v7 = vadd.f32 %v1941_v10, %v1905_v49  ;;  %v2414_v60 = vmul.f32 %v5031_v27, %v6350_v15  ;;  %v2482_v5 = vmul.f32 %v5034_v30, %v6355_v6  ;;  %v2548_v46 = vmul.f32 %v5071_v17, %v6322_v3 }
 0x1be   : > { %v2040_v47 = vadd.f32 %v2008_v16, %v1972_v11  ;;  %v2310_v49 = vadd.f32 %v2278_v36, %v2242_v18  ;;  %v2311_v52 = vadd.f32 %v2279_v32, %v2243_v19  ;;  %v2549_v63 = vmul.f32 %v5071_v17, %v6319_v31  ;;  %v9437_v11 = vld [vmem:[#allocation137_spill] sm:$0xff] }
 0x1bf   : > { %v6382_v1 = vadd.f32 %v6157_v37, %v1973_v7  ;;  %v2580_v10 = vadd.f32 %v2548_v46, %v9436_v33  ;;  %v2616_v55 = vmul.f32 %v5074_v20, %v1591_v23  ;;  %v2617_v27 = vmul.f32 %v5074_v20, %v1501_v25 }
 0x1c0   : > { %v2108_v9 = vadd.f32 %v2076_v58, %v2040_v47  ;;  %v2378_v30 = vadd.f32 %v2346_v57, %v2310_v49  ;;  %v6390_v21 = vadd.f32 %v6161_v0, %v2311_v52  ;;  %v2684_v37 = vmul.f32 %v5012_v48, %v6237_v54 }
 0x1c1   : > { %v2581_v16 = vadd.f32 %v2549_v63, %v9437_v11  ;;  %v2648_v32 = vadd.f32 %v2616_v55, %v2580_v10  ;;  %v2752_v19 = vmul.f32 %v9355_v45, %v6350_v15  ;;  %v2820_v18 = vmul.f32 %v9360_v40, %v6355_v6  ;;  %v9440_v10 = vld [vmem:[#allocation44_spill] sm:$0xff]  ;;  %v9442_v11 = vld [vmem:[#allocation45_spill] sm:$0xff] }
 0x1c2   : > { %v6399_v7 = vadd.f32 %v2144_v50, %v2108_v9  ;;  %v2446_v36 = vadd.f32 %v2414_v60, %v2378_v30  ;;  %v2886_v57 = vmul.f32 %v9338_v44, %v6322_v3  ;;  %v2887_v0 = vmul.f32 %v9338_v44, %v6319_v31 }
 0x1c3   : > { %v2649_v58 = vadd.f32 %v2617_v27, %v2581_v16  ;;  %v2716_v46 = vadd.f32 %v2684_v37, %v2648_v32  ;;  %v2954_v47 = vmul.f32 %v9353_v24, %v1591_v23  ;;  %v2955_v55 = vmul.f32 %v9353_v24, %v1501_v25 }
 0x1c4   : > { %9438 = vst [vmem:[#allocation24_spill] sm:$0xff] %v6399_v7  ;;  %v6407_v49 = vadd.f32 %v2482_v5, %v2446_v36  ;;  %v2918_v52 = vadd.f32 %v2886_v57, %v6100_v14  ;;  %v2919_v9 = vadd.f32 %v2887_v0, %v6113_v62  ;;  %v3022_v30 = vmul.f32 %v9291_v38, %v6237_v54  ;;  %v9446_v0 = vld [vmem:[#allocation27_spill] sm:$0xff] }
 0x1c5   : > { %v6414_v60 = vadd.f32 %v6173_v26, %v2649_v58  ;;  %v2784_v50 = vadd.f32 %v2752_v19, %v2716_v46  ;;  %v3090_v27 = vmul.f32 %v9362_v42, %v6350_v15  ;;  %v3158_v63 = vmul.f32 %v9365_v8, %v6355_v6 }
 0x1c6   : > { %9439 = vst [vmem:[#allocation118_spill] sm:$0xff] %v6407_v49  ;;  %v2986_v33 = vadd.f32 %v2954_v47, %v2918_v52  ;;  %v2987_v5 = vadd.f32 %v2955_v55, %v2919_v9  ;;  %v3224_v14 = vmul.f32 %v9440_v10, %v6322_v3  ;;  %v3225_v62 = vmul.f32 %v9440_v10, %v6319_v31  ;;  %v9465_v49 = vld [vmem:[#allocation151_spill] sm:$0xff] }
 0x1c7   : > { %v6424_v37 = vadd.f32 %v2820_v18, %v2784_v50  ;;  %v3292_v26 = vmul.f32 %v9442_v11, %v1591_v23  ;;  %v3293_v16 = vmul.f32 %v9442_v11, %v1501_v25  ;;  %v3360_v32 = vmul.f32 %v9385_v51, %v6237_v54  ;;  %v9444_v23 = vld [vmem:[#allocation28_spill] sm:$0xff]  ;;  %v9463_v54 = vld [vmem:[#allocation29_spill] sm:$0xff] }
 0x1c8   : > { %v3054_v19 = vadd.f32 %v3022_v30, %v2986_v33  ;;  %v6431_v36 = vadd.f32 %v6180_v29, %v2987_v5  ;;  %v3256_v57 = vadd.f32 %v3224_v14, %v6115_v39  ;;  %v3257_v3 = vadd.f32 %v3225_v62, %v6118_v41  ;;  %v9448_v39 = vld [vmem:[#allocation52_spill] sm:$0xff] }
 0x1c9   : > { %9441 = vst [vmem:[#allocation136_spill] sm:$0xff] %v6424_v37  ;;  %v3428_v31 = vmul.f32 %v9396_v56, %v6350_v15  ;;  %v3496_v18 = vmul.f32 %v6228_v12, %v6355_v6  ;;  %v6441_v25 = vmul.f32 %v6249_v28, %v9444_v23  ;;  %v6445_v58 = vmul.f32 %v6267_v13, %v9446_v0 }
 0x1ca   : > { %9443 = vst [vmem:[#allocation137_spill] sm:$0xff] %v6431_v36  ;;  %v3122_v29 = vadd.f32 %v3090_v27, %v3054_v19  ;;  %v3324_v46 = vadd.f32 %v3292_v26, %v3256_v57  ;;  %v3325_v47 = vadd.f32 %v3293_v16, %v3257_v3  ;;  %v6449_v41 = vmul.f32 %v6280_v34, %v9448_v39  ;;  %v6487_v19 = vpop.f32.mrb[15].mxu0  ;;  %v9457_v39 = vld [vmem:[#allocation125_spill] sm:$0xff] }
 0x1cb   : > { %9445 = vst [vmem:[#allocation44_spill] sm:$0xff] %v6441_v25  ;;  %9447 = vst [vmem:[#allocation28_spill] sm:$0xff] %v6445_v58  ;;  %v1408_v15 = vrot.slane %v6441_v25, 6  ;;  %v1529_v55 = vrot.slane %v6441_v25, 7  ;;  %v1650_v6 = vrot.slane %v6441_v25, 1  ;;  %v1771_v28 = vrot.slane %v6441_v25, 2 }
 0x1cc   : > { %9449 = vst [vmem:[#allocation27_spill] sm:$0xff] %v6449_v41  ;;  %v6455_v52 = vadd.f32 %v3158_v63, %v3122_v29  ;;  %v3392_v9 = vadd.f32 %v3360_v32, %v3324_v46  ;;  %v3393_v13 = vadd.f32 %v6184_v2, %v3325_v47  ;;  %v2028_v30 = vmul.f32 %v9380_v43, %v6441_v25  ;;  %v9456_v46 = vld [vmem:[#allocation17_spill] sm:$0xff] }
 0x1cd   : > { %v9451_v50 = vrot.slane %v6234_v61, 6  ;;  %v6466_v27 = vsel %vm1365_vm2, 0.0, %v1408_v15  ;;  %v9452_v33 = vrot.slane %v6234_v61, 7  ;;  %v6474_v63 = vsel %vm1486_vm3, 0.0, %v1529_v55  ;;  %9455 = vst [vmem:[#allocation173_spill] sm:$0xff] %v6487_v19 }
 0x1ce   : > { %9450 = vst [vmem:[#allocation52_spill] sm:$0xff] %v6455_v52  ;;  %v3460_v2 = vadd.f32 %v3428_v31, %v3392_v9  ;;  %v3461_v14 = vadd.f32 %v6223_v35, %v3393_v13  ;;  %v9453_v62 = vrot.slane %v6234_v61, 1  ;;  %v9454_v16 = vrot.slane %v6234_v61, 2  ;;  %v9459_v13 = vld [vmem:[#allocation19_spill] sm:$0xff]  ;;  %v9464_v52 = vld [vmem:[#allocation30_spill] sm:$0xff] }
 0x1cf   : > { %v6463_v34 = vsel %vm1365_vm2, %v1408_v15, %v9451_v50  ;;  %v6471_v5 = vsel %vm1486_vm3, %v1529_v55, %v9452_v33  ;;  %v1886_v57 = vmul.f32 %v9422_v53, %v6466_v27  ;;  %v1960_v35 = vmul.f32 %v9431_v4, %v6474_v63 }
 0x1d0   : > { %v6480_v26 = vsel %vm1607_vm4, %v1650_v6, %v9453_v62  ;;  %v6485_v32 = vsel %vm1728_vm5, %v1771_v28, %v9454_v16  ;;  %v1887_v3 = vmul.f32 %v9422_v53, %v6463_v34  ;;  %v1961_v31 = vmul.f32 %v9431_v4, %v6471_v5  ;;  %v9458_v6 = vld [vmem:[#allocation18_spill] sm:$0xff]  ;;  %v9460_v62 = vld [vmem:[#allocation20_spill] sm:$0xff] }
 0x1d1   : > { %v6497_v23 = vadd.f32 %v3496_v18, %v3460_v2  ;;  %v6500_v0 = vadd.f32 %v6231_v59, %v3461_v14  ;;  %v2096_v29 = vmul.f32 %v4918_v22, %v6480_v26  ;;  %v2164_v47 = vmul.f32 %v9456_v46, %v6485_v32 }
 0x1d2   : > { %v1924_v15 = vadd.f32 %v9457_v39, %v1886_v57  ;;  %v1925_v55 = vadd.f32 %v9457_v39, %v1887_v3  ;;  %v2230_v28 = vmul.f32 %v9458_v6, %v6466_v27  ;;  %v2231_v18 = vmul.f32 %v9458_v6, %v6463_v34  ;;  %v9461_v57 = vld [vmem:[#allocation50_spill] sm:$0xff] }
 0x1d3   : > { %v4090_v9 = vmul.f32 -1.442695, %v6497_v23  ;;  %v4091_v59 = vmul.f32 -1.442695, %v6500_v0  ;;  %v2298_v50 = vmul.f32 %v9459_v13, %v6474_v63  ;;  %v2299_v33 = vmul.f32 %v9459_v13, %v6471_v5  ;;  %v9462_v39 = vld [vmem:[#allocation22_spill] sm:$0xff] }
 0x1d4   : > { %v1992_v2 = vadd.f32 %v1960_v35, %v1924_v15  ;;  %v1993_v14 = vadd.f32 %v1961_v31, %v1925_v55  ;;  %v2262_v16 = vadd.f32 %v2230_v28, %v9460_v62  ;;  %v2263_v3 = vadd.f32 %v2231_v18, %v9461_v57 }
 0x1d5   : > { %4382 = vpow2.f32 %v4090_v9  ;;  %v2366_v61 = vmul.f32 %v9462_v39, %v6441_v25  ;;  %v2434_v19 = vmul.f32 %v9463_v54, %v6480_v26  ;;  %v2502_v36 = vmul.f32 %v9464_v52, %v6485_v32 }
 0x1d6   : > { %4384 = vpow2.f32 %v4091_v59  ;;  %v2060_v37 = vadd.f32 %v2028_v30, %v1992_v2  ;;  %v6527_v7 = vadd.f32 %v9465_v49, %v1993_v14  ;;  %v2330_v35 = vadd.f32 %v2298_v50, %v2262_v16  ;;  %v9467_v30 = vld [vmem:[#allocation152_spill] sm:$0xff]  ;;  %v9470_v14 = vld [vmem:[#allocation21_spill] sm:$0xff] }
 0x1d7   : > { %v2331_v31 = vadd.f32 %v2299_v33, %v2263_v3  ;;  %v2568_v15 = vmul.f32 %v5071_v17, %v6466_v27  ;;  %v2569_v55 = vmul.f32 %v5071_v17, %v6463_v34  ;;  %v2636_v28 = vmul.f32 %v5074_v20, %v6474_v63  ;;  %v9469_v33 = vld [vmem:[#allocation109_spill] sm:$0xff] }
 0x1d8   : > { %9466 = vst [vmem:[#allocation125_spill] sm:$0xff] %v6527_v7  ;;  %v2128_v18 = vadd.f32 %v2096_v29, %v2060_v37  ;;  %v2398_v9 = vadd.f32 %v2366_v61, %v2330_v35  ;;  %v2637_v59 = vmul.f32 %v5074_v20, %v6471_v5  ;;  %v2704_v49 = vmul.f32 %v5012_v48, %v6441_v25 }
 0x1d9   : > { %v6540_v50 = vadd.f32 %v9467_v30, %v2331_v31  ;;  %v2600_v2 = vadd.f32 %v2568_v15, %v9469_v33  ;;  %v2601_v62 = vadd.f32 %v2569_v55, %v9470_v14  ;;  %v2772_v16 = vmul.f32 %v9355_v45, %v6480_v26  ;;  %v9473_v30 = vld [vmem:[#allocation75_spill] sm:$0xff]  ;;  %v9474_v33 = vld [vmem:[#allocation153_spill] sm:$0xff] }
 0x1da   : > { %v6546_v57 = vadd.f32 %v2164_v47, %v2128_v18  ;;  %v2466_v37 = vadd.f32 %v2434_v19, %v2398_v9  ;;  %v2840_v61 = vmul.f32 %v9360_v40, %v6485_v32  ;;  %v2906_v29 = vmul.f32 %v9338_v44, %v6466_v27 }
 0x1db   : > { %9468 = vst [vmem:[#allocation20_spill] sm:$0xff] %v6540_v50  ;;  %v2668_v3 = vadd.f32 %v2636_v28, %v2600_v2  ;;  %v2669_v35 = vadd.f32 %v2637_v59, %v2601_v62  ;;  %v2907_v31 = vmul.f32 %v9338_v44, %v6463_v34  ;;  %v2974_v15 = vmul.f32 %v9353_v24, %v6474_v63  ;;  %v9476_v59 = vld [vmem:[#allocation59_spill] sm:$0xff] }
 0x1dc   : > { %9471 = vst [vmem:[#allocation50_spill] sm:$0xff] %v6546_v57  ;;  %v6556_v55 = vadd.f32 %v2502_v36, %v2466_v37  ;;  %v2938_v47 = vadd.f32 %v2906_v29, %v9473_v30  ;;  %v2975_v19 = vmul.f32 %v9353_v24, %v6471_v5  ;;  %v3042_v18 = vmul.f32 %v9291_v38, %v6441_v25  ;;  %v9478_v57 = vld [vmem:[#allocation150_spill] sm:$0xff] }
 0x1dd   : > { %v2736_v9 = vadd.f32 %v2704_v49, %v2668_v3  ;;  %v6564_v28 = vadd.f32 %v9474_v33, %v2669_v35  ;;  %v2939_v2 = vadd.f32 %v2907_v31, %v9476_v59  ;;  %v3110_v14 = vmul.f32 %v9362_v42, %v6480_v26  ;;  %v9477_v59 = vld [vmem:[#allocation38_spill] sm:$0xff] }
 0x1de   : > { %9472 = vst [vmem:[#allocation151_spill] sm:$0xff] %v6556_v55  ;;  %v3006_v62 = vadd.f32 %v2974_v15, %v2938_v47  ;;  %v3178_v36 = vmul.f32 %v9365_v8, %v6485_v32  ;;  %v3244_v37 = vmul.f32 %v9440_v10, %v6466_v27  ;;  %v3245_v29 = vmul.f32 %v9440_v10, %v6463_v34  ;;  %v9480_v34 = vld [vmem:[#allocation154_spill] sm:$0xff] }
 0x1df   : > { %9475 = vst [vmem:[#allocation152_spill] sm:$0xff] %v6564_v28  ;;  %v4383_v30 = vpop.eup %4382  ;;  %v2804_v49 = vadd.f32 %v2772_v16, %v2736_v9  ;;  %v3007_v3 = vadd.f32 %v2975_v19, %v2939_v2  ;;  %v3312_v35 = vmul.f32 %v9442_v11, %v6474_v63  ;;  %v3313_v31 = vmul.f32 %v9442_v11, %v6471_v5  ;;  %v6593_v9 = vpop.f32.mrb[14].mxu1  ;;  %v9482_v2 = vld [vmem:[#allocation46_spill] sm:$0xff] }
 0x1e0   : > { %v4385_v33 = vpop.eup %4384  ;;  %v3656_v15 = vadd.f32 1.0, %v4383_v30  ;;  %v3074_v47 = vadd.f32 %v3042_v18, %v3006_v62  ;;  %v3276_v55 = vadd.f32 %v3244_v37, %v9477_v59  ;;  %v3277_v50 = vadd.f32 %v3245_v29, %v9478_v57  ;;  %9481 = vst [vmem:[#allocation21_spill] sm:$0xff] %v6593_v9  ;;  %v9514_v9 = vld [vmem:[#allocation143_spill] sm:$0xff] }
 0x1e1   : > { %v3657_v27 = vadd.f32 1.0, %v4385_v33  ;;  %v6581_v7 = vadd.f32 %v2840_v61, %v2804_v49  ;;  %v6584_v28 = vadd.f32 %v9480_v34, %v3007_v3  ;;  %v3380_v16 = vmul.f32 %v9385_v51, %v6441_v25  ;;  %v9486_v34 = vld [vmem:[#allocation167_spill] sm:$0xff] }
 0x1e2   : > { %4386 = vrcp.f32 %v3656_v15  ;;  %v3142_v63 = vadd.f32 %v3110_v14, %v3074_v47  ;;  %v3344_v19 = vadd.f32 %v3312_v35, %v3276_v55  ;;  %v3345_v5 = vadd.f32 %v3313_v31, %v3277_v50  ;;  %v9484_v14 = vld [vmem:[#allocation155_spill] sm:$0xff] }
 0x1e3   : > { %9479 = vst [vmem:[#allocation109_spill] sm:$0xff] %v6581_v7  ;;  %4388 = vrcp.f32 %v3657_v27  ;;  %v3448_v18 = vmul.f32 %v9396_v56, %v6480_v26  ;;  %v3516_v57 = vmul.f32 %v6228_v12, %v6485_v32  ;;  %vm3786_vm6 = vcmp.lt.s32.totalorder %v9482_v2, 4  ;;  %v9937_v2 = vld [vmem:[#allocation7_spill] sm:$0xff] }
 0x1e4   : > { %v6596_v62 = vadd.f32 %v3178_v36, %v3142_v63  ;;  %v3412_v37 = vadd.f32 %v3380_v16, %v3344_v19  ;;  %v3413_v55 = vadd.f32 %v9484_v14, %v3345_v5  ;;  %v9044_v29 = vrot.slane %v6445_v58, 1  ;;  %v9485_v36 = vld [vmem:[#allocation166_spill] sm:$0xff]  ;;  %v6654_v14 = vpop.f32.mrb[15].mxu1 }
 0x1e5   : > { %v9043_v26 = vrot.slane %v6445_v58, 2  ;;  %v6604_v32 = vmul.f32 %v9380_v43, %v6445_v58  ;;  %v6608_v30 = vmul.f32 %v9462_v39, %v6445_v58  ;;  %v6613_v35 = vmul.f32 %v5012_v48, %v6445_v58  ;;  %9491 = vst [vmem:[#allocation154_spill] sm:$0xff] %v6654_v14 }
 0x1e6   : > { %9483 = vst [vmem:[#allocation75_spill] sm:$0xff] %v6596_v62  ;;  %v3480_v49 = vadd.f32 %v3448_v18, %v3412_v37  ;;  %v3481_v3 = vadd.f32 %v9485_v36, %v3413_v55  ;;  %v6617_v31 = vmul.f32 %v9291_v38, %v6445_v58  ;;  %v1713_v33 = vsel %vm1607_vm4, %v9044_v29, 0.0 }
 0x1e7   : > { %v1834_v15 = vsel %vm1728_vm5, %v9043_v26, 0.0  ;;  %v6628_v47 = vmul.f32 %v9385_v51, %v6445_v58  ;;  %v6637_v63 = vmul.f32 %v4918_v22, %v1713_v33  ;;  %v6643_v5 = vmul.f32 %v9463_v54, %v1713_v33 }
 0x1e8   : > { %v6631_v27 = vadd.f32 %v3516_v57, %v3480_v49  ;;  %v6634_v16 = vadd.f32 %v9486_v34, %v3481_v3  ;;  %v6640_v19 = vmul.f32 %v9456_v46, %v1834_v15  ;;  %v6646_v18 = vmul.f32 %v9464_v52, %v1834_v15  ;;  %v4232_v34 = vpop.f32.mrb[16].mxu1 }
 0x1e9   : > { %v6649_v37 = vmul.f32 %v9355_v45, %v1713_v33  ;;  %v6652_v57 = vmul.f32 %v9360_v40, %v1834_v15  ;;  %v6663_v36 = vmul.f32 %v9362_v42, %v1713_v33  ;;  %v6666_v3 = vmul.f32 %v9365_v8, %v1834_v15  ;;  %v864_v61 = vpop.f32.mrb[17].mxu1 }
 0x1ea   : > { %9487 = vst [vmem:[#allocation153_spill] sm:$0xff] %v6640_v19  ;;  %9488 = vst [vmem:[#allocation59_spill] sm:$0xff] %v6646_v18  ;;  %v4110_v55 = vmul.f32 -1.442695, %v6631_v27  ;;  %v4111_v49 = vmul.f32 -1.442695, %v6634_v16  ;;  %v6669_v59 = vmul.f32 %v9396_v56, %v1713_v33  ;;  %v6672_v26 = vmul.f32 %v6228_v12, %v1834_v15 }
 0x1eb   : > { %9489 = vst [vmem:[#allocation38_spill] sm:$0xff] %v6649_v37  ;;  %9490 = vst [vmem:[#allocation150_spill] sm:$0xff] %v6652_v57  ;;  %v9046_v50 = vrot.slane %v6449_v41, 1  ;;  %v6679_v7 = vmul.f32 %v9380_v43, %v6449_v41  ;;  %v6683_v33 = vmul.f32 %v9462_v39, %v6449_v41  ;;  %v4235_v34 = vpop.f32.mrb[18].mxu1 }
 0x1ec   : > { %9492 = vst [vmem:[#allocation155_spill] sm:$0xff] %v6663_v36  ;;  %9493 = vst [vmem:[#allocation166_spill] sm:$0xff] %v6666_v3  ;;  %v4387_v25 = vpop.eup %4386  ;;  %4390 = vpow2.f32 %v4110_v55  ;;  %v6693_v55 = vmul.f32 %v5012_v48, %v6449_v41  ;;  %v874_v62 = vpop.f32.mrb[19].mxu1 }
 0x1ed   : > { %9494 = vst [vmem:[#allocation167_spill] sm:$0xff] %v6669_v59  ;;  %9495 = vst [vmem:[#allocation174_spill] sm:$0xff] %v6672_v26  ;;  %v4389_v15 = vpop.eup %4388  ;;  %v3752_v29 = vmul.f32 %v4387_v25, %v6497_v23  ;;  %4392 = vpow2.f32 %v4111_v49  ;;  %v6689_v61 = vsel %vm1607_vm4, %v9046_v50, 0.0  ;;  %v6703_v25 = vmul.f32 %v9291_v38, %v6449_v41  ;;  %v9504_v49 = vld [vmem:[#allocation104_spill] sm:$0xff] }
 0x1ee   : > { %9496 = vst [vmem:[#allocation175_spill] sm:$0xff] %v6679_v7  ;;  %9497 = vst [vmem:[#allocation176_spill] sm:$0xff] %v6683_v33  ;;  %v3753_v7 = vmul.f32 %v4389_v15, %v6500_v0  ;;  %v9500_v33 = vrot.slane %v6449_v41, 2  ;;  %v6707_v23 = vmul.f32 %v9385_v51, %v6449_v41  ;;  %v6714_v0 = vmul.f32 %v9396_v56, %v6689_v61  ;;  %v9508_v15 = vld [vmem:[#allocation160_spill] sm:$0xff] }
 0x1ef   : > { %9498 = vst [vmem:[#allocation177_spill] sm:$0xff] %v6689_v61  ;;  %9499 = vst [vmem:[#allocation178_spill] sm:$0xff] %v6693_v55  ;;  %v3789_v50 = vsel %vm3786_vm6, %v9504_v49, %v3752_v29  ;;  %v9511_v29 = vld [vmem:[#allocation115_spill] sm:$0xff] }
 0x1f0   : > { %v6699_v34 = vsel %vm1728_vm5, %v9500_v33, 0.0  ;;  %9502 = vst [vmem:[#allocation180_spill] sm:$0xff] %v6703_v25  ;;  %9503 = vst [vmem:[#allocation181_spill] sm:$0xff] %v6707_v23  ;;  %v9507_v33 = vld [vmem:[#allocation131_spill] sm:$0xff]  ;;  %v9510_v25 = vld [vmem:[#allocation102_spill] sm:$0xff]  ;;  %v2109_v49 = vadd.f32 %v9511_v29, %v6382_v1 }
 0x1f1   : > { %9501 = vst [vmem:[#allocation179_spill] sm:$0xff] %v6699_v34  ;;  %9505 = vst [vmem:[#allocation104_spill] sm:$0xff] %v6714_v0  ;;  %v6718_v62 = vmul.f32 %v6228_v12, %v6699_v34  ;;  %v6722_v55 = vmul.f32 %v9508_v15, %v9507_v33  ;;  %v3790_v23 = vsel %vm3786_vm6, %v9510_v25, %v3753_v7  ;;  %v9512_v0 = vld [vmem:[#allocation134_spill] sm:$0xff]  ;;  %v9517_v34 = vrot.slane %v6445_v58, 7 }
 0x1f2   : > { %3821 = vst [vmem:[%s6728_s23] sm:$0xff] %v3789_v50  ;;  %v2447_v41 = vadd.f32 %v9512_v0, %v6390_v21  ;;  %3822 = vst [vmem:[%s6728_s23 + $0x8] sm:$0xff] %v3790_v23  ;;  %v2177_v1 = vadd.f32 %v9514_v9, %v2109_v49  ;;  %v9515_v0 = vld [vmem:[#allocation146_spill] sm:$0xff]  ;;  %v9518_v49 = vrot.slane %v6445_v58, 1 }
 0x1f3   : > { %9506 = vst [vmem:[#allocation182_spill] sm:$0xff] %v6718_v62  ;;  %9509 = vst [vmem:[#allocation131_spill] sm:$0xff] %v6722_v55  ;;  %v9513_v62 = vld [vmem:[#allocation139_spill] sm:$0xff]  ;;  %v1381_v33 = vrot.slane %v6722_v55, 6  ;;  %v1502_v15 = vrot.slane %v6722_v55, 7  ;;  %v1623_v7 = vrot.slane %v6722_v55, 1  ;;  %v2010_v50 = vmul.f32 %v9380_v43, %v6722_v55 }
 0x1f4   : > { %v2785_v14 = vadd.f32 %v9513_v62, %v6414_v60  ;;  %v1744_v25 = vrot.slane %v6722_v55, 2  ;;  %v2348_v21 = vmul.f32 %v9462_v39, %v6722_v55  ;;  %v2515_v29 = vadd.f32 %v9515_v0, %v2447_v41 }
 0x1f5   : > { %v9516_v60 = vrot.slane %v6445_v58, 6  ;;  %v6754_v62 = vsel %vm1365_vm2, 0.0, %v1381_v33  ;;  %v6759_v61 = vsel %vm1486_vm3, %v1502_v15, %v9517_v34  ;;  %v6762_v9 = vsel %vm1486_vm3, 0.0, %v1502_v15 }
 0x1f6   : > { %v6767_v41 = vsel %vm1607_vm4, %v1623_v7, %v9518_v49  ;;  %v9519_v0 = vrot.slane %v6445_v58, 2  ;;  %v1942_v15 = vmul.f32 %v9431_v4, %v6762_v9  ;;  %v1943_v39 = vmul.f32 %v9431_v4, %v6759_v61 }
 0x1f7   : > { %v6751_v23 = vsel %vm1365_vm2, %v1381_v33, %v9516_v60  ;;  %v1868_v33 = vmul.f32 %v9422_v53, %v6754_v62  ;;  %v2078_v7 = vmul.f32 %v4918_v22, %v6767_v41  ;;  %v2212_v43 = vmul.f32 %v9458_v6, %v6754_v62 }
 0x1f8   : > { %v6772_v60 = vsel %vm1728_vm5, %v1744_v25, %v9519_v0  ;;  %v1869_v34 = vmul.f32 %v9422_v53, %v6751_v23  ;;  %v4391_v25 = vpop.eup %4390  ;;  %v6789_v0 = vld [vmem:[%s8887_s6] ss:$0 sm:$0xff]  ;;  %v2213_v4 = vmul.f32 %v9458_v6, %v6751_v23  ;;  %v2281_v26 = vmul.f32 %v9459_v13, %v6759_v61 }
 0x1f9   : > { %v2146_v49 = vmul.f32 %v9456_v46, %v6772_v60  ;;  %9520 = vst [vmem:[#allocation160_spill] sm:$0xff] %v6789_v0  ;;  %v1906_v58 = vadd.f32 %v6789_v0, %v1868_v33  ;;  %v4393_v22 = vpop.eup %4392  ;;  %v3676_v3 = vadd.f32 1.0, %v4391_v25  ;;  %v2280_v46 = vmul.f32 %v9459_v13, %v6762_v9 }
 0x1fa   : > { %v1907_v53 = vadd.f32 %v6789_v0, %v1869_v34  ;;  %v2416_v57 = vmul.f32 %v9463_v54, %v6767_v41  ;;  %v3677_v33 = vadd.f32 1.0, %v4393_v22  ;;  %v9521_v0 = vld [vmem:[#allocation24_spill] sm:$0xff]  ;;  %v2245_v36 = vadd.f32 %v2213_v4, %v2177_v1 }
 0x1fb   : > { %v1974_v18 = vadd.f32 %v1942_v15, %v1906_v58  ;;  %v2244_v19 = vadd.f32 %v2212_v43, %v9521_v0  ;;  %4394 = vrcp.f32 %v3676_v3  ;;  %v2484_v6 = vmul.f32 %v9464_v52, %v6772_v60 }
 0x1fc   : > { %v1975_v34 = vadd.f32 %v1943_v39, %v1907_v53  ;;  %v2550_v25 = vmul.f32 %v5071_v17, %v6754_v62  ;;  %4396 = vrcp.f32 %v3677_v33  ;;  %v2313_v54 = vadd.f32 %v2281_v26, %v2245_v36  ;;  %v9522_v53 = vld [vmem:[#allocation118_spill] sm:$0xff]  ;;  %v9525_v33 = vld [vmem:[#allocation136_spill] sm:$0xff] }
 0x1fd   : > { %v2042_v59 = vadd.f32 %v2010_v50, %v1974_v18  ;;  %v2312_v37 = vadd.f32 %v2280_v46, %v2244_v19  ;;  %v2551_v22 = vmul.f32 %v5071_v17, %v6751_v23  ;;  %v2618_v4 = vmul.f32 %v5074_v20, %v6762_v9 }
 0x1fe   : > { %v6809_v13 = vadd.f32 %v6604_v32, %v1975_v34  ;;  %v2582_v43 = vadd.f32 %v2550_v25, %v9522_v53  ;;  %v2619_v3 = vmul.f32 %v5074_v20, %v6759_v61  ;;  %v2686_v18 = vmul.f32 %v5012_v48, %v6722_v55  ;;  %v9527_v53 = vld [vmem:[#allocation145_spill] sm:$0xff] }
 0x1ff   : > { %v2110_v58 = vadd.f32 %v2078_v7, %v2042_v59  ;;  %v2380_v39 = vadd.f32 %v2348_v21, %v2312_v37  ;;  %v6821_v32 = vadd.f32 %v6608_v30, %v2313_v54  ;;  %v2583_v46 = vadd.f32 %v2551_v22, %v2515_v29  ;;  %v9523_v37 = vld [vmem:[#allocation62_spill] sm:$0xff] }
 0x200   : > { %v2650_v26 = vadd.f32 %v2618_v4, %v2582_v43  ;;  %v2754_v19 = vmul.f32 %v9355_v45, %v6767_v41  ;;  %v2822_v59 = vmul.f32 %v9360_v40, %v6772_v60  ;;  %v2853_v1 = vadd.f32 %v9523_v37, %v2785_v14 }
 0x201   : > { %v6825_v36 = vadd.f32 %v2146_v49, %v2110_v58  ;;  %v2448_v50 = vadd.f32 %v2416_v57, %v2380_v39  ;;  %v2651_v21 = vadd.f32 %v2619_v3, %v2583_v46  ;;  %v2888_v7 = vmul.f32 %v9338_v44, %v6754_v62 }
 0x202   : > { %v2718_v15 = vadd.f32 %v2686_v18, %v2650_v26  ;;  %v2889_v54 = vmul.f32 %v9338_v44, %v6751_v23  ;;  %v2956_v29 = vmul.f32 %v9353_v24, %v6762_v9  ;;  %v2957_v57 = vmul.f32 %v9353_v24, %v6759_v61 }
 0x203   : > { %v6834_v30 = vadd.f32 %v2484_v6, %v2448_v50  ;;  %v3024_v49 = vmul.f32 %v9291_v38, %v6722_v55  ;;  %v2719_v14 = vadd.f32 %v6613_v35, %v2651_v21  ;;  %v2920_v34 = vadd.f32 %v2888_v7, %v9525_v33  ;;  %v9526_v6 = vld [vmem:[#allocation137_spill] sm:$0xff]  ;;  %v9529_v50 = vld [vmem:[#allocation147_spill] sm:$0xff] }
 0x204   : > { %v2786_v0 = vadd.f32 %v2754_v19, %v2718_v15  ;;  %v2921_v25 = vadd.f32 %v2889_v54, %v2853_v1  ;;  %v3092_v22 = vmul.f32 %v9362_v42, %v6767_v41  ;;  %v3123_v43 = vadd.f32 %v9527_v53, %v9526_v6  ;;  %v9530_v1 = vld [vmem:[#allocation52_spill] sm:$0xff]  ;;  %v9532_v33 = vld [vmem:[#allocation103_spill] sm:$0xff] }
 0x205   : > { %9524 = vst [vmem:[#allocation102_spill] sm:$0xff] %v6834_v30  ;;  %v3160_v4 = vmul.f32 %v9365_v8, %v6772_v60  ;;  %v3226_v58 = vmul.f32 %v9440_v10, %v6754_v62  ;;  %v4395_v39 = vpop.eup %4394  ;;  %v2988_v35 = vadd.f32 %v2956_v29, %v2920_v34  ;;  %v3227_v46 = vmul.f32 %v9440_v10, %v6751_v23  ;;  %v9531_v23 = vld [vmem:[#allocation117_spill] sm:$0xff]  ;;  %v9534_v53 = vld [vmem:[#allocation163_spill] sm:$0xff] }
 0x206   : > { %v6852_v3 = vadd.f32 %v2822_v59, %v2786_v0  ;;  %v2989_v18 = vadd.f32 %v2957_v57, %v2921_v25  ;;  %v4397_v26 = vpop.eup %4396  ;;  %v3772_v19 = vmul.f32 %v4395_v39, %v6631_v27  ;;  %v3191_v37 = vadd.f32 %v9529_v50, %v3123_v43  ;;  %v9533_v25 = vld [vmem:[#allocation165_spill] sm:$0xff]  ;;  %v9536_v39 = vld [vmem:[#allocation168_spill] sm:$0xff]  ;;  %v9612_v30 = vld [vmem:[#allocation151_spill] sm:$0xff] }
 0x207   : > { %v3258_v21 = vadd.f32 %v3226_v58, %v9530_v1  ;;  %v3294_v62 = vmul.f32 %v9442_v11, %v6762_v9  ;;  %v3773_v59 = vmul.f32 %v4397_v26, %v6634_v16  ;;  %v3056_v15 = vadd.f32 %v3024_v49, %v2988_v35  ;;  %v9540_v50 = vld [vmem:[#allocation164_spill] sm:$0xff]  ;;  %v9541_v1 = vld [vmem:[#allocation38_spill] sm:$0xff] }
 0x208   : > { %9528 = vst [vmem:[#allocation115_spill] sm:$0xff] %v6852_v3  ;;  %v3057_v7 = vadd.f32 %v6617_v31, %v2989_v18  ;;  %v3295_v54 = vmul.f32 %v9442_v11, %v6759_v61  ;;  %v3809_v27 = vsel %vm3786_vm6, %v9531_v23, %v3772_v19  ;;  %v3259_v29 = vadd.f32 %v3227_v46, %v3191_v37  ;;  %v9537_v18 = vld [vmem:[#allocation169_spill] sm:$0xff]  ;;  %v9538_v46 = vld [vmem:[#allocation170_spill] sm:$0xff]  ;;  %v9593_v23 = vld [vmem:[#allocation27_spill] sm:$0xff] }
 0x209   : > { %v3326_v57 = vadd.f32 %v3294_v62, %v3258_v21  ;;  %v3362_v0 = vmul.f32 %v9385_v51, %v6722_v55  ;;  %v3810_v9 = vsel %vm3786_vm6, %v9532_v33, %v3773_v59  ;;  %3841 = vst [vmem:[%s6728_s23 + $0xa0] sm:$0xff] %v3809_v27  ;;  %v3124_v16 = vadd.f32 %v3092_v22, %v3056_v15  ;;  %v9542_v62 = vld [vmem:[#allocation167_spill] sm:$0xff]  ;;  %v9544_v27 = vld [vmem:[#allocation153_spill] sm:$0xff] }
 0x20a   : > { %v3430_v31 = vmul.f32 %v9396_v56, %v6767_v41  ;;  %v3498_v61 = vmul.f32 %v6228_v12, %v6772_v60  ;;  %3842 = vst [vmem:[%s6728_s23 + $0xa8] sm:$0xff] %v3810_v9  ;;  %v3327_v49 = vadd.f32 %v3295_v54, %v3259_v29  ;;  %v1033_v6 = vadd.f32 1.0, %v9533_v25  ;;  %v6887_v41 = vpop.f32.mrb[16].mxu0  ;;  %v9551_v9 = vld [vmem:[#allocation166_spill] sm:$0xff]  ;;  %v9556_v25 = vld [vmem:[#allocation177_spill] sm:$0xff] }
 0x20b   : > { %v3394_v34 = vadd.f32 %v3362_v0, %v3326_v57  ;;  %v3143_v43 = vadd.f32 %v9534_v53, %v6584_v28  ;;  %v6882_v58 = vadd.f32 %v3160_v4, %v3124_v16  ;;  %v1016_v35 = vadd.f32 1.0, %v9536_v39  ;;  %9539 = vst [vmem:[#allocation139_spill] sm:$0xff] %v6887_v41  ;;  %v9546_v57 = vld [vmem:[#allocation59_spill] sm:$0xff]  ;;  %v4556_v39 = vld [vmem:[%s8885_s4] ss:$0 sm:$0xff] }
 0x20c   : > { %v1036_v22 = vadd.f32 1.0, %v9537_v18  ;;  %v1015_v26 = vadd.f32 1.0, %v9538_v46  ;;  %v3395_v60 = vadd.f32 %v6628_v47, %v3327_v49  ;;  %4398 = vrcp.f32 %v1033_v6  ;;  %v9543_v47 = vld [vmem:[#allocation155_spill] sm:$0xff]  ;;  %v9555_v49 = vld [vmem:[#allocation161_spill] sm:$0xff] }
 0x20d   : > { %9535 = vst [vmem:[#allocation134_spill] sm:$0xff] %v6882_v58  ;;  %v3462_v19 = vadd.f32 %v3430_v31, %v3394_v34  ;;  %v6891_v37 = vadd.f32 %v9540_v50, %v3143_v43  ;;  %4400 = vrcp.f32 %v1016_v35  ;;  %v2111_v28 = vadd.f32 %v6637_v63, %v6809_v13  ;;  %v9548_v13 = vld [vmem:[#allocation150_spill] sm:$0xff]  ;;  %v9553_v31 = vld [vmem:[#allocation171_spill] sm:$0xff]  ;;  %v9560_v35 = vld [vmem:[#allocation172_spill] sm:$0xff] }
 0x20e   : > { %v2449_v4 = vadd.f32 %v6643_v5, %v6821_v32  ;;  %v2787_v21 = vadd.f32 %v9541_v1, %v2719_v14  ;;  %v3463_v59 = vadd.f32 %v9542_v62, %v3395_v60  ;;  %4402 = vrcp.f32 %v1036_v22  ;;  %v9550_v5 = vld [vmem:[#allocation174_spill] sm:$0xff]  ;;  %v9558_v53 = vld [vmem:[#allocation179_spill] sm:$0xff]  ;;  %v9562_v46 = vld [vmem:[#allocation173_spill] sm:$0xff] }
 0x20f   : > { %v6899_v15 = vadd.f32 %v3498_v61, %v3462_v19  ;;  %v3125_v54 = vadd.f32 %v9543_v47, %v3057_v7  ;;  %4404 = vrcp.f32 %v1015_v26  ;;  %v6903_v29 = vadd.f32 %v9544_v27, %v2111_v28  ;;  %v9554_v61 = vld [vmem:[#allocation152_spill] sm:$0xff]  ;;  %v9564_v60 = vld [vmem:[#allocation21_spill] sm:$0xff]  ;;  %v9566_v50 = vld [vmem:[#allocation162_spill] sm:$0xff] }
 0x210   : > { %v6906_v0 = vadd.f32 %v9546_v57, %v2449_v4  ;;  %v6909_v63 = vadd.f32 %v9548_v13, %v2787_v21  ;;  %v6912_v32 = vadd.f32 %v9550_v5, %v3463_v59  ;;  %v1035_v7 = vadd.f32 1.0, %v9553_v31  ;;  %v9568_v1 = vld [vmem:[#allocation154_spill] sm:$0xff]  ;;  %v9572_v57 = vld [vmem:[#allocation125_spill] sm:$0xff]  ;;  %v9573_v13 = vld [vmem:[#allocation156_spill] sm:$0xff] }
 0x211   : > { %9545 = vst [vmem:[#allocation143_spill] sm:$0xff] %v6903_v29  ;;  %v4092_v14 = vmul.f32 -1.442695, %v6899_v15  ;;  %v6916_v16 = vadd.f32 %v9551_v9, %v3125_v54  ;;  %v2805_v34 = vadd.f32 %v9555_v49, %v9554_v61  ;;  %v6923_v6 = vmul.f32 %v9362_v42, %v9556_v25  ;;  %v9570_v47 = vld [vmem:[#allocation14_spill] sm:$0xff]  ;;  %v9578_v49 = vld [vmem:[#allocation20_spill] sm:$0xff] }
 0x212   : > { %9547 = vst [vmem:[#allocation146_spill] sm:$0xff] %v6906_v0  ;;  %9549 = vst [vmem:[#allocation24_spill] sm:$0xff] %v6909_v63  ;;  %v6927_v43 = vmul.f32 %v9365_v8, %v9558_v53  ;;  %v6933_v18 = vadd.f32 %v4556_v39, %v9560_v35  ;;  %v4093_v22 = vmul.f32 -1.442695, %v6912_v32  ;;  %v6937_v26 = vadd.f32 %v4556_v39, %v9562_v46  ;;  %v9581_v46 = vld [vmem:[#allocation132_spill] sm:$0xff]  ;;  %v9610_v58 = vld [vmem:[#allocation50_spill] sm:$0xff] }
 0x213   : > { %9552 = vst [vmem:[#allocation118_spill] sm:$0xff] %v6916_v16  ;;  %9557 = vst [vmem:[#allocation62_spill] sm:$0xff] %v6923_v6  ;;  %4406 = vpow2.f32 %v4092_v14  ;;  %v6940_v19 = vadd.f32 %v4556_v39, %v9564_v60  ;;  %v6943_v28 = vadd.f32 %v9566_v50, %v2805_v34  ;;  %v6947_v21 = vadd.f32 %v4556_v39, %v9568_v1  ;;  %v9574_v14 = vld [vmem:[#allocation17_spill] sm:$0xff]  ;;  %v9579_v34 = vld [vmem:[#allocation158_spill] sm:$0xff] }
 0x214   : > { %9559 = vst [vmem:[#allocation136_spill] sm:$0xff] %v6927_v43  ;;  %9561 = vst [vmem:[#allocation137_spill] sm:$0xff] %v6933_v18  ;;  %4408 = vrcp.f32 %v1035_v7  ;;  %v4063_v4 = vmul.f32 -1.442695, %v6933_v18  ;;  %v4062_v62 = vmul.f32 -1.442695, %v6937_v26  ;;  %v6953_v54 = vmul.f32 %v9570_v47, %v9556_v25 }
 0x215   : > { %9563 = vst [vmem:[#allocation145_spill] sm:$0xff] %v6937_v26  ;;  %9565 = vst [vmem:[#allocation147_spill] sm:$0xff] %v6940_v19  ;;  %4410 = vpow2.f32 %v4093_v22  ;;  %v4083_v59 = vmul.f32 -1.442695, %v6940_v19  ;;  %v4082_v27 = vmul.f32 -1.442695, %v6947_v21  ;;  %v2129_v5 = vadd.f32 %v9573_v13, %v9572_v57 }
 0x216   : > { %9567 = vst [vmem:[#allocation52_spill] sm:$0xff] %v6943_v28  ;;  %9569 = vst [vmem:[#allocation165_spill] sm:$0xff] %v6947_v21  ;;  %4412 = vpow2.f32 %v4063_v4  ;;  %v6960_v9 = vmul.f32 %v9574_v14, %v9558_v53  ;;  %v4399_v31 = vpop.eup %4398  ;;  %v9576_v7 = vld [vmem:[#allocation29_spill] sm:$0xff]  ;;  %v2467_v39 = vadd.f32 %v9579_v34, %v9578_v49  ;;  %v6970_v35 = vmul.f32 %v9464_v52, %v9558_v53  ;;  %v9586_v57 = vld [vmem:[#allocation34_spill] sm:$0xff] }
 0x217   : > { %9571 = vst [vmem:[#allocation163_spill] sm:$0xff] %v6953_v54  ;;  %4414 = vpow2.f32 %v4062_v62  ;;  %v6964_v61 = vmul.f32 %v9576_v7, %v9556_v25  ;;  %v4401_v22 = vpop.eup %4400  ;;  %v6973_v60 = vmul.f32 %v4399_v31, %v9581_v46  ;;  %v9583_v50 = vld [vmem:[#allocation157_spill] sm:$0xff]  ;;  %v6980_v1 = vmul.f32 %v9355_v45, %v9556_v25  ;;  %v9588_v49 = vld [vmem:[#allocation159_spill] sm:$0xff] }
 0x218   : > { %9575 = vst [vmem:[#allocation168_spill] sm:$0xff] %v6960_v9  ;;  %9580 = vst [vmem:[#allocation170_spill] sm:$0xff] %v6970_v35  ;;  %4416 = vpow2.f32 %v4083_v59  ;;  %v6976_v4 = vadd.f32 %v9583_v50, %v2129_v5  ;;  %v6982_v62 = vpop.eup %4402  ;;  %v6985_v13 = vmul.f32 %v4401_v22, %v9586_v57  ;;  %v6988_v34 = vadd.f32 %v9588_v49, %v2467_v39  ;;  %v9591_v22 = vld [vmem:[#allocation12_spill] sm:$0xff]  ;;  %v9592_v39 = vld [vmem:[#allocation22_spill] sm:$0xff] }
 0x219   : > { %9577 = vst [vmem:[#allocation169_spill] sm:$0xff] %v6964_v61  ;;  %9582 = vst [vmem:[#allocation164_spill] sm:$0xff] %v6973_v60  ;;  %4418 = vpow2.f32 %v4082_v27  ;;  %v6992_v31 = vmul.f32 %v9360_v40, %v9558_v53  ;;  %v6994_v59 = vpop.eup %4404  ;;  %v1411_v5 = vrot.slane %v6973_v60, 6  ;;  %v1532_v25 = vrot.slane %v6973_v60, 7 }
 0x21a   : > { %9584 = vst [vmem:[#allocation38_spill] sm:$0xff] %v6976_v4  ;;  %9585 = vst [vmem:[#allocation167_spill] sm:$0xff] %v6980_v1  ;;  %v1653_v46 = vrot.slane %v6973_v60, 1  ;;  %v1774_v50 = vrot.slane %v6973_v60, 2  ;;  %v2030_v27 = vmul.f32 %v9591_v22, %v6973_v60  ;;  %v2368_v57 = vmul.f32 %v9592_v39, %v6973_v60  ;;  %v9604_v4 = vld [vmem:[#allocation18_spill] sm:$0xff] }
 0x21b   : > { %9587 = vst [vmem:[#allocation155_spill] sm:$0xff] %v6985_v13  ;;  %9589 = vst [vmem:[#allocation153_spill] sm:$0xff] %v6988_v34  ;;  %v2706_v53 = vmul.f32 %v5012_v48, %v6973_v60  ;;  %v3044_v49 = vmul.f32 %v9291_v38, %v6973_v60  ;;  %v9594_v33 = vrot.slane %v9593_v23, 6  ;;  %v1481_v55 = vsel %vm1365_vm2, 0.0, %v1411_v5 }
 0x21c   : > { %9590 = vst [vmem:[#allocation59_spill] sm:$0xff] %v6992_v31  ;;  %v9595_v31 = vrot.slane %v9593_v23, 7  ;;  %v1602_v35 = vsel %vm1486_vm3, 0.0, %v1532_v25  ;;  %v9597_v19 = vrot.slane %v9593_v23, 1  ;;  %v9599_v9 = vrot.slane %v9593_v23, 2  ;;  %v9606_v23 = vld [vmem:[#allocation160_spill] sm:$0xff] }
 0x21d   : > { %v1413_v41 = vsel %vm1365_vm2, %v1411_v5, %v9594_v33  ;;  %v4407_v21 = vpop.eup %4406  ;;  %v9601_v33 = vld [vmem:[#allocation7_spill] sm:$0xff]  ;;  %v2232_v43 = vmul.f32 %v9604_v4, %v1481_v55  ;;  %v2570_v28 = vmul.f32 %v5071_v17, %v1481_v55  ;;  %v2638_v3 = vmul.f32 %v5074_v20, %v1602_v35 }
 0x21e   : > { %v7015_v1 = vsel %vm1486_vm3, %v1532_v25, %v9595_v31  ;;  %v7021_v61 = vsel %vm1607_vm4, %v1653_v46, %v9597_v19  ;;  %v7026_v26 = vsel %vm1728_vm5, %v1774_v50, %v9599_v9  ;;  %v1888_v5 = vmul.f32 %v9601_v33, %v1481_v55  ;;  %v7032_v31 = vpop.eup %4408  ;;  %v9603_v25 = vld [vmem:[#allocation10_spill] sm:$0xff]  ;;  %v9607_v9 = vld [vmem:[#allocation19_spill] sm:$0xff] }
 0x21f   : > { %9596 = vst [vmem:[#allocation150_spill] sm:$0xff] %v7015_v1  ;;  %9598 = vst [vmem:[#allocation174_spill] sm:$0xff] %v7021_v61  ;;  %v7030_v18 = vmul.f32 %v9601_v33, %v1413_v41  ;;  %v3658_v54 = vadd.f32 1.0, %v4407_v21  ;;  %v1962_v34 = vmul.f32 %v9603_v25, %v1602_v35  ;;  %v7037_v19 = vmul.f32 %v9604_v4, %v1413_v41  ;;  %v4411_v46 = vpop.eup %4410 }
 0x220   : > { %9600 = vst [vmem:[#allocation166_spill] sm:$0xff] %v7026_v26  ;;  %v1926_v6 = vadd.f32 %v9606_v23, %v1888_v5  ;;  %v2300_v50 = vmul.f32 %v9607_v9, %v1602_v35  ;;  %v7043_v16 = vmul.f32 %v5071_v17, %v1413_v41  ;;  %v3659_v21 = vadd.f32 1.0, %v4411_v46 }
 0x221   : > { %9602 = vst [vmem:[#allocation171_spill] sm:$0xff] %v7030_v18  ;;  %9605 = vst [vmem:[#allocation152_spill] sm:$0xff] %v7037_v19  ;;  %v7045_v18 = vpop.eup %4412  ;;  %4420 = vrcp.f32 %v3658_v54  ;;  %v2264_v63 = vadd.f32 %v2232_v43, %v9610_v58  ;;  %v2602_v5 = vadd.f32 %v2570_v28, %v9612_v30  ;;  %v2908_v9 = vmul.f32 %v9338_v44, %v1481_v55  ;;  %v9617_v28 = vld [vmem:[#allocation109_spill] sm:$0xff] }
 0x222   : > { %9608 = vst [vmem:[#allocation161_spill] sm:$0xff] %v7043_v16  ;;  %9609 = vst [vmem:[#allocation177_spill] sm:$0xff] %v7045_v18  ;;  %v7049_v0 = vpop.eup %4414  ;;  %v1994_v19 = vadd.f32 %v1962_v34, %v1926_v6  ;;  %v7054_v29 = vmul.f32 %v9338_v44, %v1413_v41  ;;  %4422 = vrcp.f32 %v3659_v21  ;;  %v2976_v54 = vmul.f32 %v9353_v24, %v1602_v35 }
 0x223   : > { %9611 = vst [vmem:[#allocation179_spill] sm:$0xff] %v7049_v0  ;;  %v7056_v17 = vpop.eup %4416  ;;  %v2332_v16 = vadd.f32 %v2300_v50, %v2264_v63  ;;  %v7061_v58 = vmul.f32 %v9353_v24, %v7015_v1  ;;  %v2670_v30 = vadd.f32 %v2638_v3, %v2602_v5  ;;  %v2940_v34 = vadd.f32 %v2908_v9, %v9617_v28 }
 0x224   : > { %9613 = vst [vmem:[#allocation172_spill] sm:$0xff] %v7054_v29  ;;  %9614 = vst [vmem:[#allocation173_spill] sm:$0xff] %v7056_v17  ;;  %v7063_v43 = vpop.eup %4418  ;;  %v7065_v6 = vadd.f32 %v2030_v27, %v1994_v19  ;;  %v3246_v46 = vmul.f32 %v9440_v10, %v1481_v55  ;;  %v3247_v21 = vmul.f32 %v9440_v10, %v1413_v41  ;;  %v9074_v9 = vrot.slane %v6985_v13, 1 }
 0x225   : > { %9615 = vst [vmem:[#allocation21_spill] sm:$0xff] %v7061_v58  ;;  %9616 = vst [vmem:[#allocation162_spill] sm:$0xff] %v7063_v43  ;;  %v7069_v0 = vadd.f32 %v2368_v57, %v2332_v16  ;;  %v3314_v63 = vmul.f32 %v9442_v11, %v1602_v35  ;;  %v3315_v50 = vmul.f32 %v9442_v11, %v7015_v1  ;;  %v9620_v43 = vld [vmem:[#allocation75_spill] sm:$0xff] }
 0x226   : > { %v7075_v17 = vadd.f32 %v2706_v53, %v2670_v30  ;;  %v3008_v18 = vadd.f32 %v2976_v54, %v2940_v34  ;;  %v3278_v27 = vadd.f32 %v3246_v46, %v9620_v43  ;;  %v3382_v3 = vmul.f32 %v9385_v51, %v6973_v60  ;;  %v9622_v34 = vld [vmem:[#allocation181_spill] sm:$0xff] }
 0x227   : > { %9618 = vst [vmem:[#allocation154_spill] sm:$0xff] %v7069_v0  ;;  %v3279_v19 = vadd.f32 %v3247_v21, %v6891_v37  ;;  %v3450_v55 = vmul.f32 %v9396_v56, %v7021_v61  ;;  %v3518_v41 = vmul.f32 %v6228_v12, %v7026_v26  ;;  %v9075_v54 = vrot.slane %v6985_v13, 2  ;;  %v9657_v0 = vld [vmem:[#allocation19_spill] sm:$0xff] }
 0x228   : > { %9619 = vst [vmem:[#allocation125_spill] sm:$0xff] %v7075_v17  ;;  %v7086_v35 = vadd.f32 %v3044_v49, %v3008_v18  ;;  %v3346_v57 = vadd.f32 %v3314_v63, %v3278_v27  ;;  %v7093_v37 = vmul.f32 %v9591_v22, %v6985_v13  ;;  %v7097_v43 = vmul.f32 %v9592_v39, %v6985_v13 }
 0x229   : > { %v3347_v5 = vadd.f32 %v3315_v50, %v3279_v19  ;;  %v1714_v18 = vsel %vm1607_vm4, %v9074_v9, 0.0  ;;  %v7104_v49 = vmul.f32 %v5012_v48, %v6985_v13  ;;  %v7108_v30 = vmul.f32 %v9291_v38, %v6985_v13 }
 0x22a   : > { %9621 = vst [vmem:[#allocation156_spill] sm:$0xff] %v7086_v35  ;;  %v3414_v12 = vadd.f32 %v3382_v3, %v3346_v57  ;;  %v1835_v21 = vsel %vm1728_vm5, %v9075_v54, 0.0  ;;  %v7115_v63 = vmul.f32 %v9570_v47, %v1714_v18  ;;  %v7118_v50 = vmul.f32 %v9576_v7, %v1714_v18 }
 0x22b   : > { %v4421_v28 = vpop.eup %4420  ;;  %v3415_v46 = vadd.f32 %v9622_v34, %v3347_v5  ;;  %v7122_v19 = vmul.f32 %v9574_v14, %v1835_v21  ;;  %v7125_v57 = vmul.f32 %v9464_v52, %v1835_v21  ;;  %v9627_v34 = vld [vmem:[#allocation104_spill] sm:$0xff]  ;;  %v7129_v54 = vmul.f32 %v9355_v45, %v1714_v18 }
 0x22c   : > { %9623 = vst [vmem:[#allocation20_spill] sm:$0xff] %v7115_v63  ;;  %9624 = vst [vmem:[#allocation158_spill] sm:$0xff] %v7118_v50  ;;  %v3754_v27 = vmul.f32 %v4421_v28, %v6899_v15  ;;  %v3482_v3 = vadd.f32 %v3450_v55, %v3414_v12  ;;  %v4423_v5 = vpop.eup %4422  ;;  %v7132_v53 = vmul.f32 %v9360_v40, %v1835_v21  ;;  %v9631_v55 = vld [vmem:[#allocation56_spill] sm:$0xff]  ;;  %v9654_v50 = vrot.slane %v6985_v13, 1 }
 0x22d   : > { %9625 = vst [vmem:[#allocation132_spill] sm:$0xff] %v7122_v19  ;;  %9626 = vst [vmem:[#allocation157_spill] sm:$0xff] %v7125_v57  ;;  %v3483_v9 = vadd.f32 %v9627_v34, %v3415_v46  ;;  %v7135_v16 = vmul.f32 %v9362_v42, %v1714_v18  ;;  %v3755_v15 = vmul.f32 %v4423_v5, %v6912_v32  ;;  %v9633_v34 = vld [vmem:[#allocation182_spill] sm:$0xff]  ;;  %v7160_v32 = vld [vmem:[%s8886_s5 + $0x18] ss:$0 sm:$0xff]  ;;  %v7244_v57 = vpop.f32.mrb[17].mxu0 }
 0x22e   : > { %9628 = vst [vmem:[#allocation34_spill] sm:$0xff] %v7129_v54  ;;  %9629 = vst [vmem:[#allocation159_spill] sm:$0xff] %v7132_v53  ;;  %v3791_v12 = vsel %vm3786_vm6, %v9631_v55, %v3754_v27  ;;  %v7141_v28 = vadd.f32 %v3518_v41, %v3482_v3  ;;  %v7144_v46 = vmul.f32 %v9365_v8, %v1835_v21  ;;  %v9634_v27 = vld [vmem:[#allocation111_spill] sm:$0xff]  ;;  %v9635_v5 = vld [vmem:[#allocation5_spill] sm:$0xff]  ;;  %v9651_v53 = vrot.slane %v6985_v13, 6 }
 0x22f   : > { %9630 = vst [vmem:[#allocation50_spill] sm:$0xff] %v7135_v16  ;;  %3823 = vst [vmem:[%s6728_s23 + $0x10] sm:$0xff] %v3791_v12  ;;  %v7148_v60 = vadd.f32 %v9633_v34, %v3483_v9  ;;  %v7152_v1 = vmul.f32 %v9385_v51, %v6985_v13  ;;  %v7155_v16 = vmul.f32 %v9396_v56, %v1714_v18  ;;  %v9637_v18 = vld [vmem:[#allocation133_spill] sm:$0xff] }
 0x230   : > { %9632 = vst [vmem:[#allocation151_spill] sm:$0xff] %v7144_v46  ;;  %v7163_v41 = vmul.f32 %v7160_v32, %v1835_v21  ;;  %v3792_v9 = vsel %vm3786_vm6, %v9634_v27, %v3755_v15  ;;  %v4112_v3 = vmul.f32 -1.442695, %v7141_v28  ;;  %v7171_v55 = vmul.f32 %v6982_v62, %v9635_v5  ;;  %v9639_v46 = vld [vmem:[#allocation35_spill] sm:$0xff]  ;;  %9652 = vst [vmem:[#allocation186_spill] sm:$0xff] %v7244_v57 }
 0x231   : > { %v7175_v12 = vmul.f32 %v6994_v59, %v9637_v18  ;;  %3824 = vst [vmem:[%s6728_s23 + $0x18] sm:$0xff] %v3792_v9  ;;  %v4113_v34 = vmul.f32 -1.442695, %v7148_v60  ;;  %v7181_v21 = vmul.f32 %v7032_v31, %v9639_v46  ;;  %v7185_v15 = vmul.f32 %v9570_v47, %v7021_v61 }
 0x232   : > { %9636 = vst [vmem:[#allocation109_spill] sm:$0xff] %v7171_v55  ;;  %v7189_v27 = vmul.f32 %v9574_v14, %v7026_v26  ;;  %4424 = vpow2.f32 %v4112_v3  ;;  %v9079_v9 = vrot.slane %v7171_v55, 1  ;;  %v9080_v5 = vrot.slane %v7171_v55, 2 }
 0x233   : > { %9638 = vst [vmem:[#allocation75_spill] sm:$0xff] %v7175_v12  ;;  %9640 = vst [vmem:[#allocation181_spill] sm:$0xff] %v7181_v21  ;;  %4426 = vpow2.f32 %v4113_v34  ;;  %v7197_v31 = vmul.f32 %v9592_v39, %v7171_v55  ;;  %v7201_v46 = vmul.f32 %v5012_v48, %v7171_v55  ;;  %v7208_v18 = vmul.f32 %v9291_v38, %v7171_v55 }
 0x234   : > { %v1724_v3 = vsel %vm1607_vm4, %v9079_v9, 0.0  ;;  %v7212_v34 = vmul.f32 %v9385_v51, %v7171_v55  ;;  %v1384_v59 = vrot.slane %v7175_v12, 6  ;;  %v7218_v62 = vsel %vm1728_vm5, %v9080_v5, 0.0 }
 0x235   : > { %9641 = vst [vmem:[#allocation104_spill] sm:$0xff] %v7197_v31  ;;  %9642 = vst [vmem:[#allocation56_spill] sm:$0xff] %v7201_v46  ;;  %v7221_v46 = vmul.f32 %v9576_v7, %v1724_v3  ;;  %v7224_v9 = vmul.f32 %v9355_v45, %v1724_v3  ;;  %v7227_v31 = vmul.f32 %v9362_v42, %v1724_v3 }
 0x236   : > { %9643 = vst [vmem:[#allocation182_spill] sm:$0xff] %v7208_v18  ;;  %9644 = vst [vmem:[#allocation111_spill] sm:$0xff] %v7212_v34  ;;  %v7230_v18 = vmul.f32 %v9396_v56, %v1724_v3  ;;  %v7234_v34 = vmul.f32 %v7160_v32, %v7218_v62  ;;  %v7239_v5 = vsel %vm1365_vm2, %v1384_v59, %v9651_v53  ;;  %v1747_v3 = vrot.slane %v7175_v12, 2 }
 0x237   : > { %9645 = vst [vmem:[#allocation5_spill] sm:$0xff] %v7218_v62  ;;  %9646 = vst [vmem:[#allocation133_spill] sm:$0xff] %v7221_v46  ;;  %v7242_v46 = vsel %vm1365_vm2, 0.0, %v1384_v59  ;;  %v2012_v53 = vmul.f32 %v9591_v22, %v7175_v12  ;;  %v2215_v57 = vmul.f32 %v9604_v4, %v7239_v5  ;;  %v9653_v62 = vrot.slane %v6985_v13, 7 }
 0x238   : > { %9647 = vst [vmem:[#allocation35_spill] sm:$0xff] %v7224_v9  ;;  %9648 = vst [vmem:[#allocation183_spill] sm:$0xff] %v7227_v31  ;;  %v1505_v9 = vrot.slane %v7175_v12, 7  ;;  %v1626_v31 = vrot.slane %v7175_v12, 1  ;;  %v2214_v59 = vmul.f32 %v9604_v4, %v7242_v46  ;;  %v9655_v22 = vrot.slane %v6985_v13, 2  ;;  %v9656_v13 = vld [vmem:[#allocation143_spill] sm:$0xff] }
 0x239   : > { %9649 = vst [vmem:[#allocation184_spill] sm:$0xff] %v7230_v18  ;;  %9650 = vst [vmem:[#allocation185_spill] sm:$0xff] %v7234_v34  ;;  %v1870_v18 = vmul.f32 %v9601_v33, %v7242_v46  ;;  %v1871_v34 = vmul.f32 %v9601_v33, %v7239_v5 }
 0x23a   : > { %v7262_v19 = vsel %vm1486_vm3, %v1505_v9, %v9653_v62  ;;  %v1593_v54 = vsel %vm1486_vm3, 0.0, %v1505_v9  ;;  %v7268_v33 = vsel %vm1607_vm4, %v1626_v31, %v9654_v50  ;;  %v7273_v63 = vsel %vm1728_vm5, %v1747_v3, %v9655_v22 }
 0x23b   : > { %v1908_v35 = vadd.f32 %v9606_v23, %v1870_v18  ;;  %v1909_v58 = vadd.f32 %v9606_v23, %v1871_v34  ;;  %v1944_v29 = vmul.f32 %v9603_v25, %v1593_v54  ;;  %v1945_v62 = vmul.f32 %v9603_v25, %v7262_v19 }
 0x23c   : > { %v2080_v9 = vmul.f32 %v9570_v47, %v7268_v33  ;;  %v2148_v50 = vmul.f32 %v9574_v14, %v7273_v63  ;;  %v2246_v31 = vadd.f32 %v2214_v59, %v6825_v36  ;;  %v2247_v22 = vadd.f32 %v2215_v57, %v9656_v13  ;;  %v4425_v3 = vpop.eup %4424  ;;  %v9658_v59 = vld [vmem:[#allocation40_spill] sm:$0xff] }
 0x23d   : > { %v1976_v17 = vadd.f32 %v1944_v29, %v1908_v35  ;;  %v1977_v18 = vadd.f32 %v1945_v62, %v1909_v58  ;;  %v2282_v34 = vmul.f32 %v9657_v0, %v1593_v54  ;;  %v2283_v23 = vmul.f32 %v9657_v0, %v7262_v19  ;;  %v4427_v26 = vpop.eup %4426 }
 0x23e   : > { %v3678_v25 = vadd.f32 1.0, %v4425_v3  ;;  %v2350_v47 = vmul.f32 %v9592_v39, %v7175_v12  ;;  %v2418_v14 = vmul.f32 %v9576_v7, %v7268_v33  ;;  %v2486_v36 = vmul.f32 %v9464_v52, %v7273_v63 }
 0x23f   : > { %v3679_v13 = vadd.f32 1.0, %v4427_v26  ;;  %v2044_v57 = vadd.f32 %v2012_v53, %v1976_v17  ;;  %v7296_v29 = vadd.f32 %v7093_v37, %v1977_v18  ;;  %v2314_v58 = vadd.f32 %v2282_v34, %v2246_v31  ;;  %v9659_v17 = vld [vmem:[#allocation102_spill] sm:$0xff] }
 0x240   : > { %4428 = vrcp.f32 %v3678_v25  ;;  %v2315_v35 = vadd.f32 %v2283_v23, %v2247_v22  ;;  %v2552_v62 = vmul.f32 %v9658_v59, %v7242_v46  ;;  %v2553_v3 = vmul.f32 %v9658_v59, %v7239_v5  ;;  %v9660_v53 = vld [vmem:[#allocation146_spill] sm:$0xff] }
 0x241   : > { %4430 = vrcp.f32 %v3679_v13  ;;  %v2112_v61 = vadd.f32 %v2080_v9, %v2044_v57  ;;  %v2382_v7 = vadd.f32 %v2350_v47, %v2314_v58  ;;  %v2620_v39 = vmul.f32 %v5074_v20, %v1593_v54  ;;  %v9661_v58 = vld [vmem:[#allocation115_spill] sm:$0xff] }
 0x242   : > { %v7304_v26 = vadd.f32 %v7097_v43, %v2315_v35  ;;  %v2584_v37 = vadd.f32 %v2552_v62, %v9659_v17  ;;  %v2585_v31 = vadd.f32 %v2553_v3, %v9660_v53  ;;  %v2621_v23 = vmul.f32 %v5074_v20, %v7262_v19  ;;  %v9662_v3 = vld [vmem:[#allocation24_spill] sm:$0xff] }
 0x243   : > { %v7310_v25 = vadd.f32 %v2148_v50, %v2112_v61  ;;  %v2450_v22 = vadd.f32 %v2418_v14, %v2382_v7  ;;  %v2688_v18 = vmul.f32 %v5012_v48, %v7175_v12  ;;  %v2756_v47 = vmul.f32 %v9355_v45, %v7268_v33 }
 0x244   : > { %v2652_v9 = vadd.f32 %v2620_v39, %v2584_v37  ;;  %v2653_v34 = vadd.f32 %v2621_v23, %v2585_v31  ;;  %v2824_v43 = vmul.f32 %v9360_v40, %v7273_v63  ;;  %v2890_v13 = vmul.f32 %v9338_v44, %v7242_v46 }
 0x245   : > { %v7320_v57 = vadd.f32 %v2486_v36, %v2450_v22  ;;  %v2891_v61 = vmul.f32 %v9338_v44, %v7239_v5  ;;  %v2958_v14 = vmul.f32 %v9353_v24, %v1593_v54  ;;  %v2959_v7 = vmul.f32 %v9353_v24, %v7262_v19 }
 0x246   : > { %v2720_v50 = vadd.f32 %v2688_v18, %v2652_v9  ;;  %v7328_v39 = vadd.f32 %v7104_v49, %v2653_v34  ;;  %v2922_v35 = vadd.f32 %v2890_v13, %v9661_v58  ;;  %v3026_v62 = vmul.f32 %v9291_v38, %v7175_v12  ;;  %v9663_v9 = vld [vmem:[#allocation134_spill] sm:$0xff] }
 0x247   : > { %v2923_v36 = vadd.f32 %v2891_v61, %v9662_v3  ;;  %v3094_v17 = vmul.f32 %v9362_v42, %v7268_v33  ;;  %v3162_v37 = vmul.f32 %v9365_v8, %v7273_v63  ;;  %v3228_v53 = vmul.f32 %v9440_v10, %v7242_v46 }
 0x248   : > { %v2788_v31 = vadd.f32 %v2756_v47, %v2720_v50  ;;  %v2990_v23 = vadd.f32 %v2958_v14, %v2922_v35  ;;  %v3229_v49 = vmul.f32 %v9440_v10, %v7239_v5  ;;  %v3296_v22 = vmul.f32 %v9442_v11, %v1593_v54  ;;  %v9664_v47 = vld [vmem:[#allocation118_spill] sm:$0xff] }
 0x249   : > { %v2991_v18 = vadd.f32 %v2959_v7, %v2923_v36  ;;  %v3260_v34 = vadd.f32 %v3228_v53, %v9663_v9  ;;  %v3297_v13 = vmul.f32 %v9442_v11, %v7262_v19  ;;  %v3364_v61 = vmul.f32 %v9385_v51, %v7175_v12 }
 0x24a   : > { %v4429_v58 = vpop.eup %4428  ;;  %v7348_v3 = vadd.f32 %v2824_v43, %v2788_v31  ;;  %v3058_v46 = vadd.f32 %v3026_v62, %v2990_v23  ;;  %v3261_v14 = vadd.f32 %v3229_v49, %v9664_v47  ;;  %v3432_v5 = vmul.f32 %v9396_v56, %v7268_v33  ;;  %v9665_v31 = vld [vmem:[#allocation37_spill] sm:$0xff]  ;;  %v7366_v49 = vpop.f32.mrb[18].mxu0 }
 0x24b   : > { %v4431_v54 = vpop.eup %4430  ;;  %v3774_v7 = vmul.f32 %v4429_v58, %v7141_v28  ;;  %v7355_v50 = vadd.f32 %v7108_v30, %v2991_v18  ;;  %v3328_v19 = vadd.f32 %v3296_v22, %v3260_v34  ;;  %v3500_v35 = vmul.f32 %v7160_v32, %v7273_v63  ;;  %9666 = vst [vmem:[#allocation143_spill] sm:$0xff] %v7366_v49  ;;  %v9667_v22 = vld [vmem:[#allocation116_spill] sm:$0xff] }
 0x24c   : > { %v3775_v43 = vmul.f32 %v4431_v54, %v7148_v60  ;;  %v3126_v62 = vadd.f32 %v3094_v17, %v3058_v46  ;;  %v3329_v36 = vadd.f32 %v3297_v13, %v3261_v14  ;;  %v1414_v53 = vrot.slane %v7181_v21, 6 }
 0x24d   : > { %v3811_v33 = vsel %vm3786_vm6, %v9665_v31, %v3774_v7  ;;  %v3396_v23 = vadd.f32 %v3364_v61, %v3328_v19  ;;  %v1535_v28 = vrot.slane %v7181_v21, 7  ;;  %v1656_v30 = vrot.slane %v7181_v21, 1  ;;  %v9685_v31 = vld [vmem:[#allocation125_spill] sm:$0xff] }
 0x24e   : > { %v3812_v63 = vsel %vm3786_vm6, %v9667_v22, %v3775_v43  ;;  %3843 = vst [vmem:[%s6728_s23 + $0xb0] sm:$0xff] %v3811_v33  ;;  %v7372_v60 = vadd.f32 %v3162_v37, %v3126_v62  ;;  %v3397_v17 = vadd.f32 %v7152_v1, %v3329_v36  ;;  %v9668_v18 = vrot.slane %v7171_v55, 6 }
 0x24f   : > { %3844 = vst [vmem:[%s6728_s23 + $0xb8] sm:$0xff] %v3812_v63  ;;  %v3464_v34 = vadd.f32 %v3432_v5, %v3396_v23  ;;  %v1482_v13 = vsel %vm1365_vm2, 0.0, %v1414_v53  ;;  %v9669_v61 = vrot.slane %v7171_v55, 7  ;;  %v1603_v46 = vsel %vm1486_vm3, 0.0, %v1535_v28  ;;  %v9677_v23 = vld [vmem:[#allocation174_spill] sm:$0xff] }
 0x250   : > { %v1416_v9 = vsel %vm1365_vm2, %v1414_v53, %v9668_v18  ;;  %v3465_v47 = vadd.f32 %v7155_v16, %v3397_v17  ;;  %v9670_v37 = vrot.slane %v7171_v55, 1  ;;  %v1777_v14 = vrot.slane %v7181_v21, 2 }
 0x251   : > { %v1537_v58 = vsel %vm1486_vm3, %v1535_v28, %v9669_v61  ;;  %v2130_v5 = vadd.f32 %v7185_v15, %v7065_v6  ;;  %v7393_v54 = vadd.f32 %v3500_v35, %v3464_v34  ;;  %v2234_v7 = vmul.f32 %v9604_v4, %v1482_v13  ;;  %v9676_v35 = vld [vmem:[#allocation22_spill] sm:$0xff]  ;;  %v9678_v28 = vld [vmem:[#allocation29_spill] sm:$0xff]  ;;  %v7424_v61 = vpop.f32.mrb[19].mxu0 }
 0x252   : > { %v7388_v1 = vsel %vm1607_vm4, %v1656_v30, %v9670_v37  ;;  %v7397_v19 = vmul.f32 %v9604_v4, %v1416_v9  ;;  %v2302_v43 = vmul.f32 %v9657_v0, %v1603_v46  ;;  %v7401_v16 = vadd.f32 %v7163_v41, %v3465_v47  ;;  %v9679_v41 = vld [vmem:[#allocation166_spill] sm:$0xff]  ;;  %9681 = vst [vmem:[#allocation118_spill] sm:$0xff] %v7424_v61 }
 0x253   : > { %9671 = vst [vmem:[#allocation102_spill] sm:$0xff] %v7388_v1  ;;  %v9673_v62 = vrot.slane %v7171_v55, 2  ;;  %v2198_v53 = vadd.f32 %v7189_v27, %v2130_v5  ;;  %v7410_v6 = vmul.f32 %v9657_v0, %v1537_v58  ;;  %v4094_v15 = vmul.f32 -1.442695, %v7393_v54  ;;  %v9682_v47 = vld [vmem:[#allocation154_spill] sm:$0xff] }
 0x254   : > { %9672 = vst [vmem:[#allocation146_spill] sm:$0xff] %v7397_v19  ;;  %v2370_v33 = vmul.f32 %v9676_v35, %v7181_v21  ;;  %v2436_v30 = vmul.f32 %v9678_v28, %v9677_v23  ;;  %v2504_v63 = vmul.f32 %v9464_v52, %v9679_v41  ;;  %v4095_v17 = vmul.f32 -1.442695, %v7401_v16 }
 0x255   : > { %v7406_v36 = vsel %vm1728_vm5, %v1777_v14, %v9673_v62  ;;  %9675 = vst [vmem:[#allocation24_spill] sm:$0xff] %v7410_v6  ;;  %v2266_v18 = vadd.f32 %v2234_v7, %v2198_v53  ;;  %v2572_v34 = vmul.f32 %v9658_v59, %v1482_v13  ;;  %v7422_v27 = vmul.f32 %v9658_v59, %v1416_v9  ;;  %v9691_v6 = vld [vmem:[#allocation180_spill] sm:$0xff] }
 0x256   : > { %9674 = vst [vmem:[#allocation115_spill] sm:$0xff] %v7406_v36  ;;  %4432 = vpow2.f32 %v4094_v15  ;;  %v2468_v37 = vadd.f32 %v2436_v30, %v9682_v47  ;;  %v2640_v14 = vmul.f32 %v5074_v20, %v1603_v46  ;;  %v7429_v5 = vmul.f32 %v5074_v20, %v1537_v58 }
 0x257   : > { %9680 = vst [vmem:[#allocation134_spill] sm:$0xff] %v7422_v27  ;;  %4434 = vpow2.f32 %v4095_v17  ;;  %v2334_v62 = vadd.f32 %v2302_v43, %v2266_v18  ;;  %v2708_v7 = vmul.f32 %v5012_v48, %v7181_v21  ;;  %v2774_v53 = vmul.f32 %v9355_v45, %v9677_v23  ;;  %v9686_v43 = vld [vmem:[#allocation52_spill] sm:$0xff] }
 0x258   : > { %9683 = vst [vmem:[#allocation174_spill] sm:$0xff] %v7429_v5  ;;  %v2536_v12 = vadd.f32 %v2504_v63, %v2468_v37  ;;  %v2842_v55 = vmul.f32 %v9360_v40, %v9679_v41  ;;  %v2910_v15 = vmul.f32 %v9338_v44, %v1482_v13  ;;  %v7439_v30 = vmul.f32 %v9338_v44, %v1416_v9  ;;  %v9687_v18 = vld [vmem:[#allocation172_spill] sm:$0xff] }
 0x259   : > { %v7441_v47 = vadd.f32 %v2370_v33, %v2334_v62  ;;  %v2806_v17 = vadd.f32 %v2774_v53, %v9685_v31  ;;  %v2941_v22 = vadd.f32 %v9687_v18, %v9686_v43  ;;  %v2978_v61 = vmul.f32 %v9353_v24, %v1603_v46  ;;  %v9689_v33 = vld [vmem:[#allocation21_spill] sm:$0xff]  ;;  %v9690_v18 = vld [vmem:[#allocation156_spill] sm:$0xff] }
 0x25a   : > { %9684 = vst [vmem:[#allocation166_spill] sm:$0xff] %v7439_v30  ;;  %v2604_v49 = vadd.f32 %v2572_v34, %v2536_v12  ;;  %v7448_v63 = vmul.f32 %v9353_v24, %v1537_v58  ;;  %v3046_v37 = vmul.f32 %v9291_v38, %v7181_v21  ;;  %v3112_v5 = vmul.f32 %v9362_v42, %v9677_v23 }
 0x25b   : > { %v2874_v30 = vadd.f32 %v2842_v55, %v2806_v17  ;;  %v3009_v62 = vadd.f32 %v9689_v33, %v2941_v22  ;;  %v3180_v31 = vmul.f32 %v9365_v8, %v9679_v41  ;;  %v3248_v53 = vmul.f32 %v9440_v10, %v1482_v13  ;;  %v9696_v33 = vld [vmem:[#allocation20_spill] sm:$0xff] }
 0x25c   : > { %9688 = vst [vmem:[#allocation154_spill] sm:$0xff] %v7448_v63  ;;  %v2672_v43 = vadd.f32 %v2640_v14, %v2604_v49  ;;  %v3144_v12 = vadd.f32 %v3112_v5, %v9690_v18  ;;  %v3249_v34 = vmul.f32 %v9440_v10, %v1416_v9  ;;  %v3316_v63 = vmul.f32 %v9442_v11, %v1603_v46  ;;  %v9693_v14 = vld [vmem:[#allocation62_spill] sm:$0xff]  ;;  %v9694_v5 = vld [vmem:[#allocation177_spill] sm:$0xff] }
 0x25d   : > { %v2942_v27 = vadd.f32 %v2910_v15, %v2874_v30  ;;  %v3077_v19 = vadd.f32 %v9691_v6, %v3009_v62  ;;  %v3317_v23 = vmul.f32 %v9442_v11, %v1537_v58  ;;  %v3384_v55 = vmul.f32 %v9385_v51, %v7181_v21  ;;  %v9695_v6 = vld [vmem:[#allocation179_spill] sm:$0xff]  ;;  %v9697_v62 = vld [vmem:[#allocation158_spill] sm:$0xff] }
 0x25e   : > { %v7465_v22 = vadd.f32 %v2708_v7, %v2672_v43  ;;  %v3212_v41 = vadd.f32 %v3180_v31, %v3144_v12  ;;  %v3452_v49 = vmul.f32 %v9396_v56, %v7388_v1  ;;  %v3520_v13 = vmul.f32 %v7160_v32, %v7406_v36  ;;  %v9698_v43 = vld [vmem:[#allocation34_spill] sm:$0xff] }
 0x25f   : > { %v3010_v9 = vadd.f32 %v2978_v61, %v2942_v27  ;;  %v3145_v46 = vadd.f32 %v9693_v14, %v3077_v19  ;;  %v1018_v15 = vadd.f32 1.0, %v9694_v5  ;;  %v1017_v30 = vadd.f32 1.0, %v9695_v6  ;;  %v9700_v19 = vld [vmem:[#allocation136_spill] sm:$0xff]  ;;  %v9702_v6 = vld [vmem:[#allocation157_spill] sm:$0xff] }
 0x260   : > { %9692 = vst [vmem:[#allocation125_spill] sm:$0xff] %v7465_v22  ;;  %v4433_v58 = vpop.eup %4432  ;;  %v3280_v17 = vadd.f32 %v3248_v53, %v3212_v41  ;;  %v2113_v7 = vadd.f32 %v9696_v33, %v7296_v29  ;;  %v2451_v31 = vadd.f32 %v9697_v62, %v7304_v26  ;;  %v2789_v18 = vadd.f32 %v9698_v43, %v7328_v39  ;;  %v9701_v53 = vld [vmem:[#allocation132_spill] sm:$0xff]  ;;  %v9703_v33 = vld [vmem:[#allocation159_spill] sm:$0xff]  ;;  %v9710_v43 = vld [vmem:[#allocation10_spill] sm:$0xff] }
 0x261   : > { %v4435_v12 = vpop.eup %4434  ;;  %v3660_v21 = vadd.f32 1.0, %v4433_v58  ;;  %v7480_v27 = vadd.f32 %v3046_v37, %v3010_v9  ;;  %v3213_v61 = vadd.f32 %v9700_v19, %v3145_v46  ;;  %4436 = vrcp.f32 %v1018_v15  ;;  %v9704_v9 = vld [vmem:[#allocation50_spill] sm:$0xff]  ;;  %v9705_v15 = vld [vmem:[#allocation173_spill] sm:$0xff]  ;;  %v9708_v62 = vld [vmem:[#allocation160_spill] sm:$0xff] }
 0x262   : > { %v3661_v14 = vadd.f32 1.0, %v4435_v12  ;;  %v3348_v5 = vadd.f32 %v3316_v63, %v3280_v17  ;;  %4438 = vrcp.f32 %v1017_v30  ;;  %v7484_v41 = vadd.f32 %v9701_v53, %v2113_v7  ;;  %v9706_v30 = vld [vmem:[#allocation162_spill] sm:$0xff]  ;;  %v9707_v7 = vld [vmem:[#allocation171_spill] sm:$0xff] }
 0x263   : > { %9699 = vst [vmem:[#allocation52_spill] sm:$0xff] %v7480_v27  ;;  %4440 = vrcp.f32 %v3660_v21  ;;  %v3281_v29 = vadd.f32 %v3249_v34, %v3213_v61  ;;  %v7487_v26 = vadd.f32 %v9702_v6, %v2451_v31  ;;  %v7490_v39 = vadd.f32 %v9703_v33, %v2789_v18  ;;  %v9709_v34 = vld [vmem:[#allocation150_spill] sm:$0xff]  ;;  %v9711_v19 = vld [vmem:[#allocation151_spill] sm:$0xff]  ;;  %v9713_v61 = vld [vmem:[#allocation152_spill] sm:$0xff] }
 0x264   : > { %4442 = vrcp.f32 %v3661_v14  ;;  %v3416_v37 = vadd.f32 %v3384_v55, %v3348_v5  ;;  %v3127_v46 = vadd.f32 %v9704_v9, %v7355_v50  ;;  %v1038_v58 = vadd.f32 1.0, %v9705_v15  ;;  %v9712_v55 = vld [vmem:[#allocation38_spill] sm:$0xff]  ;;  %v9714_v50 = vld [vmem:[#allocation111_spill] sm:$0xff]  ;;  %v9715_v33 = vld [vmem:[#allocation5_spill] sm:$0xff] }
 0x265   : > { %v3349_v63 = vadd.f32 %v3317_v23, %v3281_v29  ;;  %v1037_v17 = vadd.f32 1.0, %v9706_v30  ;;  %v1927_v21 = vadd.f32 %v9708_v62, %v9707_v7  ;;  %v1963_v31 = vmul.f32 %v9710_v43, %v9709_v34  ;;  %v9717_v9 = vld [vmem:[#allocation184_spill] sm:$0xff]  ;;  %v9718_v15 = vld [vmem:[#allocation175_spill] sm:$0xff]  ;;  %v9719_v30 = vld [vmem:[#allocation153_spill] sm:$0xff] }
 0x266   : > { %v3484_v12 = vadd.f32 %v3452_v49, %v3416_v37  ;;  %v7501_v18 = vadd.f32 %v9711_v19, %v3127_v46  ;;  %4444 = vrcp.f32 %v1038_v58  ;;  %v2265_v14 = vadd.f32 %v9713_v61, %v9712_v55  ;;  %v9722_v19 = vld [vmem:[#allocation185_spill] sm:$0xff]  ;;  %v9723_v61 = vld [vmem:[#allocation163_spill] sm:$0xff] }
 0x267   : > { %v3417_v5 = vadd.f32 %v9714_v50, %v3349_v63  ;;  %4446 = vrcp.f32 %v1037_v17  ;;  %v1995_v23 = vadd.f32 %v1963_v31, %v1927_v21  ;;  %v2301_v53 = vmul.f32 %v9657_v0, %v9709_v34  ;;  %v9720_v17 = vld [vmem:[#allocation161_spill] sm:$0xff]  ;;  %v9724_v50 = vld [vmem:[#allocation176_spill] sm:$0xff] }
 0x268   : > { %v7508_v29 = vadd.f32 %v3520_v13, %v3484_v12  ;;  %v2438_v6 = vmul.f32 %v9678_v28, %v7388_v1  ;;  %v2506_v49 = vmul.f32 %v9464_v52, %v7406_v36  ;;  %v7516_v37 = vmul.f32 %v9464_v52, %v9715_v33  ;;  %v9741_v27 = vld [vmem:[#allocation17_spill] sm:$0xff] }
 0x269   : > { %v3485_v46 = vadd.f32 %v9717_v9, %v3417_v5  ;;  %v2063_v58 = vadd.f32 %v9718_v15, %v1995_v23  ;;  %v2333_v63 = vadd.f32 %v2301_v53, %v2265_v14  ;;  %v2603_v7 = vadd.f32 %v9720_v17, %v9719_v30  ;;  %v9726_v53 = vld [vmem:[#allocation137_spill] sm:$0xff] }
 0x26a   : > { %9716 = vst [vmem:[#allocation172_spill] sm:$0xff] %v7516_v37  ;;  %v4114_v13 = vmul.f32 -1.442695, %v7508_v29  ;;  %v2470_v62 = vadd.f32 %v2438_v6, %v7441_v47  ;;  %v2639_v21 = vmul.f32 %v5074_v20, %v9709_v34  ;;  %v7528_v31 = vmul.f32 %v9355_v45, %v7388_v1  ;;  %v9730_v30 = vld [vmem:[#allocation145_spill] sm:$0xff] }
 0x26b   : > { %v4437_v12 = vpop.eup %4436  ;;  %v7531_v55 = vadd.f32 %v9722_v19, %v3485_v46  ;;  %v2131_v14 = vadd.f32 %v9723_v61, %v2063_v58  ;;  %v2401_v5 = vadd.f32 %v9724_v50, %v2333_v63  ;;  %v7537_v23 = vmul.f32 %v9360_v40, %v7406_v36  ;;  %v9732_v63 = vld [vmem:[#allocation168_spill] sm:$0xff]  ;;  %v9733_v19 = vld [vmem:[#allocation169_spill] sm:$0xff] }
 0x26c   : > { %9721 = vst [vmem:[#allocation21_spill] sm:$0xff] %v7528_v31  ;;  %v4439_v47 = vpop.eup %4438  ;;  %4448 = vpow2.f32 %v4114_v13  ;;  %v7540_v34 = vmul.f32 %v4437_v12, %v9726_v53  ;;  %v7542_v6 = vadd.f32 %v2506_v49, %v2470_v62  ;;  %v7544_v9 = vadd.f32 %v2639_v21, %v2603_v7  ;;  %v9735_v50 = vld [vmem:[#allocation12_spill] sm:$0xff]  ;;  %v9736_v53 = vld [vmem:[#allocation47_spill] sm:$0xff] }
 0x26d   : > { %9725 = vst [vmem:[#allocation156_spill] sm:$0xff] %v7537_v23  ;;  %v4441_v15 = vpop.eup %4440  ;;  %v4115_v46 = vmul.f32 -1.442695, %v7531_v55  ;;  %v7548_v58 = vmul.f32 %v4439_v47, %v9730_v30  ;;  %v7551_v17 = vadd.f32 %v9732_v63, %v2131_v14  ;;  %v7554_v61 = vadd.f32 %v9733_v19, %v2401_v5  ;;  %v9737_v63 = vld [vmem:[#allocation53_spill] sm:$0xff] }
 0x26e   : > { %9727 = vst [vmem:[#allocation180_spill] sm:$0xff] %v7540_v34  ;;  %9728 = vst [vmem:[#allocation62_spill] sm:$0xff] %v7542_v6  ;;  %v4443_v13 = vpop.eup %4442  ;;  %v3756_v12 = vmul.f32 %v4441_v15, %v7393_v54  ;;  %v1388_v49 = vrot.slane %v7540_v34, 6  ;;  %v1509_v7 = vrot.slane %v7540_v34, 7  ;;  %v1630_v62 = vrot.slane %v7540_v34, 1 }
 0x26f   : > { %9729 = vst [vmem:[#allocation177_spill] sm:$0xff] %v7544_v9  ;;  %9731 = vst [vmem:[#allocation179_spill] sm:$0xff] %v7548_v58  ;;  %v3757_v21 = vmul.f32 %v4443_v13, %v7401_v16  ;;  %4450 = vpow2.f32 %v4115_v46  ;;  %v1751_v14 = vrot.slane %v7540_v34, 2  ;;  %v7564_v5 = vmul.f32 %v9735_v50, %v7540_v34 }
 0x270   : > { %9734 = vst [vmem:[#allocation20_spill] sm:$0xff] %v7554_v61  ;;  %v7566_v47 = vpop.eup %4444  ;;  %v3793_v54 = vsel %vm3786_vm6, %v9736_v53, %v3756_v12  ;;  %v1715_v15 = vsel %vm1607_vm4, %v1630_v62, 0.0  ;;  %v7574_v30 = vmul.f32 %v9676_v35, %v7540_v34  ;;  %v7578_v16 = vmul.f32 %v5012_v48, %v7540_v34  ;;  %v9738_v12 = vld [vmem:[#allocation14_spill] sm:$0xff] }
 0x271   : > { %v7580_v46 = vpop.eup %4446  ;;  %v3794_v19 = vsel %vm3786_vm6, %v9737_v63, %v3757_v21  ;;  %3825 = vst [vmem:[%s6728_s23 + $0x20] sm:$0xff] %v3793_v54  ;;  %v1836_v13 = vsel %vm1728_vm5, %v1751_v14, 0.0  ;;  %v7588_v53 = vmul.f32 %v9738_v12, %v1715_v15  ;;  %v7591_v36 = vmul.f32 %v9678_v28, %v1715_v15 }
 0x272   : > { %3826 = vst [vmem:[%s6728_s23 + $0x28] sm:$0xff] %v3794_v19  ;;  %v7595_v1 = vmul.f32 %v9741_v27, %v1836_v13  ;;  %v7598_v37 = vmul.f32 %v9464_v52, %v1836_v13  ;;  %v7601_v23 = vmul.f32 %v9355_v45, %v1715_v15  ;;  %v7604_v21 = vmul.f32 %v9360_v40, %v1836_v13 }
 0x273   : > { %9739 = vst [vmem:[#allocation158_spill] sm:$0xff] %v7588_v53  ;;  %9740 = vst [vmem:[#allocation34_spill] sm:$0xff] %v7591_v36  ;;  %v7608_v54 = vmul.f32 %v9291_v38, %v7540_v34  ;;  %v7611_v63 = vmul.f32 %v9362_v42, %v1715_v15  ;;  %v7614_v19 = vmul.f32 %v9365_v8, %v1836_v13  ;;  %v1508_v36 = vrot.slane %v7548_v58, 7 }
 0x274   : > { %9742 = vst [vmem:[#allocation136_spill] sm:$0xff] %v7595_v1  ;;  %9743 = vst [vmem:[#allocation132_spill] sm:$0xff] %v7598_v37  ;;  %v7618_v1 = vmul.f32 %v9385_v51, %v7540_v34  ;;  %v7621_v37 = vmul.f32 %v9396_v56, %v1715_v15  ;;  %v1629_v53 = vrot.slane %v7548_v58, 1  ;;  %v2352_v34 = vmul.f32 %v9676_v35, %v7548_v58  ;;  %v9751_v35 = vld [vmem:[#allocation7_spill] sm:$0xff] }
 0x275   : > { %9744 = vst [vmem:[#allocation157_spill] sm:$0xff] %v7601_v23  ;;  %9745 = vst [vmem:[#allocation159_spill] sm:$0xff] %v7604_v21  ;;  %v7624_v23 = vmul.f32 %v7160_v32, %v1836_v13  ;;  %v1387_v21 = vrot.slane %v7548_v58, 6  ;;  %v7641_v31 = vsel %vm1486_vm3, %v1508_v36, %v1509_v7  ;;  %v7644_v22 = vsel %vm1486_vm3, 0.0, %v1508_v36 }
 0x276   : > { %9746 = vst [vmem:[#allocation50_spill] sm:$0xff] %v7611_v63  ;;  %9747 = vst [vmem:[#allocation173_spill] sm:$0xff] %v7614_v19  ;;  %v1750_v63 = vrot.slane %v7548_v58, 2  ;;  %v2014_v19 = vmul.f32 %v9735_v50, %v7548_v58  ;;  %v4449_v33 = vpop.eup %4448  ;;  %v1946_v7 = vmul.f32 %v9710_v43, %v7644_v22  ;;  %v1947_v36 = vmul.f32 %v9710_v43, %v7641_v31 }
 0x277   : > { %9748 = vst [vmem:[#allocation162_spill] sm:$0xff] %v7618_v1  ;;  %9749 = vst [vmem:[#allocation171_spill] sm:$0xff] %v7621_v37  ;;  %v7635_v15 = vsel %vm1365_vm2, %v1387_v21, %v1388_v49  ;;  %v7638_v13 = vsel %vm1365_vm2, 0.0, %v1387_v21  ;;  %v3680_v6 = vadd.f32 1.0, %v4449_v33 }
 0x278   : > { %9750 = vst [vmem:[#allocation160_spill] sm:$0xff] %v7624_v23  ;;  %v7647_v23 = vsel %vm1607_vm4, %v1629_v53, %v1630_v62  ;;  %v7650_v50 = vsel %vm1728_vm5, %v1750_v63, %v1751_v14  ;;  %v1872_v49 = vmul.f32 %v9751_v35, %v7638_v13  ;;  %v1873_v21 = vmul.f32 %v9751_v35, %v7635_v15  ;;  %v7665_v14 = vld [vmem:[%s8887_s6] ss:$0 sm:$0xff] }
 0x279   : > { %v2082_v33 = vmul.f32 %v9738_v12, %v7647_v23  ;;  %v4451_v62 = vpop.eup %4450  ;;  %4452 = vrcp.f32 %v3680_v6  ;;  %9752 = vst [vmem:[#allocation150_spill] sm:$0xff] %v7665_v14  ;;  %v2150_v63 = vmul.f32 %v9741_v27, %v7650_v50  ;;  %v2216_v35 = vmul.f32 %v9604_v4, %v7638_v13 }
 0x27a   : > { %v1910_v53 = vadd.f32 %v7665_v14, %v1872_v49  ;;  %v3681_v37 = vadd.f32 1.0, %v4451_v62  ;;  %v1911_v43 = vadd.f32 %v7665_v14, %v1873_v21  ;;  %v2217_v12 = vmul.f32 %v9604_v4, %v7635_v15 }
 0x27b   : > { %v2284_v6 = vmul.f32 %v9657_v0, %v7644_v22  ;;  %v2248_v9 = vadd.f32 %v2216_v35, %v7310_v25  ;;  %v2285_v49 = vmul.f32 %v9657_v0, %v7641_v31  ;;  %v2420_v27 = vmul.f32 %v9678_v28, %v7647_v23 }
 0x27c   : > { %v1978_v1 = vadd.f32 %v1946_v7, %v1910_v53  ;;  %4454 = vrcp.f32 %v3681_v37  ;;  %v1979_v61 = vadd.f32 %v1947_v36, %v1911_v43  ;;  %v2249_v62 = vadd.f32 %v2217_v12, %v7484_v41 }
 0x27d   : > { %v2488_v21 = vmul.f32 %v9464_v52, %v7650_v50  ;;  %v2316_v14 = vadd.f32 %v2284_v6, %v2248_v9  ;;  %v2554_v7 = vmul.f32 %v9658_v59, %v7638_v13  ;;  %v2555_v25 = vmul.f32 %v9658_v59, %v7635_v15 }
 0x27e   : > { %v2046_v4 = vadd.f32 %v2014_v19, %v1978_v1  ;;  %v7690_v35 = vadd.f32 %v7564_v5, %v1979_v61  ;;  %v2317_v53 = vadd.f32 %v2285_v49, %v2249_v62  ;;  %v2622_v43 = vmul.f32 %v5074_v20, %v7644_v22 }
 0x27f   : > { %v2623_v41 = vmul.f32 %v5074_v20, %v7641_v31  ;;  %v2384_v12 = vadd.f32 %v2352_v34, %v2316_v14  ;;  %v2586_v1 = vadd.f32 %v2554_v7, %v7320_v57  ;;  %v2587_v9 = vadd.f32 %v2555_v25, %v7487_v26 }
 0x280   : > { %v2114_v37 = vadd.f32 %v2082_v33, %v2046_v4  ;;  %v7699_v19 = vadd.f32 %v7574_v30, %v2317_v53  ;;  %v2690_v61 = vmul.f32 %v5012_v48, %v7548_v58  ;;  %v2758_v5 = vmul.f32 %v9355_v45, %v7647_v23 }
 0x281   : > { %v2826_v36 = vmul.f32 %v9360_v40, %v7650_v50  ;;  %v2452_v4 = vadd.f32 %v2420_v27, %v2384_v12  ;;  %v2654_v34 = vadd.f32 %v2622_v43, %v2586_v1  ;;  %v2655_v33 = vadd.f32 %v2623_v41, %v2587_v9  ;;  %v9755_v9 = vld [vmem:[#allocation44_spill] sm:$0xff] }
 0x282   : > { %v7707_v6 = vadd.f32 %v2150_v63, %v2114_v37  ;;  %v2892_v57 = vmul.f32 %v9338_v44, %v7638_v13  ;;  %v2893_v26 = vmul.f32 %v9338_v44, %v7635_v15  ;;  %v2960_v30 = vmul.f32 %v9353_v24, %v7644_v22 }
 0x283   : > { %v2961_v14 = vmul.f32 %v9353_v24, %v7641_v31  ;;  %v4453_v49 = vpop.eup %4452  ;;  %v7717_v62 = vadd.f32 %v2488_v21, %v2452_v4  ;;  %v2722_v63 = vadd.f32 %v2690_v61, %v2654_v34  ;;  %v7720_v27 = vadd.f32 %v7578_v16, %v2655_v33 }
 0x284   : > { %9753 = vst [vmem:[#allocation151_spill] sm:$0xff] %v7707_v6  ;;  %v3028_v7 = vmul.f32 %v9291_v38, %v7548_v58  ;;  %v3776_v25 = vmul.f32 %v4453_v49, %v7508_v29  ;;  %v2924_v53 = vadd.f32 %v2892_v57, %v7348_v3  ;;  %v2925_v43 = vadd.f32 %v2893_v26, %v7490_v39  ;;  %v9761_v49 = vld [vmem:[#allocation165_spill] sm:$0xff]  ;;  %v9781_v6 = vld [vmem:[#allocation56_spill] sm:$0xff] }
 0x285   : > { %9754 = vst [vmem:[#allocation38_spill] sm:$0xff] %v7717_v62  ;;  %v3096_v41 = vmul.f32 %v9362_v42, %v7647_v23  ;;  %v2790_v37 = vadd.f32 %v2758_v5, %v2722_v63  ;;  %v3164_v21 = vmul.f32 %v9365_v8, %v7650_v50  ;;  %v3230_v16 = vmul.f32 %v9440_v10, %v7638_v13 }
 0x286   : > { %v3231_v12 = vmul.f32 %v9440_v10, %v7635_v15  ;;  %v4455_v1 = vpop.eup %4454  ;;  %v3813_v3 = vsel %vm3786_vm6, %v9755_v9, %v3776_v25  ;;  %v2992_v29 = vadd.f32 %v2960_v30, %v2924_v53  ;;  %v2993_v39 = vadd.f32 %v2961_v14, %v2925_v43  ;;  %v9759_v14 = vld [vmem:[#allocation147_spill] sm:$0xff]  ;;  %v9762_v25 = vld [vmem:[#allocation146_spill] sm:$0xff]  ;;  %v9763_v43 = vld [vmem:[#allocation20_spill] sm:$0xff] }
 0x287   : > { %v3298_v61 = vmul.f32 %v9442_v11, %v7644_v22  ;;  %v3777_v5 = vmul.f32 %v4455_v1, %v7531_v55  ;;  %3845 = vst [vmem:[%s6728_s23 + $0xc0] sm:$0xff] %v3813_v3  ;;  %v7742_v4 = vadd.f32 %v2826_v36, %v2790_v37  ;;  %v3262_v13 = vadd.f32 %v3230_v16, %v7372_v60  ;;  %v9758_v22 = vld [vmem:[#allocation119_spill] sm:$0xff]  ;;  %v9765_v16 = vld [vmem:[#allocation177_spill] sm:$0xff]  ;;  %v9768_v1 = vld [vmem:[#allocation162_spill] sm:$0xff] }
 0x288   : > { %v3263_v15 = vadd.f32 %v3231_v12, %v7501_v18  ;;  %v3060_v34 = vadd.f32 %v3028_v7, %v2992_v29  ;;  %v7747_v33 = vadd.f32 %v7608_v54, %v2993_v39  ;;  %v3299_v57 = vmul.f32 %v9442_v11, %v7641_v31 }
 0x289   : > { %9756 = vst [vmem:[#allocation152_spill] sm:$0xff] %v7742_v4  ;;  %v3366_v26 = vmul.f32 %v9385_v51, %v7548_v58  ;;  %v3814_v55 = vsel %vm3786_vm6, %v9758_v22, %v3777_v5  ;;  %v3330_v36 = vadd.f32 %v3298_v61, %v3262_v13  ;;  %v3434_v60 = vmul.f32 %v9396_v56, %v7647_v23  ;;  %v9764_v23 = vld [vmem:[#allocation170_spill] sm:$0xff]  ;;  %v9769_v61 = vld [vmem:[#allocation171_spill] sm:$0xff]  ;;  %v9778_v58 = vld [vmem:[#allocation21_spill] sm:$0xff] }
 0x28a   : > { %9757 = vst [vmem:[#allocation111_spill] sm:$0xff] %v7747_v33  ;;  %v3502_v18 = vmul.f32 %v7160_v32, %v7650_v50  ;;  %3846 = vst [vmem:[%s6728_s23 + $0xc8] sm:$0xff] %v3814_v55  ;;  %v3128_v54 = vadd.f32 %v3096_v41, %v3060_v34  ;;  %v3331_v30 = vadd.f32 %v3299_v57, %v3263_v15  ;;  %v9766_v50 = vld [vmem:[#allocation178_spill] sm:$0xff]  ;;  %v9770_v55 = vld [vmem:[#allocation160_spill] sm:$0xff] }
 0x28b   : > { %v7763_v31 = vmul.f32 %v7566_v47, %v9759_v14  ;;  %v7767_v63 = vmul.f32 %v7580_v46, %v9761_v49  ;;  %v3398_v7 = vadd.f32 %v3366_v26, %v3330_v36  ;;  %v2267_v53 = vadd.f32 %v9762_v25, %v7551_v17  ;;  %v9779_v4 = vld [vmem:[#allocation133_spill] sm:$0xff]  ;;  %v9792_v33 = vld [vmem:[#allocation182_spill] sm:$0xff] }
 0x28c   : > { %v2537_v37 = vadd.f32 %v9764_v23, %v9763_v43  ;;  %v2739_v12 = vadd.f32 %v9766_v50, %v9765_v16  ;;  %v7775_v41 = vadd.f32 %v3164_v21, %v3128_v54  ;;  %v3399_v9 = vadd.f32 %v9768_v1, %v3331_v30 }
 0x28d   : > { %9760 = vst [vmem:[#allocation184_spill] sm:$0xff] %v7763_v31  ;;  %v1418_v47 = vrot.slane %v7763_v31, 6  ;;  %v1539_v3 = vrot.slane %v7763_v31, 7  ;;  %v3466_v46 = vadd.f32 %v3434_v60, %v3398_v7  ;;  %v1660_v29 = vrot.slane %v7763_v31, 1 }
 0x28e   : > { %9767 = vst [vmem:[#allocation175_spill] sm:$0xff] %v7775_v41  ;;  %v1781_v39 = vrot.slane %v7763_v31, 2  ;;  %v7784_v17 = vmul.f32 %v5012_v48, %v7763_v31  ;;  %v3467_v5 = vadd.f32 %v9769_v61, %v3399_v9  ;;  %v7789_v21 = vmul.f32 %v9291_v38, %v7763_v31  ;;  %v9771_v9 = vld [vmem:[#allocation24_spill] sm:$0xff] }
 0x28f   : > { %v7793_v13 = vmul.f32 %v9385_v51, %v7763_v31  ;;  %v1417_v15 = vrot.slane %v7767_v63, 6  ;;  %v7796_v34 = vadd.f32 %v3502_v18, %v3466_v46  ;;  %v1725_v57 = vsel %vm1607_vm4, %v1660_v29, 0.0  ;;  %v9783_v31 = vld [vmem:[#allocation156_spill] sm:$0xff] }
 0x290   : > { %v1846_v26 = vsel %vm1728_vm5, %v1781_v39, 0.0  ;;  %v1538_v22 = vrot.slane %v7767_v63, 7  ;;  %v7802_v36 = vadd.f32 %v9770_v55, %v3467_v5  ;;  %v7805_v60 = vmul.f32 %v9355_v45, %v1725_v57 }
 0x291   : > { %v7808_v54 = vmul.f32 %v9360_v40, %v1846_v26  ;;  %v7811_v30 = vmul.f32 %v9362_v42, %v1725_v57  ;;  %v4096_v18 = vmul.f32 -1.442695, %v7796_v34  ;;  %v7815_v14 = vmul.f32 %v9365_v8, %v1846_v26 }
 0x292   : > { %v7818_v49 = vmul.f32 %v9396_v56, %v1725_v57  ;;  %v7821_v7 = vmul.f32 %v7160_v32, %v1846_v26  ;;  %v4097_v25 = vmul.f32 -1.442695, %v7802_v36  ;;  %v7825_v43 = vsel %vm1365_vm2, %v1417_v15, %v1418_v47 }
 0x293   : > { %v7828_v23 = vsel %vm1365_vm2, 0.0, %v1417_v15  ;;  %v7831_v16 = vsel %vm1486_vm3, %v1538_v22, %v1539_v3  ;;  %4456 = vpow2.f32 %v4096_v18  ;;  %v7834_v50 = vsel %vm1486_vm3, 0.0, %v1538_v22  ;;  %v9772_v15 = vld [vmem:[#allocation134_spill] sm:$0xff]  ;;  %v9773_v22 = vld [vmem:[#allocation104_spill] sm:$0xff] }
 0x294   : > { %v1659_v1 = vrot.slane %v7767_v63, 1  ;;  %v1780_v32 = vrot.slane %v7767_v63, 2  ;;  %4458 = vpow2.f32 %v4097_v25  ;;  %v2335_v46 = vadd.f32 %v9771_v9, %v2267_v53  ;;  %v9774_v53 = vld [vmem:[#allocation62_spill] sm:$0xff] }
 0x295   : > { %v2574_v47 = vmul.f32 %v9658_v59, %v7828_v23  ;;  %v2575_v61 = vmul.f32 %v9658_v59, %v7825_v43  ;;  %v2605_v57 = vadd.f32 %v9772_v15, %v2537_v37  ;;  %v2642_v26 = vmul.f32 %v5074_v20, %v7834_v50  ;;  %v9777_v15 = vld [vmem:[#allocation125_spill] sm:$0xff] }
 0x296   : > { %v7844_v3 = vsel %vm1607_vm4, %v1659_v1, %v1660_v29  ;;  %v7847_v5 = vsel %vm1728_vm5, %v1780_v32, %v1781_v39  ;;  %v2403_v55 = vadd.f32 %v9773_v22, %v2335_v46  ;;  %v2643_v25 = vmul.f32 %v5074_v20, %v7831_v16  ;;  %v9775_v29 = vld [vmem:[#allocation174_spill] sm:$0xff]  ;;  %v9776_v32 = vld [vmem:[#allocation167_spill] sm:$0xff] }
 0x297   : > { %v2606_v18 = vadd.f32 %v2574_v47, %v9774_v53  ;;  %v2710_v9 = vmul.f32 %v5012_v48, %v7767_v63  ;;  %v2673_v1 = vadd.f32 %v9775_v29, %v2605_v57  ;;  %v2778_v39 = vmul.f32 %v9355_v45, %v7844_v3  ;;  %v9780_v47 = vld [vmem:[#allocation5_spill] sm:$0xff]  ;;  %v9782_v57 = vld [vmem:[#allocation59_spill] sm:$0xff]  ;;  %v9787_v45 = vld [vmem:[#allocation6_spill] sm:$0xff] }
 0x298   : > { %v2807_v37 = vadd.f32 %v9776_v32, %v2739_v12  ;;  %v2808_v41 = vadd.f32 %v9778_v58, %v9777_v15  ;;  %v2471_v46 = vadd.f32 %v9779_v4, %v2403_v55  ;;  %v2845_v53 = vmul.f32 %v9360_v40, %v9780_v47  ;;  %v9784_v32 = vld [vmem:[#allocation172_spill] sm:$0xff]  ;;  %v9789_v48 = vld [vmem:[#allocation11_spill] sm:$0xff] }
 0x299   : > { %v2674_v22 = vadd.f32 %v2642_v26, %v2606_v18  ;;  %v2846_v62 = vmul.f32 %v9360_v40, %v7847_v5  ;;  %v2741_v0 = vadd.f32 %v9781_v6, %v2673_v1  ;;  %v2912_v12 = vmul.f32 %v9338_v44, %v7828_v23  ;;  %v9785_v26 = vld [vmem:[#allocation8_spill] sm:$0xff]  ;;  %v9786_v18 = vld [vmem:[#allocation35_spill] sm:$0xff]  ;;  %v9788_v1 = vld [vmem:[#allocation166_spill] sm:$0xff] }
 0x29a   : > { %v2875_v29 = vadd.f32 %v9782_v57, %v2807_v37  ;;  %v2876_v52 = vadd.f32 %v9783_v31, %v2808_v41  ;;  %v2539_v58 = vadd.f32 %v9784_v32, %v2471_v46  ;;  %v2913_v4 = vmul.f32 %v9338_v44, %v7825_v43 }
 0x29b   : > { %v2742_v15 = vadd.f32 %v2710_v9, %v2674_v22  ;;  %v2914_v55 = vmul.f32 %v9338_v44, %v9785_v26  ;;  %v2809_v28 = vadd.f32 %v9786_v18, %v2741_v0  ;;  %v2915_v6 = vmul.f32 %v9338_v44, %v9787_v45  ;;  %v9790_v0 = vld [vmem:[#allocation9_spill] sm:$0xff]  ;;  %v9791_v44 = vld [vmem:[#allocation154_spill] sm:$0xff] }
 0x29c   : > { %v2943_v37 = vadd.f32 %v9788_v1, %v2875_v29  ;;  %v2944_v31 = vadd.f32 %v2912_v12, %v2876_v52  ;;  %v2607_v41 = vadd.f32 %v2575_v61, %v2539_v58  ;;  %v2980_v46 = vmul.f32 %v9353_v24, %v7834_v50 }
 0x29d   : > { %v2810_v57 = vadd.f32 %v2778_v39, %v2742_v15  ;;  %v2981_v9 = vmul.f32 %v9353_v24, %v7831_v16  ;;  %v4457_v22 = vpop.eup %4456  ;;  %v2877_v32 = vadd.f32 %v2845_v53, %v2809_v28  ;;  %v2982_v20 = vmul.f32 %v9353_v24, %v9789_v48 }
 0x29e   : > { %v2983_v18 = vmul.f32 %v9353_v24, %v9790_v0  ;;  %v3011_v59 = vadd.f32 %v9791_v44, %v2943_v37  ;;  %v4459_v29 = vpop.eup %4458  ;;  %v3662_v52 = vadd.f32 1.0, %v4457_v22  ;;  %v2675_v61 = vadd.f32 %v2643_v25, %v2607_v41  ;;  %v9793_v22 = vld [vmem:[#allocation102_spill] sm:$0xff]  ;;  %v9794_v41 = vld [vmem:[#allocation13_spill] sm:$0xff] }
 0x29f   : > { %v2878_v39 = vadd.f32 %v2846_v62, %v2810_v57  ;;  %v3012_v12 = vadd.f32 %v2980_v46, %v2944_v31  ;;  %v3663_v58 = vadd.f32 1.0, %v4459_v29  ;;  %v2945_v15 = vadd.f32 %v2913_v4, %v2877_v32 }
 0x2a0   : > { %v3048_v1 = vmul.f32 %v9291_v38, %v7767_v63  ;;  %v3050_v28 = vmul.f32 0.0, %v9291_v38  ;;  %4460 = vrcp.f32 %v3662_v52  ;;  %v2743_v53 = vadd.f32 %v7784_v17, %v2675_v61 }
 0x2a1   : > { %v2946_v40 = vadd.f32 %v2914_v55, %v2878_v39  ;;  %v3079_v24 = vadd.f32 %v9792_v33, %v3011_v59  ;;  %4462 = vrcp.f32 %v3663_v58  ;;  %v3013_v44 = vadd.f32 %v2981_v9, %v2945_v15  ;;  %v9795_v55 = vld [vmem:[#allocation15_spill] sm:$0xff]  ;;  %v9796_v33 = vld [vmem:[#allocation52_spill] sm:$0xff] }
 0x2a2   : > { %v3080_v37 = vadd.f32 %v3048_v1, %v3012_v12  ;;  %v3114_v62 = vmul.f32 %v9362_v42, %v9793_v22  ;;  %v2811_v25 = vadd.f32 %v7805_v60, %v2743_v53  ;;  %v3116_v31 = vmul.f32 %v9362_v42, %v7844_v3  ;;  %v9797_v9 = vld [vmem:[#allocation183_spill] sm:$0xff]  ;;  %v9799_v12 = vld [vmem:[#allocation16_spill] sm:$0xff] }
 0x2a3   : > { %v3014_v4 = vadd.f32 %v2982_v20, %v2946_v40  ;;  %v3118_v57 = vmul.f32 %v9362_v42, %v9794_v41  ;;  %v3081_v17 = vadd.f32 %v7789_v21, %v3013_v44  ;;  %v3119_v59 = vmul.f32 %v9362_v42, %v9795_v55  ;;  %v9798_v20 = vld [vmem:[#allocation115_spill] sm:$0xff] }
 0x2a4   : > { %v3146_v46 = vadd.f32 %v3114_v62, %v9796_v33  ;;  %v3147_v32 = vadd.f32 %v9797_v9, %v3079_v24  ;;  %v2879_v29 = vadd.f32 %v7808_v54, %v2811_v25  ;;  %v3148_v60 = vadd.f32 %v3116_v31, %v3080_v37 }
 0x2a5   : > { %v3082_v52 = vadd.f32 %v3050_v28, %v3014_v4  ;;  %v3182_v40 = vmul.f32 %v9365_v8, %v9798_v20  ;;  %v3149_v61 = vadd.f32 %v7811_v30, %v3081_v17  ;;  %v3183_v39 = vmul.f32 %v9365_v8, %v9780_v47 }
 0x2a6   : > { %v3184_v21 = vmul.f32 %v9365_v8, %v7847_v5  ;;  %v3186_v58 = vmul.f32 %v9365_v8, %v9799_v12  ;;  %v2947_v15 = vadd.f32 %v2915_v6, %v2879_v29  ;;  %v3250_v54 = vmul.f32 %v9440_v10, %v7828_v23 }
 0x2a7   : > { %v3150_v24 = vadd.f32 %v3118_v57, %v3082_v52  ;;  %v3214_v1 = vadd.f32 %v3182_v40, %v3146_v46  ;;  %v3215_v53 = vadd.f32 %v3183_v39, %v3147_v32  ;;  %v3217_v37 = vadd.f32 %v7815_v14, %v3149_v61  ;;  %v9800_v32 = vld [vmem:[#allocation131_spill] sm:$0xff] }
 0x2a8   : > { %v3216_v44 = vadd.f32 %v3184_v21, %v3148_v60  ;;  %v3251_v30 = vmul.f32 %v9440_v10, %v7825_v43  ;;  %v3015_v47 = vadd.f32 %v2983_v18, %v2947_v15  ;;  %v3252_v62 = vmul.f32 %v9440_v10, %v9785_v26 }
 0x2a9   : > { %v3218_v22 = vadd.f32 %v3186_v58, %v3150_v24  ;;  %v3253_v6 = vmul.f32 %v9440_v10, %v9787_v45  ;;  %v3282_v25 = vadd.f32 %v3250_v54, %v3214_v1  ;;  %v3318_v23 = vmul.f32 %v9442_v11, %v7834_v50  ;;  %v7958_v58 = vld [vmem:[%s8886_s5 + $0x18] ss:$0 sm:$0xff] }
 0x2aa   : > { %v3283_v4 = vadd.f32 %v3251_v30, %v3215_v53  ;;  %v3319_v31 = vmul.f32 %v9442_v11, %v7831_v16  ;;  %v4461_v14 = vpop.eup %4460  ;;  %v3083_v57 = vadd.f32 %v3050_v28, %v3015_v47  ;;  %v3284_v17 = vadd.f32 %v3252_v62, %v3216_v44  ;;  %9803 = vst [vmem:[#allocation153_spill] sm:$0xff] %v7958_v58 }
 0x2ab   : > { %v3285_v43 = vadd.f32 %v3253_v6, %v3217_v37  ;;  %v3286_v18 = vadd.f32 %v3252_v62, %v3218_v22  ;;  %v4463_v55 = vpop.eup %4462  ;;  %v3758_v26 = vmul.f32 %v4461_v14, %v7796_v34  ;;  %v3320_v45 = vmul.f32 %v9442_v11, %v9789_v48  ;;  %v9801_v48 = vld [vmem:[#allocation28_spill] sm:$0xff]  ;;  %v9804_v37 = vld [vmem:[#allocation139_spill] sm:$0xff] }
 0x2ac   : > { %v3321_v33 = vmul.f32 %v9442_v11, %v9790_v0  ;;  %v3350_v50 = vadd.f32 %v3318_v23, %v3282_v25  ;;  %v3759_v46 = vmul.f32 %v4463_v55, %v7802_v36  ;;  %v3151_v16 = vadd.f32 %v3119_v59, %v3083_v57  ;;  %v9802_v0 = vld [vmem:[#allocation48_spill] sm:$0xff]  ;;  %v9807_v57 = vld [vmem:[#allocation51_spill] sm:$0xff] }
 0x2ad   : > { %v3351_v9 = vadd.f32 %v3319_v31, %v3283_v4  ;;  %v3386_v28 = vmul.f32 %v9385_v51, %v7767_v63  ;;  %v3795_v29 = vsel %vm3786_vm6, %v9800_v32, %v3758_v26  ;;  %v3352_v34 = vadd.f32 %v3320_v45, %v3284_v17  ;;  %v9810_v32 = vld [vmem:[#allocation157_spill] sm:$0xff] }
 0x2ae   : > { %v3353_v52 = vadd.f32 %v3321_v33, %v3285_v43  ;;  %v3354_v60 = vadd.f32 %v3320_v45, %v3286_v18  ;;  %v3796_v20 = vsel %vm3786_vm6, %v9801_v48, %v3759_v46  ;;  %3827 = vst [vmem:[%s6728_s23 + $0x30] sm:$0xff] %v3795_v29  ;;  %v3219_v40 = vadd.f32 %v9802_v0, %v3151_v16  ;;  %v9808_v46 = vld [vmem:[#allocation158_spill] sm:$0xff] }
 0x2af   : > { %v3388_v36 = vmul.f32 0.0, %v9385_v51  ;;  %v3418_v59 = vadd.f32 %v3386_v28, %v3350_v50  ;;  %3828 = vst [vmem:[%s6728_s23 + $0x38] sm:$0xff] %v3796_v20  ;;  %v3419_v61 = vadd.f32 %v7793_v13, %v3351_v9  ;;  %v3454_v39 = vmul.f32 %v9396_v56, %v7844_v3  ;;  %v9809_v9 = vld [vmem:[#allocation34_spill] sm:$0xff]  ;;  %v9813_v20 = vld [vmem:[#allocation143_spill] sm:$0xff] }
 0x2b0   : > { %v3456_v21 = vmul.f32 %v9396_v56, %v9794_v41  ;;  %v3522_v15 = vmul.f32 %v7958_v58, %v7847_v5  ;;  %v3287_v24 = vadd.f32 %v3253_v6, %v3219_v40  ;;  %v3524_v3 = vmul.f32 %v7958_v58, %v9799_v12  ;;  %v4560_v41 = vld [vmem:[%s8885_s4] ss:$0 sm:$0xff]  ;;  %v9806_v12 = vld [vmem:[#allocation186_spill] sm:$0xff]  ;;  %v9814_v40 = vld [vmem:[#allocation136_spill] sm:$0xff] }
 0x2b1   : > { %v3420_v1 = vadd.f32 %v3388_v36, %v3352_v34  ;;  %v3421_v54 = vadd.f32 %v3388_v36, %v3353_v52  ;;  %v3422_v53 = vadd.f32 %v3388_v36, %v3354_v60  ;;  %v3486_v44 = vadd.f32 %v3454_v39, %v3418_v59  ;;  %v9805_v5 = vld [vmem:[#allocation49_spill] sm:$0xff]  ;;  %v9811_v52 = vld [vmem:[#allocation111_spill] sm:$0xff]  ;;  %v9812_v60 = vld [vmem:[#allocation50_spill] sm:$0xff] }
 0x2b2   : > { %v3487_v13 = vadd.f32 %v7818_v49, %v3419_v61  ;;  %v7969_v30 = vadd.f32 %v4560_v41, %v9804_v37  ;;  %v3355_v47 = vadd.f32 %v3321_v33, %v3287_v24  ;;  %v7979_v23 = vadd.f32 %v4560_v41, %v9806_v12  ;;  %v9817_v39 = vld [vmem:[#allocation173_spill] sm:$0xff] }
 0x2b3   : > { %v3488_v22 = vadd.f32 %v3456_v21, %v3420_v1  ;;  %v3489_v62 = vadd.f32 %v9805_v5, %v3421_v54  ;;  %v3490_v6 = vadd.f32 %v3456_v21, %v3422_v53  ;;  %v7972_v25 = vadd.f32 %v3522_v15, %v3486_v44  ;;  %v9818_v24 = vld [vmem:[#allocation101_spill] sm:$0xff]  ;;  %v9821_v53 = vld [vmem:[#allocation100_spill] sm:$0xff] }
 0x2b4   : > { %v7975_v4 = vadd.f32 %v7821_v7, %v3487_v13  ;;  %v4065_v49 = vmul.f32 -1.442695, %v7969_v30  ;;  %v3423_v31 = vadd.f32 %v3388_v36, %v3355_v47  ;;  %v4064_v7 = vmul.f32 -1.442695, %v7979_v23  ;;  %v9819_v1 = vld [vmem:[#allocation33_spill] sm:$0xff]  ;;  %v9823_v13 = vld [vmem:[#allocation118_spill] sm:$0xff] }
 0x2b5   : > { %v7981_v14 = vadd.f32 %v3524_v3, %v3488_v22  ;;  %v7984_v17 = vadd.f32 %v9807_v57, %v3489_v62  ;;  %v7986_v43 = vadd.f32 %v3524_v3, %v3490_v6  ;;  %v4116_v18 = vmul.f32 -1.442695, %v7972_v25  ;;  %v9828_v62 = vld [vmem:[#allocation40_spill] sm:$0xff] }
 0x2b6   : > { %v4117_v55 = vmul.f32 -1.442695, %v7975_v4  ;;  %4464 = vpow2.f32 %v4065_v49  ;;  %v3491_v26 = vadd.f32 %v9805_v5, %v3423_v31  ;;  %v2115_v16 = vadd.f32 %v9808_v46, %v7690_v35  ;;  %v9815_v35 = vld [vmem:[#allocation132_spill] sm:$0xff]  ;;  %v9830_v49 = vld [vmem:[#allocation107_spill] sm:$0xff]  ;;  %v9832_v31 = vld [vmem:[#allocation113_spill] sm:$0xff] }
 0x2b7   : > { %v4118_v45 = vmul.f32 -1.442695, %v7981_v14  ;;  %v4119_v33 = vmul.f32 -1.442695, %v7984_v17  ;;  %v4120_v50 = vmul.f32 -1.442695, %v7986_v43  ;;  %4466 = vpow2.f32 %v4116_v18 }
 0x2b8   : > { %v2453_v28 = vadd.f32 %v9809_v9, %v7699_v19  ;;  %v2791_v29 = vadd.f32 %v9810_v32, %v7720_v27  ;;  %v8002_v34 = vadd.f32 %v9807_v57, %v3491_v26  ;;  %4468 = vpow2.f32 %v4117_v55  ;;  %v9816_v19 = vld [vmem:[#allocation159_spill] sm:$0xff]  ;;  %v9827_v5 = vld [vmem:[#allocation108_spill] sm:$0xff]  ;;  %v9833_v57 = vld [vmem:[#allocation41_spill] sm:$0xff] }
 0x2b9   : > { %v3129_v48 = vadd.f32 %v9812_v60, %v9811_v52  ;;  %v8007_v0 = vadd.f32 %v4560_v41, %v9813_v20  ;;  %4470 = vpow2.f32 %v4118_v45  ;;  %v8010_v36 = vadd.f32 %v9814_v40, %v2115_v16  ;;  %v9835_v55 = vld [vmem:[#allocation112_spill] sm:$0xff]  ;;  %v9837_v45 = vld [vmem:[#allocation85_spill] sm:$0xff]  ;;  %v9840_v16 = vld [vmem:[#allocation114_spill] sm:$0xff] }
 0x2ba   : > { %v8013_v59 = vadd.f32 %v9815_v35, %v2453_v28  ;;  %v8016_v61 = vadd.f32 %v9816_v19, %v2791_v29  ;;  %4472 = vpow2.f32 %v4119_v33  ;;  %v4121_v27 = vmul.f32 -1.442695, %v8002_v34  ;;  %v9838_v33 = vld [vmem:[#allocation23_spill] sm:$0xff]  ;;  %v9845_v29 = vld [vmem:[#allocation42_spill] sm:$0xff] }
 0x2bb   : > { %v8020_v21 = vadd.f32 %v9817_v39, %v3129_v48  ;;  %v4067_v15 = vmul.f32 -1.442695, %v8007_v0  ;;  %v8025_v54 = vmul.f32 %v9819_v1, %v9818_v24  ;;  %v8029_v44 = vmul.f32 %v9362_v42, %v9821_v53  ;;  %v9841_v9 = vld [vmem:[#allocation31_spill] sm:$0xff] }
 0x2bc   : > { %4474 = vpow2.f32 %v4120_v50  ;;  %v8032_v3 = vadd.f32 %v4560_v41, %v9823_v13  ;;  %v8036_v37 = vmul.f32 %v9365_v8, %v9818_v24  ;;  %v8040_v47 = vmul.f32 %v9396_v56, %v9821_v53  ;;  %v9848_v48 = vld [vmem:[#allocation43_spill] sm:$0xff] }
 0x2bd   : > { %9820 = vst [vmem:[#allocation161_spill] sm:$0xff] %v8025_v54  ;;  %9822 = vst [vmem:[#allocation185_spill] sm:$0xff] %v8029_v44  ;;  %v8044_v22 = vmul.f32 %v7958_v58, %v9818_v24  ;;  %4476 = vpow2.f32 %v4121_v27  ;;  %v8048_v6 = vmul.f32 %v9828_v62, %v9827_v5  ;;  %v8052_v41 = vmul.f32 %v9828_v62, %v9830_v49  ;;  %v9876_v44 = vld [vmem:[#allocation117_spill] sm:$0xff] }
 0x2be   : > { %9824 = vst [vmem:[#allocation163_spill] sm:$0xff] %v8036_v37  ;;  %9825 = vst [vmem:[#allocation176_spill] sm:$0xff] %v8040_v47  ;;  %4478 = vpow2.f32 %v4064_v7  ;;  %v4066_v12 = vmul.f32 -1.442695, %v8032_v3  ;;  %v8057_v18 = vmul.f32 %v9833_v57, %v9832_v31  ;;  %v8061_v26 = vmul.f32 %v9833_v57, %v9835_v55  ;;  %v9843_v7 = vld [vmem:[#allocation120_spill] sm:$0xff]  ;;  %v9880_v54 = vld [vmem:[#allocation129_spill] sm:$0xff] }
 0x2bf   : > { %9826 = vst [vmem:[#allocation137_spill] sm:$0xff] %v8044_v22  ;;  %9829 = vst [vmem:[#allocation145_spill] sm:$0xff] %v8048_v6  ;;  %v8065_v50 = vmul.f32 %v9838_v33, %v9837_v45  ;;  %4480 = vpow2.f32 %v4067_v15  ;;  %v8069_v28 = vmul.f32 %v9841_v9, %v9840_v16  ;;  %v8073_v32 = vmul.f32 %v9819_v1, %v9843_v7  ;;  %v9938_v6 = vld [vmem:[#allocation10_spill] sm:$0xff] }
 0x2c0   : > { %9831 = vst [vmem:[#allocation168_spill] sm:$0xff] %v8052_v41  ;;  %9834 = vst [vmem:[#allocation169_spill] sm:$0xff] %v8057_v18  ;;  %v4465_v46 = vpop.eup %4464  ;;  %v8077_v52 = vmul.f32 %v9845_v29, %v9827_v5  ;;  %4482 = vpow2.f32 %v4066_v12  ;;  %v8081_v60 = vmul.f32 %v9845_v29, %v9830_v49  ;;  %v8085_v20 = vmul.f32 %v9848_v48, %v9832_v31 }
 0x2c1   : > { %9836 = vst [vmem:[#allocation47_spill] sm:$0xff] %v8061_v26  ;;  %9839 = vst [vmem:[#allocation53_spill] sm:$0xff] %v8065_v50  ;;  %v8089_v40 = vmul.f32 %v9848_v48, %v9835_v55  ;;  %v1020_v35 = vadd.f32 1.0, %v4465_v46  ;;  %v4467_v19 = vpop.eup %4466  ;;  %v8093_v27 = vmul.f32 %v9291_v38, %v9837_v45  ;;  %v8097_v39 = vmul.f32 %v9362_v42, %v9840_v16 }
 0x2c2   : > { %9842 = vst [vmem:[#allocation44_spill] sm:$0xff] %v8069_v28  ;;  %9844 = vst [vmem:[#allocation119_spill] sm:$0xff] %v8073_v32  ;;  %v8101_v15 = vmul.f32 %v9365_v8, %v9843_v7  ;;  %v8105_v24 = vmul.f32 %v9440_v10, %v9827_v5  ;;  %v4469_v53 = vpop.eup %4468  ;;  %v8109_v13 = vmul.f32 %v9440_v10, %v9830_v49  ;;  %v3682_v46 = vadd.f32 1.0, %v4467_v19 }
 0x2c3   : > { %9846 = vst [vmem:[#allocation147_spill] sm:$0xff] %v8077_v52  ;;  %9847 = vst [vmem:[#allocation165_spill] sm:$0xff] %v8081_v60  ;;  %v8113_v12 = vmul.f32 %v9442_v11, %v9832_v31  ;;  %4484 = vrcp.f32 %v1020_v35  ;;  %v4471_v22 = vpop.eup %4470  ;;  %v8117_v47 = vmul.f32 %v9442_v11, %v9835_v55  ;;  %v8121_v5 = vmul.f32 %v9385_v51, %v9837_v45 }
 0x2c4   : > { %9849 = vst [vmem:[#allocation146_spill] sm:$0xff] %v8085_v20  ;;  %9850 = vst [vmem:[#allocation20_spill] sm:$0xff] %v8089_v40  ;;  %v3683_v49 = vadd.f32 1.0, %v4469_v53  ;;  %v3684_v55 = vadd.f32 1.0, %v4471_v22  ;;  %4486 = vrcp.f32 %v3682_v46 }
 0x2c5   : > { %9851 = vst [vmem:[#allocation170_spill] sm:$0xff] %v8093_v27  ;;  %9852 = vst [vmem:[#allocation177_spill] sm:$0xff] %v8097_v39  ;;  %v9878_v39 = vld [vmem:[#allocation127_spill] sm:$0xff] }
 0x2c6   : > { %9853 = vst [vmem:[#allocation178_spill] sm:$0xff] %v8101_v15  ;;  %9854 = vst [vmem:[#allocation162_spill] sm:$0xff] %v8105_v24  ;;  %v9859_v24 = vld [vmem:[#allocation103_spill] sm:$0xff]  ;;  %v9861_v15 = vld [vmem:[#allocation128_spill] sm:$0xff]  ;;  %4488 = vrcp.f32 %v3683_v49 }
 0x2c7   : > { %9855 = vst [vmem:[#allocation171_spill] sm:$0xff] %v8109_v13  ;;  %9856 = vst [vmem:[#allocation160_spill] sm:$0xff] %v8113_v12  ;;  %v8125_v37 = vmul.f32 %v9291_v38, %v9859_v24  ;;  %v4473_v13 = vpop.eup %4472  ;;  %v8129_v31 = vmul.f32 %v9362_v42, %v9861_v15  ;;  %v8133_v35 = vmul.f32 %v9385_v51, %v9859_v24  ;;  %v9868_v24 = vld [vmem:[#allocation122_spill] sm:$0xff]  ;;  %4490 = vrcp.f32 %v3684_v55 }
 0x2c8   : > { %9857 = vst [vmem:[#allocation24_spill] sm:$0xff] %v8117_v47  ;;  %9858 = vst [vmem:[#allocation134_spill] sm:$0xff] %v8121_v5  ;;  %v4475_v19 = vpop.eup %4474  ;;  %v9864_v47 = vld [vmem:[#allocation130_spill] sm:$0xff]  ;;  %v8141_v5 = vmul.f32 %v9396_v56, %v9861_v15  ;;  %v3685_v53 = vadd.f32 1.0, %v4473_v13  ;;  %v8149_v22 = vmul.f32 %v9845_v29, %v9868_v24  ;;  %v9872_v15 = vld [vmem:[#allocation124_spill] sm:$0xff] }
 0x2c9   : > { %9860 = vst [vmem:[#allocation104_spill] sm:$0xff] %v8125_v37  ;;  %9862 = vst [vmem:[#allocation62_spill] sm:$0xff] %v8129_v31  ;;  %v8137_v45 = vmul.f32 %v9365_v8, %v9864_v47  ;;  %v4477_v12 = vpop.eup %4476  ;;  %v8145_v31 = vmul.f32 %v7958_v58, %v9864_v47  ;;  %v3686_v46 = vadd.f32 1.0, %v4475_v19  ;;  %v9870_v37 = vld [vmem:[#allocation121_spill] sm:$0xff]  ;;  %v8157_v13 = vmul.f32 %v9848_v48, %v9872_v15  ;;  %v9874_v47 = vld [vmem:[#allocation123_spill] sm:$0xff] }
 0x2ca   : > { %9863 = vst [vmem:[#allocation174_spill] sm:$0xff] %v8133_v35  ;;  %9866 = vst [vmem:[#allocation125_spill] sm:$0xff] %v8141_v5  ;;  %v4479_v35 = vpop.eup %4478  ;;  %v3687_v49 = vadd.f32 1.0, %v4477_v12  ;;  %4492 = vrcp.f32 %v3685_v53  ;;  %v8165_v19 = vmul.f32 %v9291_v38, %v9876_v44  ;;  %v8173_v12 = vmul.f32 %v9365_v8, %v9880_v54 }
 0x2cb   : > { %9865 = vst [vmem:[#allocation167_spill] sm:$0xff] %v8137_v45  ;;  %9867 = vst [vmem:[#allocation21_spill] sm:$0xff] %v8145_v31  ;;  %v8153_v45 = vmul.f32 %v9845_v29, %v9870_v37  ;;  %v4481_v5 = vpop.eup %4480  ;;  %v8161_v31 = vmul.f32 %v9848_v48, %v9874_v47  ;;  %4494 = vrcp.f32 %v3686_v46  ;;  %v1019_v55 = vadd.f32 1.0, %v4479_v35 }
 0x2cc   : > { %9869 = vst [vmem:[#allocation133_spill] sm:$0xff] %v8149_v22  ;;  %9873 = vst [vmem:[#allocation56_spill] sm:$0xff] %v8157_v13  ;;  %v4483_v22 = vpop.eup %4482  ;;  %4496 = vrcp.f32 %v3687_v49  ;;  %v1022_v53 = vadd.f32 1.0, %v4481_v5  ;;  %v8185_v46 = vmul.f32 %v9442_v11, %v9872_v15  ;;  %v8193_v5 = vmul.f32 %v9385_v51, %v9876_v44  ;;  %v9889_v15 = vld [vmem:[#allocation116_spill] sm:$0xff]  ;;  %v9893_v44 = vld [vmem:[#allocation138_spill] sm:$0xff] }
 0x2cd   : > { %9871 = vst [vmem:[#allocation5_spill] sm:$0xff] %v8153_v45  ;;  %9875 = vst [vmem:[#allocation59_spill] sm:$0xff] %v8161_v31  ;;  %v8169_v45 = vmul.f32 %v9362_v42, %v9878_v39  ;;  %v8177_v31 = vmul.f32 %v9440_v10, %v9868_v24  ;;  %4498 = vrcp.f32 %v1019_v55  ;;  %v1021_v35 = vadd.f32 1.0, %v4483_v22  ;;  %v4485_v24 = vpop.eup %4484 }
 0x2ce   : > { %9877 = vst [vmem:[#allocation156_spill] sm:$0xff] %v8165_v19  ;;  %9881 = vst [vmem:[#allocation8_spill] sm:$0xff] %v8173_v12  ;;  %v8181_v19 = vmul.f32 %v9440_v10, %v9870_v37  ;;  %4500 = vrcp.f32 %v1022_v53  ;;  %v8197_v37 = vmul.f32 %v9396_v56, %v9878_v39  ;;  %v8201_v22 = vmul.f32 %v7958_v58, %v9880_v54  ;;  %v9917_v12 = vld [vmem:[#allocation109_spill] sm:$0xff] }
 0x2cf   : > { %9879 = vst [vmem:[#allocation172_spill] sm:$0xff] %v8169_v45  ;;  %9882 = vst [vmem:[#allocation35_spill] sm:$0xff] %v8177_v31  ;;  %v8189_v45 = vmul.f32 %v9442_v11, %v9874_v47  ;;  %v8205_v49 = vmul.f32 %v9385_v51, %v9889_v15  ;;  %4502 = vrcp.f32 %v1021_v35  ;;  %v9891_v47 = vld [vmem:[#allocation135_spill] sm:$0xff]  ;;  %v8213_v53 = vmul.f32 %v7958_v58, %v9893_v44  ;;  %v9900_v35 = vld [vmem:[#allocation144_spill] sm:$0xff] }
 0x2d0   : > { %9883 = vst [vmem:[#allocation6_spill] sm:$0xff] %v8181_v19  ;;  %9884 = vst [vmem:[#allocation166_spill] sm:$0xff] %v8185_v46  ;;  %v8209_v55 = vmul.f32 %v9396_v56, %v9891_v47  ;;  %v8220_v54 = vmul.f32 %v4485_v24, %v7969_v30  ;;  %v8228_v47 = vmul.f32 %v9442_v11, %v9900_v35  ;;  %v9906_v30 = vld [vmem:[#allocation148_spill] sm:$0xff]  ;;  %v9922_v46 = vld [vmem:[#allocation29_spill] sm:$0xff] }
 0x2d1   : > { %9885 = vst [vmem:[#allocation11_spill] sm:$0xff] %v8189_v45  ;;  %9886 = vst [vmem:[#allocation9_spill] sm:$0xff] %v8193_v5  ;;  %v9895_v5 = vld [vmem:[#allocation141_spill] sm:$0xff]  ;;  %v8240_v24 = vmul.f32 %v9396_v56, %v9906_v30  ;;  %v8256_v30 = vmul.f32 %v7958_v58, %v9843_v7  ;;  %v9926_v31 = vld [vmem:[#allocation184_spill] sm:$0xff] }
 0x2d2   : > { %9887 = vst [vmem:[#allocation154_spill] sm:$0xff] %v8197_v37  ;;  %9888 = vst [vmem:[#allocation182_spill] sm:$0xff] %v8201_v22  ;;  %v8217_v39 = vmul.f32 %v9440_v10, %v9895_v5  ;;  %v4487_v22 = vpop.eup %4486  ;;  %v9898_v37 = vld [vmem:[#allocation140_spill] sm:$0xff]  ;;  %v9936_v60 = vrot.slane %v8220_v54, 1 }
 0x2d3   : > { %9890 = vst [vmem:[#allocation102_spill] sm:$0xff] %v8205_v49  ;;  %9892 = vst [vmem:[#allocation13_spill] sm:$0xff] %v8209_v55  ;;  %v8224_v15 = vmul.f32 %v9440_v10, %v9898_v37  ;;  %v9902_v55 = vld [vmem:[#allocation142_spill] sm:$0xff]  ;;  %v4489_v49 = vpop.eup %4488  ;;  %v3778_v35 = vmul.f32 %v4487_v22, %v7972_v25  ;;  %v9912_v25 = vld [vmem:[#allocation164_spill] sm:$0xff] }
 0x2d4   : > { %9894 = vst [vmem:[#allocation15_spill] sm:$0xff] %v8213_v53  ;;  %9896 = vst [vmem:[#allocation52_spill] sm:$0xff] %v8217_v39  ;;  %v8232_v44 = vmul.f32 %v9442_v11, %v9902_v55  ;;  %v9904_v53 = vld [vmem:[#allocation37_spill] sm:$0xff]  ;;  %v4491_v55 = vpop.eup %4490 }
 0x2d5   : > { %9897 = vst [vmem:[#allocation183_spill] sm:$0xff] %v8220_v54  ;;  %9899 = vst [vmem:[#allocation115_spill] sm:$0xff] %v8224_v15  ;;  %v8236_v5 = vmul.f32 %v9385_v51, %v9904_v53  ;;  %v9908_v39 = vld [vmem:[#allocation149_spill] sm:$0xff]  ;;  %v1754_v53 = vrot.slane %v8220_v54, 2  ;;  %v3815_v22 = vsel %vm3786_vm6, %v9912_v25, %v3778_v35 }
 0x2d6   : > { %9901 = vst [vmem:[#allocation16_spill] sm:$0xff] %v8228_v47  ;;  %9903 = vst [vmem:[#allocation131_spill] sm:$0xff] %v8232_v44  ;;  %v8244_v37 = vmul.f32 %v7958_v58, %v9908_v39  ;;  %v9126_v47 = vrot.slane %v8220_v54, 1  ;;  %v3779_v44 = vmul.f32 %v4489_v49, %v7975_v4  ;;  %v4493_v39 = vpop.eup %4492  ;;  %v1391_v4 = vrot.slane %v8220_v54, 6 }
 0x2d7   : > { %9905 = vst [vmem:[#allocation28_spill] sm:$0xff] %v8236_v5  ;;  %9907 = vst [vmem:[#allocation48_spill] sm:$0xff] %v8240_v24  ;;  %v8252_v5 = vmul.f32 %v9396_v56, %v9840_v16  ;;  %v4495_v16 = vpop.eup %4494  ;;  %v3781_v24 = vmul.f32 %v4493_v39, %v7984_v17  ;;  %v1837_v35 = vsel %vm1728_vm5, %v1754_v53, 0.0  ;;  %v9915_v17 = vld [vmem:[#allocation12_spill] sm:$0xff] }
 0x2d8   : > { %9909 = vst [vmem:[#allocation139_spill] sm:$0xff] %v8244_v37  ;;  %9911 = vst [vmem:[#allocation186_spill] sm:$0xff] %v8256_v30  ;;  %v3780_v37 = vmul.f32 %v4491_v55, %v7981_v14  ;;  %v1716_v49 = vsel %vm1607_vm4, %v9126_v47, 0.0  ;;  %v1512_v14 = vrot.slane %v8220_v54, 7  ;;  %v4497_v55 = vpop.eup %4496  ;;  %v3782_v25 = vmul.f32 %v4495_v16, %v7986_v43  ;;  %v9914_v30 = vld [vmem:[#allocation181_spill] sm:$0xff] }
 0x2d9   : > { %9910 = vst [vmem:[#allocation49_spill] sm:$0xff] %v8252_v5  ;;  %v9913_v5 = vld [vmem:[#allocation27_spill] sm:$0xff]  ;;  %3847 = vst [vmem:[%s6728_s23 + $0xd0] sm:$0xff] %v3815_v22  ;;  %v8280_v39 = vmul.f32 %v9915_v17, %v8220_v54  ;;  %v4499_v22 = vpop.eup %4498  ;;  %v3783_v15 = vmul.f32 %v4497_v55, %v8002_v34  ;;  %v3818_v43 = vsel %vm3786_vm6, %v9917_v12, %v3781_v24  ;;  %v9920_v34 = vld [vmem:[#allocation17_spill] sm:$0xff] }
 0x2da   : > { %v3816_v7 = vsel %vm3786_vm6, %v9913_v5, %v3779_v44  ;;  %v3817_v47 = vsel %vm3786_vm6, %v9914_v30, %v3780_v37  ;;  %v9916_v44 = vld [vmem:[#allocation22_spill] sm:$0xff]  ;;  %v8296_v16 = vmul.f32 %v9838_v33, %v8220_v54  ;;  %v3819_v45 = vsel %vm3786_vm6, %v7767_v63, %v3782_v25  ;;  %3850 = vst [vmem:[%s6728_s23 + $0xe8] sm:$0xff] %v3818_v43 }
 0x2db   : > { %3848 = vst [vmem:[%s6728_s23 + $0xd8] sm:$0xff] %v3816_v7  ;;  %v8284_v5 = vmul.f32 %v9916_v44, %v8220_v54  ;;  %3849 = vst [vmem:[%s6728_s23 + $0xe0] sm:$0xff] %v3817_v47  ;;  %v9918_v37 = vld [vmem:[#allocation14_spill] sm:$0xff]  ;;  %v4501_v7 = vpop.eup %4500  ;;  %v8303_v55 = vmul.f32 %v9920_v34, %v1837_v35  ;;  %v8306_v12 = vmul.f32 %v9922_v46, %v1716_v49 }
 0x2dc   : > { %v8292_v30 = vmul.f32 %v9918_v37, %v1716_v49  ;;  %v9924_v47 = vld [vmem:[#allocation30_spill] sm:$0xff]  ;;  %v4503_v19 = vpop.eup %4502  ;;  %v3820_v13 = vsel %vm3786_vm6, %v9926_v31, %v3783_v15  ;;  %3851 = vst [vmem:[%s6728_s23 + $0xf0] sm:$0xff] %v3819_v45  ;;  %v8316_v32 = vmul.f32 %v9841_v9, %v1716_v49  ;;  %v8319_v63 = vmul.f32 %v9819_v1, %v1837_v35 }
 0x2dd   : > { %9921 = vst [vmem:[#allocation158_spill] sm:$0xff] %v8303_v55  ;;  %9923 = vst [vmem:[#allocation34_spill] sm:$0xff] %v8306_v12  ;;  %v8309_v24 = vmul.f32 %v9924_v47, %v1837_v35  ;;  %v8323_v25 = vmul.f32 %v9291_v38, %v8220_v54  ;;  %v8327_v43 = vmul.f32 %v9362_v42, %v1716_v49 }
 0x2de   : > { %9919 = vst [vmem:[#allocation51_spill] sm:$0xff] %v8292_v30  ;;  %9927 = vst [vmem:[#allocation111_spill] sm:$0xff] %v8316_v32  ;;  %v8330_v28 = vmul.f32 %v9365_v8, %v1837_v35  ;;  %v8334_v45 = vmul.f32 %v9385_v51, %v8220_v54  ;;  %v8337_v31 = vmul.f32 %v4499_v22, %v7979_v23  ;;  %v9939_v54 = vld [vmem:[#allocation150_spill] sm:$0xff]  ;;  %v9941_v32 = vld [vmem:[#allocation19_spill] sm:$0xff] }
 0x2df   : > { %9925 = vst [vmem:[#allocation157_spill] sm:$0xff] %v8309_v24  ;;  %9928 = vst [vmem:[#allocation50_spill] sm:$0xff] %v8319_v63  ;;  %v8340_v15 = vmul.f32 %v9396_v56, %v1716_v49  ;;  %v8343_v27 = vmul.f32 %v7958_v58, %v1837_v35 }
 0x2e0   : > { %3852 = vst [vmem:[%s6728_s23 + $0xf8] sm:$0xff] %v3820_v13  ;;  %9929 = vst [vmem:[#allocation143_spill] sm:$0xff] %v8327_v43  ;;  %v8346_v13 = vmul.f32 %v4501_v7, %v8007_v0  ;;  %v8349_v43 = vmul.f32 %v4503_v19, %v8032_v3  ;;  %v1511_v40 = vrot.slane %v8337_v31, 7  ;;  %v1632_v50 = vrot.slane %v8337_v31, 1 }
 0x2e1   : > { %9930 = vst [vmem:[#allocation136_spill] sm:$0xff] %v8330_v28  ;;  %9931 = vst [vmem:[#allocation132_spill] sm:$0xff] %v8337_v31  ;;  %v1390_v28 = vrot.slane %v8337_v31, 6  ;;  %v1753_v23 = vrot.slane %v8337_v31, 2  ;;  %v2016_v49 = vmul.f32 %v9915_v17, %v8337_v31  ;;  %v2354_v35 = vmul.f32 %v9916_v44, %v8337_v31 }
 0x2e2   : > { %9932 = vst [vmem:[#allocation159_spill] sm:$0xff] %v8340_v15  ;;  %9933 = vst [vmem:[#allocation173_spill] sm:$0xff] %v8343_v27  ;;  %v2692_v0 = vmul.f32 %v9838_v33, %v8337_v31  ;;  %v3030_v3 = vmul.f32 %v9291_v38, %v8337_v31  ;;  %v1513_v7 = vsel %vm1486_vm3, %v1511_v40, %v1512_v14  ;;  %v1595_v20 = vsel %vm1486_vm3, 0.0, %v1511_v40 }
 0x2e3   : > { %9934 = vst [vmem:[#allocation101_spill] sm:$0xff] %v8346_v13  ;;  %9935 = vst [vmem:[#allocation33_spill] sm:$0xff] %v8349_v43  ;;  %v1392_v19 = vsel %vm1365_vm2, %v1390_v28, %v1391_v4  ;;  %v1474_v22 = vsel %vm1365_vm2, 0.0, %v1390_v28  ;;  %v8370_v26 = vsel %vm1607_vm4, %v1632_v50, %v9936_v60  ;;  %v8373_v18 = vsel %vm1728_vm5, %v1753_v23, %v1754_v53  ;;  %v9940_v53 = vld [vmem:[#allocation18_spill] sm:$0xff]  ;;  %v9942_v43 = vld [vmem:[#allocation151_spill] sm:$0xff] }
 0x2e4   : > { %v1874_v52 = vmul.f32 %v9937_v2, %v1474_v22  ;;  %v1875_v41 = vmul.f32 %v9937_v2, %v1392_v19  ;;  %v1948_v4 = vmul.f32 %v9938_v6, %v1595_v20  ;;  %v1949_v28 = vmul.f32 %v9938_v6, %v1513_v7 }
 0x2e5   : > { %v2084_v14 = vmul.f32 %v9918_v37, %v8370_v26  ;;  %v2152_v40 = vmul.f32 %v9920_v34, %v8373_v18  ;;  %v2218_v23 = vmul.f32 %v9940_v53, %v1474_v22  ;;  %v2219_v63 = vmul.f32 %v9940_v53, %v1392_v19 }
 0x2e6   : > { %v1912_v50 = vadd.f32 %v9939_v54, %v1874_v52  ;;  %v1913_v60 = vadd.f32 %v9939_v54, %v1875_v41  ;;  %v2286_v24 = vmul.f32 %v9941_v32, %v1595_v20  ;;  %v2287_v12 = vmul.f32 %v9941_v32, %v1513_v7 }
 0x2e7   : > { %v2422_v55 = vmul.f32 %v9922_v46, %v8370_v26  ;;  %v2490_v6 = vmul.f32 %v9924_v47, %v8373_v18  ;;  %v2250_v52 = vadd.f32 %v2218_v23, %v9942_v43  ;;  %v2251_v41 = vadd.f32 %v2219_v63, %v8010_v36 }
 0x2e8   : > { %v1980_v2 = vadd.f32 %v1948_v4, %v1912_v50  ;;  %v1981_v30 = vadd.f32 %v1949_v28, %v1913_v60  ;;  %v2556_v54 = vmul.f32 %v9828_v62, %v1474_v22  ;;  %v2557_v53 = vmul.f32 %v9828_v62, %v1392_v19  ;;  %v9943_v4 = vld [vmem:[#allocation38_spill] sm:$0xff] }
 0x2e9   : > { %v2624_v27 = vmul.f32 %v9833_v57, %v1595_v20  ;;  %v2625_v32 = vmul.f32 %v9833_v57, %v1513_v7  ;;  %v2318_v46 = vadd.f32 %v2286_v24, %v2250_v52  ;;  %v2319_v47 = vadd.f32 %v2287_v12, %v2251_v41 }
 0x2ea   : > { %v2048_v38 = vadd.f32 %v2016_v49, %v1980_v2  ;;  %v8400_v15 = vadd.f32 %v8280_v39, %v1981_v30  ;;  %v2588_v28 = vadd.f32 %v2556_v54, %v9943_v4  ;;  %v2589_v43 = vadd.f32 %v2557_v53, %v8013_v59  ;;  %v9944_v53 = vld [vmem:[#allocation152_spill] sm:$0xff]  ;;  %v9945_v4 = vld [vmem:[#allocation175_spill] sm:$0xff] }
 0x2eb   : > { %v2760_v36 = vmul.f32 %v9841_v9, %v8370_v26  ;;  %v2828_v63 = vmul.f32 %v9819_v1, %v8373_v18  ;;  %v2386_v60 = vadd.f32 %v2354_v35, %v2318_v46  ;;  %v8409_v23 = vadd.f32 %v8284_v5, %v2319_v47 }
 0x2ec   : > { %v2116_v50 = vadd.f32 %v2084_v14, %v2048_v38  ;;  %v2894_v2 = vmul.f32 %v9845_v29, %v1474_v22  ;;  %v2656_v39 = vadd.f32 %v2624_v27, %v2588_v28  ;;  %v2657_v30 = vadd.f32 %v2625_v32, %v2589_v43 }
 0x2ed   : > { %v2895_v12 = vmul.f32 %v9845_v29, %v1392_v19  ;;  %v2962_v24 = vmul.f32 %v9848_v48, %v1595_v20  ;;  %v2454_v49 = vadd.f32 %v2422_v55, %v2386_v60  ;;  %v2963_v41 = vmul.f32 %v9848_v48, %v1513_v7 }
 0x2ee   : > { %v8414_v59 = vadd.f32 %v2152_v40, %v2116_v50  ;;  %v2926_v52 = vadd.f32 %v2894_v2, %v9944_v53  ;;  %v2724_v38 = vadd.f32 %v2692_v0, %v2656_v39  ;;  %v8419_v46 = vadd.f32 %v8296_v16, %v2657_v30 }
 0x2ef   : > { %v2927_v5 = vadd.f32 %v2895_v12, %v8016_v61  ;;  %v3098_v32 = vmul.f32 %v9362_v42, %v8370_v26  ;;  %v8424_v27 = vadd.f32 %v2490_v6, %v2454_v49  ;;  %v3166_v35 = vmul.f32 %v9365_v8, %v8373_v18 }
 0x2f0   : > { %v2994_v47 = vadd.f32 %v2962_v24, %v2926_v52  ;;  %v3232_v55 = vmul.f32 %v9440_v10, %v1474_v22  ;;  %v2792_v14 = vadd.f32 %v2760_v36, %v2724_v38  ;;  %v3233_v0 = vmul.f32 %v9440_v10, %v1392_v19  ;;  %v9947_v38 = vld [vmem:[#allocation29_spill] sm:$0xff] }
 0x2f1   : > { %v2995_v40 = vadd.f32 %v2963_v41, %v2927_v5  ;;  %v3300_v16 = vmul.f32 %v9442_v11, %v1595_v20  ;;  %v3301_v28 = vmul.f32 %v9442_v11, %v1513_v7  ;;  %v3368_v6 = vmul.f32 %v9385_v51, %v8337_v31 }
 0x2f2   : > { %v3062_v54 = vadd.f32 %v3030_v3, %v2994_v47  ;;  %v3264_v61 = vadd.f32 %v3232_v55, %v9945_v4  ;;  %v8435_v43 = vadd.f32 %v2828_v63, %v2792_v14  ;;  %v3265_v22 = vadd.f32 %v3233_v0, %v8020_v21  ;;  %v9949_v47 = vld [vmem:[#allocation30_spill] sm:$0xff]  ;;  %v9950_v0 = vld [vmem:[#allocation25_spill] sm:$0xff] }
 0x2f3   : > { %v8438_v50 = vadd.f32 %v8323_v25, %v2995_v40  ;;  %v3436_v19 = vmul.f32 %v9396_v56, %v8370_v26  ;;  %v3504_v3 = vmul.f32 %v7958_v58, %v8373_v18  ;;  %v1394_v7 = vrot.slane %v8346_v13, 6 }
 0x2f4   : > { %v3130_v36 = vadd.f32 %v3098_v32, %v3062_v54  ;;  %v3332_v20 = vadd.f32 %v3300_v16, %v3264_v61  ;;  %v3333_v60 = vadd.f32 %v3301_v28, %v3265_v22  ;;  %v1515_v2 = vrot.slane %v8346_v13, 7  ;;  %v9948_v32 = vld [vmem:[#allocation159_spill] sm:$0xff]  ;;  %v9951_v61 = vld [vmem:[#allocation173_spill] sm:$0xff] }
 0x2f5   : > { %v1636_v63 = vrot.slane %v8346_v13, 1  ;;  %v1757_v25 = vrot.slane %v8346_v13, 2  ;;  %v8453_v26 = vmul.f32 %v9915_v17, %v8346_v13  ;;  %v8457_v30 = vmul.f32 %v9916_v44, %v8346_v13 }
 0x2f6   : > { %v8449_v39 = vadd.f32 %v3166_v35, %v3130_v36  ;;  %v3400_v21 = vadd.f32 %v3368_v6, %v3332_v20  ;;  %v3401_v18 = vadd.f32 %v8334_v45, %v3333_v60  ;;  %v8464_v49 = vmul.f32 %v9838_v33, %v8346_v13  ;;  %v9955_v20 = vld [vmem:[#allocation33_spill] sm:$0xff] }
 0x2f7   : > { %v1717_v12 = vsel %vm1607_vm4, %v1636_v63, 0.0  ;;  %v1838_v24 = vsel %vm1728_vm5, %v1757_v25, 0.0  ;;  %v8489_v16 = vmul.f32 %v9950_v0, %v8346_v13  ;;  %v8502_v6 = vmul.f32 %v9385_v51, %v8346_v13 }
 0x2f8   : > { %9946 = vst [vmem:[#allocation100_spill] sm:$0xff] %v8449_v39  ;;  %v3468_v53 = vadd.f32 %v3436_v19, %v3400_v21  ;;  %v8467_v52 = vmul.f32 %v9918_v37, %v1717_v12  ;;  %v8470_v41 = vmul.f32 %v9920_v34, %v1838_v24  ;;  %v8473_v5 = vmul.f32 %v9947_v38, %v1717_v12 }
 0x2f9   : > { %v3469_v45 = vadd.f32 %v9948_v32, %v3401_v18  ;;  %v8477_v35 = vmul.f32 %v9949_v47, %v1838_v24  ;;  %v8480_v55 = vmul.f32 %v9841_v9, %v1717_v12  ;;  %v8483_v14 = vmul.f32 %v9819_v1, %v1838_v24  ;;  %9952 = vst [vmem:[#allocation118_spill] sm:$0xff] %v8502_v6 }
 0x2fa   : > { %v8485_v40 = vadd.f32 %v3504_v3, %v3468_v53  ;;  %v8492_v54 = vmul.f32 %v9362_v42, %v1717_v12  ;;  %v8495_v4 = vmul.f32 %v9365_v8, %v1838_v24  ;;  %v8505_v22 = vmul.f32 %v9396_v56, %v1717_v12  ;;  %v9956_v12 = vld [vmem:[#allocation51_spill] sm:$0xff] }
 0x2fb   : > { %v8498_v28 = vadd.f32 %v9951_v61, %v3469_v45  ;;  %v8508_v19 = vmul.f32 %v7958_v58, %v1838_v24  ;;  %v1393_v3 = vrot.slane %v9955_v20, 6  ;;  %v1514_v60 = vrot.slane %v9955_v20, 7  ;;  %v9961_v56 = vld [vmem:[#allocation19_spill] sm:$0xff] }
 0x2fc   : > { %9953 = vst [vmem:[#allocation108_spill] sm:$0xff] %v8505_v22  ;;  %v4098_v36 = vmul.f32 -1.442695, %v8485_v40  ;;  %v1635_v21 = vrot.slane %v9955_v20, 1  ;;  %v1756_v53 = vrot.slane %v9955_v20, 2  ;;  %v2018_v32 = vmul.f32 %v9915_v17, %v9955_v20 }
 0x2fd   : > { %9954 = vst [vmem:[#allocation40_spill] sm:$0xff] %v8508_v19  ;;  %v4099_v18 = vmul.f32 -1.442695, %v8498_v28  ;;  %v2117_v45 = vadd.f32 %v9956_v12, %v8400_v15  ;;  %v8521_v24 = vsel %vm1365_vm2, %v1393_v3, %v1394_v7  ;;  %v8524_v61 = vsel %vm1365_vm2, 0.0, %v1393_v3  ;;  %v9957_v15 = vld [vmem:[#allocation7_spill] sm:$0xff]  ;;  %v9958_v3 = vld [vmem:[#allocation10_spill] sm:$0xff] }
 0x2fe   : > { %4504 = vpow2.f32 %v4098_v36  ;;  %v8527_v13 = vsel %vm1486_vm3, %v1514_v60, %v1515_v2  ;;  %v8530_v31 = vsel %vm1486_vm3, 0.0, %v1514_v60  ;;  %v8533_v19 = vsel %vm1607_vm4, %v1635_v21, %v1636_v63 }
 0x2ff   : > { %4506 = vpow2.f32 %v4099_v18  ;;  %v8536_v17 = vsel %vm1728_vm5, %v1756_v53, %v1757_v25  ;;  %v1876_v7 = vmul.f32 %v9957_v15, %v8524_v61  ;;  %v1877_v36 = vmul.f32 %v9957_v15, %v8521_v24  ;;  %v9959_v25 = vld [vmem:[#allocation158_spill] sm:$0xff]  ;;  %v4561_v15 = vld [vmem:[%s8887_s6] ss:$0 sm:$0xff] }
 0x300   : > { %v1950_v2 = vmul.f32 %v9958_v3, %v8530_v31  ;;  %v1951_v18 = vmul.f32 %v9958_v3, %v8527_v13  ;;  %v2086_v60 = vmul.f32 %v9918_v37, %v8533_v19  ;;  %v2154_v63 = vmul.f32 %v9920_v34, %v8536_v17  ;;  %v9960_v53 = vld [vmem:[#allocation18_spill] sm:$0xff] }
 0x301   : > { %v2185_v21 = vadd.f32 %v9959_v25, %v2117_v45  ;;  %v2220_v12 = vmul.f32 %v9960_v53, %v8524_v61  ;;  %v1914_v58 = vadd.f32 %v4561_v15, %v1876_v7  ;;  %v1915_v22 = vadd.f32 %v4561_v15, %v1877_v36  ;;  %v9962_v15 = vld [vmem:[#allocation34_spill] sm:$0xff] }
 0x302   : > { %v2221_v3 = vmul.f32 %v9960_v53, %v8521_v24  ;;  %v2288_v37 = vmul.f32 %v9961_v56, %v8530_v31  ;;  %v2289_v34 = vmul.f32 %v9961_v56, %v8527_v13  ;;  %v2356_v45 = vmul.f32 %v9916_v44, %v9955_v20 }
 0x303   : > { %v2252_v6 = vadd.f32 %v2220_v12, %v8414_v59  ;;  %v2424_v25 = vmul.f32 %v9947_v38, %v8533_v19  ;;  %v1982_v51 = vadd.f32 %v1950_v2, %v1914_v58  ;;  %v1983_v7 = vadd.f32 %v1951_v18, %v1915_v22  ;;  %v9963_v58 = vld [vmem:[#allocation157_spill] sm:$0xff] }
 0x304   : > { %v2253_v36 = vadd.f32 %v2221_v3, %v2185_v21  ;;  %v2455_v53 = vadd.f32 %v9962_v15, %v8409_v23  ;;  %v2492_v39 = vmul.f32 %v9949_v47, %v8536_v17  ;;  %v2558_v59 = vmul.f32 %v9828_v62, %v8524_v61 }
 0x305   : > { %v2320_v11 = vadd.f32 %v2288_v37, %v2252_v6  ;;  %v2559_v56 = vmul.f32 %v9828_v62, %v8521_v24  ;;  %v2050_v44 = vadd.f32 %v2018_v32, %v1982_v51  ;;  %v2051_v12 = vadd.f32 %v8453_v26, %v1983_v7 }
 0x306   : > { %v2321_v38 = vadd.f32 %v2289_v34, %v2253_v36  ;;  %v2523_v22 = vadd.f32 %v9963_v58, %v2455_v53  ;;  %v2590_v18 = vadd.f32 %v2558_v59, %v8424_v27  ;;  %v2626_v23 = vmul.f32 %v9833_v57, %v8530_v31  ;;  %v9965_v53 = vld [vmem:[#allocation70_spill] sm:$0xff] }
 0x307   : > { %v2388_v2 = vadd.f32 %v2356_v45, %v2320_v11  ;;  %v2627_v47 = vmul.f32 %v9833_v57, %v8527_v13  ;;  %v2118_v21 = vadd.f32 %v2086_v60, %v2050_v44  ;;  %v2119_v3 = vadd.f32 %v8467_v52, %v2051_v12 }
 0x308   : > { %v4505_v6 = vpop.eup %4504  ;;  %v2389_v51 = vadd.f32 %v8457_v30, %v2321_v38  ;;  %v2591_v62 = vadd.f32 %v2559_v56, %v2523_v22  ;;  %v2658_v34 = vadd.f32 %v2626_v23, %v2590_v18  ;;  %v2694_v11 = vmul.f32 %v9838_v33, %v9955_v20  ;;  %v9964_v30 = vld [vmem:[#allocation69_spill] sm:$0xff]  ;;  %v9969_v38 = vld [vmem:[#allocation72_spill] sm:$0xff]  ;;  %v9970_v22 = vld [vmem:[#allocation78_spill] sm:$0xff] }
 0x309   : > { %v4507_v26 = vpop.eup %4506  ;;  %v3664_v32 = vadd.f32 1.0, %v4505_v6  ;;  %v2456_v37 = vadd.f32 %v2424_v25, %v2388_v2  ;;  %v2186_v45 = vadd.f32 %v2154_v63, %v2118_v21  ;;  %v2187_v7 = vadd.f32 %v8470_v41, %v2119_v3  ;;  %v9966_v56 = vld [vmem:[#allocation77_spill] sm:$0xff]  ;;  %v9972_v6 = vld [vmem:[#allocation50_spill] sm:$0xff] }
 0x30a   : > { %v3665_v27 = vadd.f32 1.0, %v4507_v26  ;;  %v2457_v57 = vadd.f32 %v8473_v5, %v2389_v51  ;;  %v2659_v36 = vadd.f32 %v2627_v47, %v2591_v62  ;;  %v2726_v52 = vadd.f32 %v2694_v11, %v2658_v34  ;;  %v9967_v5 = vld [vmem:[#allocation111_spill] sm:$0xff]  ;;  %v9974_v51 = vld [vmem:[#allocation54_spill] sm:$0xff]  ;;  %v9975_v62 = vld [vmem:[#allocation81_spill] sm:$0xff] }
 0x30b   : > { %4508 = vrcp.f32 %v3664_v32  ;;  %v2524_v60 = vadd.f32 %v2492_v39, %v2456_v37  ;;  %v2254_v15 = vadd.f32 %v9964_v30, %v2186_v45  ;;  %v2255_v59 = vadd.f32 %v9965_v53, %v2187_v7  ;;  %v9968_v39 = vld [vmem:[#allocation71_spill] sm:$0xff]  ;;  %v9976_v37 = vld [vmem:[#allocation82_spill] sm:$0xff]  ;;  %v9978_v7 = vld [vmem:[#allocation60_spill] sm:$0xff] }
 0x30c   : > { %4510 = vrcp.f32 %v3665_v27  ;;  %v2525_v25 = vadd.f32 %v8477_v35, %v2457_v57  ;;  %v2727_v33 = vadd.f32 %v8464_v49, %v2659_v36  ;;  %v2762_v41 = vmul.f32 %v9841_v9, %v8533_v19  ;;  %v9971_v35 = vld [vmem:[#allocation80_spill] sm:$0xff]  ;;  %v9973_v9 = vld [vmem:[#allocation73_spill] sm:$0xff]  ;;  %v9980_v30 = vld [vmem:[#allocation83_spill] sm:$0xff] }
 0x30d   : > { %v2592_v44 = vadd.f32 %v9966_v56, %v2524_v60  ;;  %v2793_v63 = vadd.f32 %v9967_v5, %v8419_v46  ;;  %v2322_v12 = vadd.f32 %v9968_v39, %v2254_v15  ;;  %v2323_v58 = vadd.f32 %v9969_v38, %v2255_v59  ;;  %v9979_v60 = vld [vmem:[#allocation55_spill] sm:$0xff]  ;;  %v9981_v59 = vld [vmem:[#allocation86_spill] sm:$0xff]  ;;  %v9986_v38 = vld [vmem:[#allocation84_spill] sm:$0xff] }
 0x30e   : > { %v2593_v2 = vadd.f32 %v9970_v22, %v2525_v25  ;;  %v2830_v18 = vmul.f32 %v9819_v1, %v8536_v17  ;;  %v2794_v47 = vadd.f32 %v2762_v41, %v2726_v52  ;;  %v2795_v49 = vadd.f32 %v8480_v55, %v2727_v33  ;;  %v9977_v55 = vld [vmem:[#allocation74_spill] sm:$0xff]  ;;  %v9982_v56 = vld [vmem:[#allocation87_spill] sm:$0xff]  ;;  %v9983_v33 = vld [vmem:[#allocation76_spill] sm:$0xff] }
 0x30f   : > { %v2660_v23 = vadd.f32 %v9971_v35, %v2592_v44  ;;  %v2861_v21 = vadd.f32 %v9972_v6, %v2793_v63  ;;  %v2390_v3 = vadd.f32 %v9973_v9, %v2322_v12  ;;  %v2391_v46 = vadd.f32 %v9974_v51, %v2323_v58  ;;  %v9984_v41 = vld [vmem:[#allocation61_spill] sm:$0xff]  ;;  %v9987_v22 = vld [vmem:[#allocation88_spill] sm:$0xff] }
 0x310   : > { %v2661_v26 = vadd.f32 %v9975_v62, %v2593_v2  ;;  %v2896_v32 = vmul.f32 %v9845_v29, %v8524_v61  ;;  %v2862_v11 = vadd.f32 %v2830_v18, %v2794_v47  ;;  %v2863_v1 = vadd.f32 %v8483_v14, %v2795_v49  ;;  %v9988_v18 = vld [vmem:[#allocation89_spill] sm:$0xff]  ;;  %v9992_v62 = vld [vmem:[#allocation147_spill] sm:$0xff] }
 0x311   : > { %v2728_v34 = vadd.f32 %v9976_v37, %v2660_v23  ;;  %v2897_v27 = vmul.f32 %v9845_v29, %v8521_v24  ;;  %v2458_v45 = vadd.f32 %v9977_v55, %v2390_v3  ;;  %v2459_v57 = vadd.f32 %v9978_v7, %v2391_v46  ;;  %v9985_v29 = vld [vmem:[#allocation63_spill] sm:$0xff]  ;;  %v9989_v49 = vld [vmem:[#allocation145_spill] sm:$0xff]  ;;  %v9991_v3 = vld [vmem:[#allocation64_spill] sm:$0xff] }
 0x312   : > { %v2729_v36 = vadd.f32 %v9979_v60, %v2661_v26  ;;  %v2928_v52 = vadd.f32 %v2896_v32, %v8435_v43  ;;  %v2930_v25 = vadd.f32 %v9981_v59, %v2862_v11  ;;  %v2931_v44 = vadd.f32 %v9982_v56, %v2863_v1  ;;  %v9993_v37 = vld [vmem:[#allocation75_spill] sm:$0xff]  ;;  %v9995_v1 = vld [vmem:[#allocation169_spill] sm:$0xff]  ;;  %v10002_v56 = vld [vmem:[#allocation20_spill] sm:$0xff] }
 0x313   : > { %v2796_v15 = vadd.f32 %v9980_v30, %v2728_v34  ;;  %v2929_v53 = vadd.f32 %v2897_v27, %v2861_v21  ;;  %v2526_v14 = vadd.f32 %v9983_v33, %v2458_v45  ;;  %v2527_v5 = vadd.f32 %v9984_v41, %v2459_v57  ;;  %v9990_v21 = vld [vmem:[#allocation168_spill] sm:$0xff]  ;;  %v9997_v45 = vld [vmem:[#allocation165_spill] sm:$0xff]  ;;  %v9998_v57 = vld [vmem:[#allocation155_spill] sm:$0xff] }
 0x314   : > { %v2797_v63 = vadd.f32 %v9985_v29, %v2729_v36  ;;  %v2964_v39 = vmul.f32 %v9848_v48, %v8530_v31  ;;  %v2965_v43 = vmul.f32 %v9848_v48, %v8527_v13  ;;  %v2998_v2 = vadd.f32 %v9987_v22, %v2930_v25  ;;  %v10001_v59 = vld [vmem:[#allocation105_spill] sm:$0xff]  ;;  %v10003_v33 = vld [vmem:[#allocation90_spill] sm:$0xff] }
 0x315   : > { %v4509_v12 = vpop.eup %4508  ;;  %v2864_v58 = vadd.f32 %v9986_v38, %v2796_v15  ;;  %v2999_v35 = vadd.f32 %v9988_v18, %v2931_v44  ;;  %v2594_v6 = vadd.f32 %v9989_v49, %v2526_v14  ;;  %v2595_v9 = vadd.f32 %v9990_v21, %v2527_v5  ;;  %v10000_v15 = vld [vmem:[#allocation53_spill] sm:$0xff]  ;;  %v10009_v18 = vld [vmem:[#allocation143_spill] sm:$0xff] }
 0x316   : > { %v4511_v23 = vpop.eup %4510  ;;  %v3760_v47 = vmul.f32 %v4509_v12, %v8485_v40  ;;  %v2865_v51 = vadd.f32 %v9991_v3, %v2797_v63  ;;  %v2996_v48 = vadd.f32 %v2964_v39, %v2928_v52  ;;  %v2997_v32 = vadd.f32 %v2965_v43, %v2929_v53  ;;  %v9996_v40 = vld [vmem:[#allocation47_spill] sm:$0xff]  ;;  %v10004_v5 = vld [vmem:[#allocation57_spill] sm:$0xff]  ;;  %v10005_v63 = vld [vmem:[#allocation170_spill] sm:$0xff] }
 0x317   : > { %v3761_v46 = vmul.f32 %v4511_v23, %v8498_v28  ;;  %v2932_v26 = vadd.f32 %v9992_v62, %v2864_v58  ;;  %v2662_v27 = vadd.f32 %v9995_v1, %v2594_v6  ;;  %v2663_v55 = vadd.f32 %v9996_v40, %v2595_v9  ;;  %v9999_v28 = vld [vmem:[#allocation146_spill] sm:$0xff]  ;;  %v10010_v49 = vld [vmem:[#allocation91_spill] sm:$0xff] }
 0x318   : > { %v3797_v11 = vsel %vm3786_vm6, %v9993_v37, %v3760_v47  ;;  %v2933_v7 = vadd.f32 %v9997_v45, %v2865_v51  ;;  %v3032_v52 = vmul.f32 %v9950_v0, %v9955_v20  ;;  %v3065_v30 = vadd.f32 %v8489_v16, %v2997_v32  ;;  %v10006_v0 = vld [vmem:[#allocation44_spill] sm:$0xff]  ;;  %v10007_v16 = vld [vmem:[#allocation126_spill] sm:$0xff]  ;;  %v10012_v9 = vld [vmem:[#allocation119_spill] sm:$0xff] }
 0x319   : > { %v3798_v60 = vsel %vm3786_vm6, %v9998_v57, %v3761_v46  ;;  %3829 = vst [vmem:[%s6728_s23 + $0x40] sm:$0xff] %v3797_v11  ;;  %v3000_v36 = vadd.f32 %v9999_v28, %v2932_v26  ;;  %v2730_v53 = vadd.f32 %v10000_v15, %v2662_v27  ;;  %v2731_v25 = vadd.f32 %v10001_v59, %v2663_v55  ;;  %v10008_v43 = vld [vmem:[#allocation106_spill] sm:$0xff]  ;;  %v10013_v51 = vld [vmem:[#allocation161_spill] sm:$0xff]  ;;  %v10016_v37 = vld [vmem:[#allocation136_spill] sm:$0xff] }
 0x31a   : > { %3830 = vst [vmem:[%s6728_s23 + $0x48] sm:$0xff] %v3798_v60  ;;  %v3001_v44 = vadd.f32 %v10002_v56, %v2933_v7  ;;  %v3066_v14 = vadd.f32 %v10003_v33, %v2998_v2  ;;  %v3064_v41 = vadd.f32 %v3032_v52, %v2996_v48  ;;  %v3067_v29 = vadd.f32 %v10004_v5, %v2999_v35  ;;  %v10011_v35 = vld [vmem:[#allocation65_spill] sm:$0xff]  ;;  %v10020_v7 = vld [vmem:[#allocation66_spill] sm:$0xff]  ;;  %v10022_v52 = vld [vmem:[#allocation163_spill] sm:$0xff] }
 0x31b   : > { %v3068_v39 = vadd.f32 %v10005_v63, %v3000_v36  ;;  %v3100_v12 = vmul.f32 %v9362_v42, %v8533_v19  ;;  %v2798_v38 = vadd.f32 %v10006_v0, %v2730_v53  ;;  %v2799_v58 = vadd.f32 %v10007_v16, %v2731_v25  ;;  %v10014_v46 = vld [vmem:[#allocation177_spill] sm:$0xff]  ;;  %v10021_v60 = vld [vmem:[#allocation178_spill] sm:$0xff]  ;;  %v10024_v59 = vld [vmem:[#allocation59_spill] sm:$0xff] }
 0x31c   : > { %v3069_v22 = vadd.f32 %v10008_v43, %v3001_v44  ;;  %v3131_v23 = vadd.f32 %v10009_v18, %v8438_v50  ;;  %v3133_v2 = vadd.f32 %v8492_v54, %v3065_v30  ;;  %v3134_v6 = vadd.f32 %v10010_v49, %v3066_v14  ;;  %v10015_v26 = vld [vmem:[#allocation185_spill] sm:$0xff]  ;;  %v10017_v54 = vld [vmem:[#allocation92_spill] sm:$0xff]  ;;  %v10025_v56 = vld [vmem:[#allocation94_spill] sm:$0xff] }
 0x31d   : > { %v3132_v47 = vadd.f32 %v3100_v12, %v3064_v41  ;;  %v3135_v21 = vadd.f32 %v10011_v35, %v3067_v29  ;;  %v2866_v3 = vadd.f32 %v10012_v9, %v2798_v38  ;;  %v2867_v42 = vadd.f32 %v10013_v51, %v2799_v58  ;;  %v10018_v27 = vld [vmem:[#allocation133_spill] sm:$0xff]  ;;  %v10026_v33 = vld [vmem:[#allocation162_spill] sm:$0xff]  ;;  %v10027_v41 = vld [vmem:[#allocation100_spill] sm:$0xff] }
 0x31e   : > { %v3136_v62 = vadd.f32 %v10014_v46, %v3068_v39  ;;  %v3137_v48 = vadd.f32 %v10015_v26, %v3069_v22  ;;  %v3168_v32 = vmul.f32 %v9365_v8, %v8536_v17  ;;  %v3199_v50 = vadd.f32 %v10016_v37, %v3131_v23  ;;  %v10019_v55 = vld [vmem:[#allocation5_spill] sm:$0xff]  ;;  %v10029_v12 = vld [vmem:[#allocation171_spill] sm:$0xff]  ;;  %v10030_v38 = vld [vmem:[#allocation156_spill] sm:$0xff] }
 0x31f   : > { %v3201_v11 = vadd.f32 %v8495_v4, %v3133_v2  ;;  %v3202_v1 = vadd.f32 %v10017_v54, %v3134_v6  ;;  %v2934_v40 = vadd.f32 %v10018_v27, %v2866_v3  ;;  %v2935_v45 = vadd.f32 %v10019_v55, %v2867_v42  ;;  %v10023_v4 = vld [vmem:[#allocation56_spill] sm:$0xff]  ;;  %v10028_v63 = vld [vmem:[#allocation93_spill] sm:$0xff]  ;;  %v10033_v43 = vld [vmem:[#allocation6_spill] sm:$0xff] }
 0x320   : > { %v3203_v57 = vadd.f32 %v10020_v7, %v3135_v21  ;;  %v3204_v28 = vadd.f32 %v10021_v60, %v3136_v62  ;;  %v3200_v36 = vadd.f32 %v3168_v32, %v3132_v47  ;;  %v3205_v30 = vadd.f32 %v10022_v52, %v3137_v48  ;;  %v10031_v16 = vld [vmem:[#allocation104_spill] sm:$0xff]  ;;  %v10034_v18 = vld [vmem:[#allocation45_spill] sm:$0xff]  ;;  %v10035_v2 = vld [vmem:[#allocation95_spill] sm:$0xff] }
 0x321   : > { %v3234_v8 = vmul.f32 %v9440_v10, %v8524_v61  ;;  %v3235_v15 = vmul.f32 %v9440_v10, %v8521_v24  ;;  %v3002_v53 = vadd.f32 %v10023_v4, %v2934_v40  ;;  %v3003_v25 = vadd.f32 %v10024_v59, %v2935_v45  ;;  %v10032_v10 = vld [vmem:[#allocation35_spill] sm:$0xff]  ;;  %v10036_v6 = vld [vmem:[#allocation96_spill] sm:$0xff]  ;;  %v10038_v3 = vld [vmem:[#allocation62_spill] sm:$0xff] }
 0x322   : > { %v3269_v44 = vadd.f32 %v10025_v56, %v3201_v11  ;;  %v3270_v14 = vadd.f32 %v10026_v33, %v3202_v1  ;;  %v3268_v39 = vadd.f32 %v10028_v63, %v3200_v36  ;;  %v3271_v0 = vadd.f32 %v10029_v12, %v3203_v57  ;;  %v10037_v21 = vld [vmem:[#allocation172_spill] sm:$0xff]  ;;  %v10041_v37 = vld [vmem:[#allocation166_spill] sm:$0xff]  ;;  %v10044_v1 = vld [vmem:[#allocation167_spill] sm:$0xff] }
 0x323   : > { %v3266_v5 = vadd.f32 %v3234_v8, %v10027_v41  ;;  %v3267_v29 = vadd.f32 %v3235_v15, %v3199_v50  ;;  %v3070_v61 = vadd.f32 %v10030_v38, %v3002_v53  ;;  %v3071_v58 = vadd.f32 %v10031_v16, %v3003_v25  ;;  %v10039_v42 = vld [vmem:[#allocation160_spill] sm:$0xff]  ;;  %v10045_v40 = vld [vmem:[#allocation26_spill] sm:$0xff]  ;;  %v10046_v45 = vld [vmem:[#allocation97_spill] sm:$0xff] }
 0x324   : > { %v3272_v24 = vadd.f32 %v10032_v10, %v3204_v28  ;;  %v3273_v22 = vadd.f32 %v10033_v43, %v3205_v30  ;;  %v3302_v23 = vmul.f32 %v10034_v18, %v8530_v31  ;;  %v3303_v47 = vmul.f32 %v10034_v18, %v8527_v13  ;;  %v10040_v62 = vld [vmem:[#allocation24_spill] sm:$0xff]  ;;  %v10042_v31 = vld [vmem:[#allocation11_spill] sm:$0xff]  ;;  %v10047_v57 = vld [vmem:[#allocation118_spill] sm:$0xff] }
 0x325   : > { %v3336_v49 = vadd.f32 %v10035_v2, %v3268_v39  ;;  %v3337_v35 = vadd.f32 %v10036_v6, %v3269_v44  ;;  %v3138_v9 = vadd.f32 %v10037_v21, %v3070_v61  ;;  %v3139_v51 = vadd.f32 %v10038_v3, %v3071_v58  ;;  %v10043_v54 = vld [vmem:[#allocation8_spill] sm:$0xff]  ;;  %v10048_v28 = vld [vmem:[#allocation58_spill] sm:$0xff]  ;;  %v10052_v59 = vld [vmem:[#allocation115_spill] sm:$0xff] }
 0x326   : > { %v3338_v46 = vadd.f32 %v10039_v42, %v3270_v14  ;;  %v3339_v26 = vadd.f32 %v10040_v62, %v3271_v0  ;;  %v3334_v48 = vadd.f32 %v3302_v23, %v3266_v5  ;;  %v3335_v32 = vadd.f32 %v3303_v47, %v3267_v29  ;;  %v10049_v52 = vld [vmem:[#allocation134_spill] sm:$0xff]  ;;  %v10051_v4 = vld [vmem:[#allocation52_spill] sm:$0xff]  ;;  %v10053_v44 = vld [vmem:[#allocation9_spill] sm:$0xff] }
 0x327   : > { %v3340_v50 = vadd.f32 %v10041_v37, %v3272_v24  ;;  %v3341_v11 = vadd.f32 %v10042_v31, %v3273_v22  ;;  %v3206_v13 = vadd.f32 %v10043_v54, %v3138_v9  ;;  %v3207_v27 = vadd.f32 %v10044_v1, %v3139_v51  ;;  %v10050_v8 = vld [vmem:[#allocation110_spill] sm:$0xff]  ;;  %v10055_v5 = vld [vmem:[#allocation36_spill] sm:$0xff]  ;;  %v10059_v16 = vld [vmem:[#allocation131_spill] sm:$0xff] }
 0x328   : > { %v3370_v55 = vmul.f32 %v10045_v40, %v9955_v20  ;;  %v3404_v7 = vadd.f32 %v10046_v45, %v3336_v49  ;;  %v3403_v60 = vadd.f32 %v10047_v57, %v3335_v32  ;;  %v3405_v36 = vadd.f32 %v10048_v28, %v3337_v35  ;;  %v10054_v14 = vld [vmem:[#allocation174_spill] sm:$0xff]  ;;  %v10056_v63 = vld [vmem:[#allocation108_spill] sm:$0xff]  ;;  %v10060_v10 = vld [vmem:[#allocation67_spill] sm:$0xff] }
 0x329   : > { %v3406_v30 = vadd.f32 %v10049_v52, %v3338_v46  ;;  %v3407_v15 = vadd.f32 %v10050_v8, %v3339_v26  ;;  %v3274_v53 = vadd.f32 %v10051_v4, %v3206_v13  ;;  %v3275_v25 = vadd.f32 %v10052_v59, %v3207_v27  ;;  %v10057_v12 = vld [vmem:[#allocation98_spill] sm:$0xff]  ;;  %v10058_v38 = vld [vmem:[#allocation16_spill] sm:$0xff]  ;;  %v10061_v43 = vld [vmem:[#allocation49_spill] sm:$0xff] }
 0x32a   : > { %v3402_v56 = vadd.f32 %v3370_v55, %v3334_v48  ;;  %v3408_v33 = vadd.f32 %v10053_v44, %v3340_v50  ;;  %v3409_v41 = vadd.f32 %v10054_v14, %v3341_v11  ;;  %v3438_v29 = vmul.f32 %v10055_v5, %v8533_v19  ;;  %v10062_v23 = vld [vmem:[#allocation176_spill] sm:$0xff]  ;;  %v10063_v2 = vld [vmem:[#allocation154_spill] sm:$0xff]  ;;  %v10064_v6 = vld [vmem:[#allocation125_spill] sm:$0xff] }
 0x32b   : > { %v3471_v39 = vadd.f32 %v10056_v63, %v3403_v60  ;;  %v3472_v0 = vadd.f32 %v10057_v12, %v3404_v7  ;;  %v3342_v61 = vadd.f32 %v10058_v38, %v3274_v53  ;;  %v3343_v58 = vadd.f32 %v10059_v16, %v3275_v25  ;;  %v10065_v19 = vld [vmem:[#allocation28_spill] sm:$0xff]  ;;  %v10066_v9 = vld [vmem:[#allocation102_spill] sm:$0xff]  ;;  %v10067_v51 = vld [vmem:[#allocation153_spill] sm:$0xff] }
 0x32c   : > { %v3473_v24 = vadd.f32 %v10060_v10, %v3405_v36  ;;  %v3474_v22 = vadd.f32 %v10061_v43, %v3406_v30  ;;  %v3470_v18 = vadd.f32 %v3438_v29, %v3402_v56  ;;  %v3475_v47 = vadd.f32 %v10062_v23, %v3407_v15  ;;  %v10068_v46 = vld [vmem:[#allocation40_spill] sm:$0xff]  ;;  %v10069_v26 = vld [vmem:[#allocation99_spill] sm:$0xff]  ;;  %v10071_v50 = vld [vmem:[#allocation186_spill] sm:$0xff] }
 0x32d   : > { %v3476_v49 = vadd.f32 %v10063_v2, %v3408_v33  ;;  %v3477_v35 = vadd.f32 %v10064_v6, %v3409_v41  ;;  %v3410_v21 = vadd.f32 %v10065_v19, %v3342_v61  ;;  %v3411_v3 = vadd.f32 %v10066_v9, %v3343_v58  ;;  %v10070_v32 = vld [vmem:[#allocation68_spill] sm:$0xff]  ;;  %v10072_v11 = vld [vmem:[#allocation137_spill] sm:$0xff]  ;;  %v10075_v55 = vld [vmem:[#allocation182_spill] sm:$0xff] }
 0x32e   : > { %v3506_v42 = vmul.f32 %v10067_v51, %v8536_v17  ;;  %v8738_v62 = vadd.f32 %v10068_v46, %v3471_v39  ;;  %v8741_v48 = vadd.f32 %v10069_v26, %v3472_v0  ;;  %v8744_v37 = vadd.f32 %v10070_v32, %v3473_v24  ;;  %v10073_v13 = vld [vmem:[#allocation48_spill] sm:$0xff]  ;;  %v10074_v27 = vld [vmem:[#allocation13_spill] sm:$0xff]  ;;  %v10077_v36 = vld [vmem:[#allocation139_spill] sm:$0xff] }
 0x32f   : > { %v8747_v31 = vadd.f32 %v10071_v50, %v3474_v22  ;;  %v8750_v54 = vadd.f32 %v10072_v11, %v3475_v47  ;;  %v3478_v1 = vadd.f32 %v10073_v13, %v3410_v21  ;;  %v3479_v40 = vadd.f32 %v10074_v27, %v3411_v3  ;;  %v10076_v7 = vld [vmem:[#allocation21_spill] sm:$0xff]  ;;  %v10078_v30 = vld [vmem:[#allocation15_spill] sm:$0xff]  ;;  %v10079_v51 = vld [vmem:[#allocation180_spill] sm:$0xff] }
 0x330   : > { %v3538_v17 = vadd.f32 %v3506_v42, %v3470_v18  ;;  %v8755_v45 = vadd.f32 %v10075_v55, %v3476_v49  ;;  %v8758_v57 = vadd.f32 %v10076_v7, %v3477_v35  ;;  %v4101_v60 = vmul.f32 -1.442695, %v8738_v62  ;;  %v10080_v32 = vld [vmem:[#allocation179_spill] sm:$0xff]  ;;  %v10081_v13 = vld [vmem:[#allocation132_spill] sm:$0xff] }
 0x331   : > { %v4102_v28 = vmul.f32 -1.442695, %v8741_v48  ;;  %v8763_v52 = vadd.f32 %v10077_v36, %v3478_v1  ;;  %v8766_v8 = vadd.f32 %v10078_v30, %v3479_v40  ;;  %v4103_v4 = vmul.f32 -1.442695, %v8744_v37  ;;  %v10082_v40 = vld [vmem:[#allocation183_spill] sm:$0xff]  ;;  %v10084_v30 = vld [vmem:[#allocation32_spill] sm:$0xff] }
 0x332   : > { %v4100_v15 = vmul.f32 -1.442695, %v3538_v17  ;;  %4512 = vpow2.f32 %v4101_v60  ;;  %v4104_v53 = vmul.f32 -1.442695, %v8747_v31  ;;  %v4105_v59 = vmul.f32 -1.442695, %v8750_v54 }
 0x333   : > { %v4106_v25 = vmul.f32 -1.442695, %v8755_v45  ;;  %v4107_v56 = vmul.f32 -1.442695, %v8758_v57  ;;  %v4108_v44 = vmul.f32 -1.442695, %v8763_v52 }
 0x334   : > { %4514 = vpow2.f32 %v4100_v15  ;;  %v4109_v33 = vmul.f32 -1.442695, %v8766_v8  ;;  %v10083_v60 = vld [vmem:[#allocation101_spill] sm:$0xff] }
 0x335   : > { %4516 = vpow2.f32 %v4102_v28 }
 0x336   : > { %4518 = vpow2.f32 %v4103_v4  ;;  %v10085_v4 = vld [vmem:[#allocation39_spill] sm:$0xff] }
 0x337   : > { %4520 = vpow2.f32 %v4104_v53 }
 0x338   : > { %4522 = vpow2.f32 %v4105_v59 }
 0x339   : > { %4524 = vpow2.f32 %v4106_v25 }
 0x33a   : > { %4526 = vpow2.f32 %v4107_v56 }
 0x33b   : > { %4528 = vpow2.f32 %v4108_v44 }
 0x33c   : > { %4530 = vpow2.f32 %v4109_v33  ;;  %v4513_v14 = vpop.eup %4512 }
 0x33d   : > { %v3667_v5 = vadd.f32 1.0, %v4513_v14 }
 0x33e   : > { %v4515_v41 = vpop.eup %4514 }
 0x33f   : > { %v4517_v29 = vpop.eup %4516  ;;  %v3666_v63 = vadd.f32 1.0, %v4515_v41  ;;  %4532 = vrcp.f32 %v3667_v5 }
 0x340   : > { %v4519_v39 = vpop.eup %4518  ;;  %v3668_v12 = vadd.f32 1.0, %v4517_v29 }
 0x341   : > { %v4521_v0 = vpop.eup %4520  ;;  %v3669_v38 = vadd.f32 1.0, %v4519_v39  ;;  %4534 = vrcp.f32 %v3666_v63 }
 0x342   : > { %v4523_v61 = vpop.eup %4522  ;;  %v3670_v16 = vadd.f32 1.0, %v4521_v0  ;;  %4536 = vrcp.f32 %v3668_v12 }
 0x343   : > { %v4525_v58 = vpop.eup %4524  ;;  %v3671_v10 = vadd.f32 1.0, %v4523_v61  ;;  %4538 = vrcp.f32 %v3669_v38 }
 0x344   : > { %v4527_v24 = vpop.eup %4526  ;;  %v3672_v43 = vadd.f32 1.0, %v4525_v58  ;;  %4540 = vrcp.f32 %v3670_v16 }
 0x345   : > { %v4529_v22 = vpop.eup %4528  ;;  %v3673_v18 = vadd.f32 1.0, %v4527_v24  ;;  %4542 = vrcp.f32 %v3671_v10 }
 0x346   : > { %v4531_v23 = vpop.eup %4530  ;;  %v3674_v47 = vadd.f32 1.0, %v4529_v22  ;;  %4544 = vrcp.f32 %v3672_v43 }
 0x347   : > { %v3675_v2 = vadd.f32 1.0, %v4531_v23  ;;  %4546 = vrcp.f32 %v3673_v18 }
 0x348   : > { %4548 = vrcp.f32 %v3674_v47 }
 0x349   : > { %4550 = vrcp.f32 %v3675_v2  ;;  %v4533_v49 = vpop.eup %4532 }
 0x34a   : > { %v3763_v35 = vmul.f32 %v4533_v49, %v8738_v62 }
 0x34b   : > { %v4535_v6 = vpop.eup %4534 }
 0x34c   : > { %v4537_v19 = vpop.eup %4536  ;;  %v3762_v21 = vmul.f32 %v4535_v6, %v3538_v17  ;;  %v3800_v42 = vsel %vm3786_vm6, %v10079_v51, %v3763_v35 }
 0x34d   : > { %v4539_v9 = vpop.eup %4538  ;;  %v3764_v3 = vmul.f32 %v4537_v19, %v8741_v48  ;;  %3832 = vst [vmem:[%s6728_s23 + $0x58] sm:$0xff] %v3800_v42 }
 0x34e   : > { %v4541_v46 = vpop.eup %4540  ;;  %v3765_v26 = vmul.f32 %v4539_v9, %v8744_v37  ;;  %v3799_v62 = vsel %vm3786_vm6, %v10080_v32, %v3762_v21 }
 0x34f   : > { %v4543_v50 = vpop.eup %4542  ;;  %v3766_v11 = vmul.f32 %v4541_v46, %v8747_v31  ;;  %v3801_v48 = vsel %vm3786_vm6, %v10081_v13, %v3764_v3  ;;  %3831 = vst [vmem:[%s6728_s23 + $0x50] sm:$0xff] %v3799_v62 }
 0x350   : > { %v4545_v1 = vpop.eup %4544  ;;  %v3767_v27 = vmul.f32 %v4543_v50, %v8750_v54  ;;  %v3802_v37 = vsel %vm3786_vm6, %v10082_v40, %v3765_v26  ;;  %3833 = vst [vmem:[%s6728_s23 + $0x60] sm:$0xff] %v3801_v48 }
 0x351   : > { %v4547_v17 = vpop.eup %4546  ;;  %v3768_v55 = vmul.f32 %v4545_v1, %v8755_v45  ;;  %v3803_v31 = vsel %vm3786_vm6, %v9955_v20, %v3766_v11  ;;  %3834 = vst [vmem:[%s6728_s23 + $0x68] sm:$0xff] %v3802_v37 }
 0x352   : > { %v4549_v7 = vpop.eup %4548  ;;  %v3769_v54 = vmul.f32 %v4547_v17, %v8758_v57  ;;  %v3804_v28 = vsel %vm3786_vm6, %v10083_v60, %v3767_v27  ;;  %3835 = vst [vmem:[%s6728_s23 + $0x70] sm:$0xff] %v3803_v31 }
 0x353   : > { %v4551_v45 = vpop.eup %4550  ;;  %v3770_v36 = vmul.f32 %v4549_v7, %v8763_v52  ;;  %v3805_v20 = vsel %vm3786_vm6, %v10084_v30, %v3768_v55  ;;  %3836 = vst [vmem:[%s6728_s23 + $0x78] sm:$0xff] %v3804_v28  ;;  %v10086_v52 = vld [vmem:[#allocation85_spill] sm:$0xff] }
 0x354   : > { %v3771_v15 = vmul.f32 %v4551_v45, %v8766_v8  ;;  %v3806_v57 = vsel %vm3786_vm6, %v10085_v4, %v3769_v54  ;;  %3837 = vst [vmem:[%s6728_s23 + $0x80] sm:$0xff] %v3805_v20  ;;  %v10087_v8 = vld [vmem:[#allocation79_spill] sm:$0xff] }
 0x355   : > { %v3807_v53 = vsel %vm3786_vm6, %v10086_v52, %v3770_v36  ;;  %3838 = vst [vmem:[%s6728_s23 + $0x88] sm:$0xff] %v3806_v57 }
 0x356   : > { %v3808_v59 = vsel %vm3786_vm6, %v10087_v8, %v3771_v15  ;;  %3839 = vst [vmem:[%s6728_s23 + $0x90] sm:$0xff] %v3807_v53 }
 0x357   : > { %3840 = vst [vmem:[%s6728_s23 + $0x98] sm:$0xff] %v3808_v59 }
 0x358   : > { %4575 = shalt.err (!%p4572_p5)
}
 0x359   : > { %s4576_s21 = scalar_lea.hbm %s8820_s17, 4096  ;;  %s4580_s10 = scalar_lea.hbm %s8888_s7, 8192 }
 0x35a   : > { %p4577_p6 = scmp.ne.s32.totalorder %s8820_s17, %s4576_s21  ;;  %p4581_p10 = scmp.lt.u32.totalorder %s8820_s17, %s8888_s7 }
 0x35b   : > { %p4582_p11 = scmp.lt.u32.totalorder %s4580_s10, %s4576_s21  ;;  %p4584_p13 = scmp.lt.u32.totalorder %s4576_s21, %s8820_s17 }
 0x35c   : > { %p4578_p7 = pnand %p4577_p6, %p4726_p4 }
 0x35d   : > { %p4583_p12 = por %p4582_p11, %p4581_p10 }
 0x35e   : > { %p4579_p9 = pneg %p4578_p7 }
 0x35f   : > { %p4585_p0 = por %p4584_p13, %p4583_p12 }
 0x361   : > { %p4586_p1 = pnand %p4585_p0, %p4579_p9 }
 0x363   : > { %4589 = shalt.err (!%p4586_p1)
}
 0x364   : > { %s4644_s16 = smov 128   ;;  %s4645_s19 = smov 8  }
 0x365   : > { %4238 = dma.vmem_to_hbm [thread:$0]  (%p4726_p4), %s8822_s15, 4096, %s8820_s17, %s8835_s18, %s4644_s16, %s4644_s16, %s4645_s19  }
 0x366 PF: > { %p4244_p2 = scmp.ge.s32.totalorder %s4640_s29, 2  ;;  %s3885_s20 = sand.u32 1, %s4620_s24  }
 0x367   : > { %s3886_s22 = scalar_lea.sflag [#allocation3], %s3885_s20 }
 0x368   : > { %p4241_p3 = pnand %p4244_p2, %p4733_p8 }
 0x36a   : > { %4615 = dma.done.wait (!%p4241_p3), %s3886_s22, 4096  }
 0x36b   : > { %4617 = vsyncadd (!%p4241_p3), %s3886_s22, 4294963200  ;;  %s20_s29 = sadd.s32 1, %s4640_s29   ;;  %s10088_s24 = smov %s4624_s25 }
 0x36c   : > { %p17_p5 = scmp.ge.s32.totalorder %s20_s29, 4   ;;  %s10089_s25 = smov %s4628_s26 }
 0x36d   : > { %s10090_s26 = smov %s4739_s14  ;;  %s10091_s27 = smov %s4636_s28 }
 0x36e   : > { %s10092_s28 = smov %s10094_s9  ;;  %19 = sbr.rel (!%p17_p5) target bundleno = 4 (0x4), region = 89 }
 0x375   :  { %3891 = vsyncpa [#allocation3], 1 }
 0x376   :  { %3893 = vsyncpa [#allocation3 + $0x1], 1 }

</bundles_post_ra>
